<compile_context>
chip_gen: v6e
topology: v6e:2x2x1
jax: 0.10.0
libtpu: 0.0.40
codegen_flags: <defaults>
</compile_context>

<pallas_src>
import functools

import jax
import jax.numpy as jnp
from jax.experimental import pallas as pl
from jax.experimental.pallas import tpu as pltpu

EPS = 1e-5
# Explicit scoped-VMEM budget: above v5e/v6e defaults, below v7x's 64 MiB.
VMEM_LIMIT = 48 * 1024 * 1024


# ---------------------------------------------------------------------------
# tile-size helpers
# ---------------------------------------------------------------------------
def _pick_h_tile(h, target=8):
    t = min(h, target)
    while t > 1 and h % t != 0:
        t -= 1
    return max(t, 1)


def _pick_row_tile(m, target=256):
    t = min(m, target)
    t -= t % 8
    while t >= 8:
        if m % t == 0:
            return t
        t -= 8
    return m


# ---------------------------------------------------------------------------
# Kernel: [optional fused BN affine + ReLU] -> depthwise 3x3 conv (pad=1)
#         -> per-tile partial (sum, sum^2) channel statistics
# ---------------------------------------------------------------------------
def _dwconv_kernel(xc_ref, xu_ref, xd_ref, k_ref, scale_ref, shift_ref,
                   h_ref, ps_ref, *, fuse_act):
    # xc: (1, TH, W, C) row tile; xu/xd: (1, 1, W, C) halo rows from the
    # neighbouring tiles (fetched via index_map — no HBM padding pass).
    i = pl.program_id(1)
    n_h = pl.num_programs(1)

    mid = xc_ref[0]                       # (TH, W, C)
    top = xu_ref[0]                       # (1,  W, C)
    bot = xd_ref[0]
    TH, W, C = mid.shape

    if fuse_act:
        # Previous layer's BatchNorm (folded affine) + ReLU, applied
        # identically to centre and halo rows.
        sc = scale_ref[...].reshape(1, 1, C)
        sh = shift_ref[...].reshape(1, 1, C)
        mid = jnp.maximum(mid * sc + sh, 0.0)
        top = jnp.maximum(top * sc + sh, 0.0)
        bot = jnp.maximum(bot * sc + sh, 0.0)

    # Image-border halo rows are conv zero-padding: zero AFTER the activation.
    top = jnp.where(i == 0, 0.0, top)
    bot = jnp.where(i == n_h - 1, 0.0, bot)
    rows = jnp.concatenate([top, mid, bot], axis=0)           # (TH+2, W, C)

    # Three W-shifted views (zero borders), reused across the 3 row taps.
    zc = jnp.zeros((TH + 2, 1, C), jnp.float32)
    w_views = (
        jnp.concatenate([zc, rows[:, :W - 1, :]], axis=1),    # column w-1
        rows,                                                 # column w
        jnp.concatenate([rows[:, 1:, :], zc], axis=1),        # column w+1
    )

    k = k_ref[...]                                            # (9, C)
    acc = None
    for dh in range(3):
        for dw in range(3):
            t = dh * 3 + dw
            tap = w_views[dw][dh:dh + TH, :, :] * k[t:t + 1].reshape(1, 1, C)
            acc = tap if acc is None else acc + tap           # (TH, W, C)

    h_ref[0] = acc

    # Per-tile partial statistics in a single sweep.
    flat = acc.reshape(TH * W, C)
    s = jnp.sum(flat, axis=0, keepdims=True)                  # (1, C)
    ss = jnp.sum(flat * flat, axis=0, keepdims=True)          # (1, C)
    ps_ref[0, 0] = jnp.concatenate([s, ss], axis=0)           # (2, C)


def dwconv_stats(x, k_dw, scale=None, shift=None, *, fuse_act, th_target=8):
    """Depthwise 3x3 conv (stride 1, pad 1) on NHWC `x`, optionally preceded
    by a fused per-channel affine + ReLU.  Returns (h, partial_stats)."""
    N, H, W, C = x.shape
    TH = _pick_h_tile(H, th_target)
    nH = H // TH
    if scale is None:
        scale = jnp.ones((1, C), jnp.float32)
        shift = jnp.zeros((1, C), jnp.float32)

    kernel = functools.partial(_dwconv_kernel, fuse_act=fuse_act)
    return pl.pallas_call(
        kernel,
        out_shape=(jax.ShapeDtypeStruct((N, H, W, C), jnp.float32),
                   jax.ShapeDtypeStruct((N, nH, 2, C), jnp.float32)),
        grid=(N, nH),
        in_specs=[
            pl.BlockSpec((1, TH, W, C), lambda n, i: (n, i, 0, 0)),
            # 1-row halo above / below the tile (block size 1 => block index
            # equals the row index); clamped at the image border, masked in
            # the kernel.
            pl.BlockSpec((1, 1, W, C),
                         lambda n, i, TH=TH: (n, jnp.maximum(i * TH - 1, 0), 0, 0)),
            pl.BlockSpec((1, 1, W, C),
                         lambda n, i, TH=TH, H=H: (n, jnp.minimum((i + 1) * TH, H - 1), 0, 0)),
            pl.BlockSpec((9, C), lambda n, i: (0, 0)),
            pl.BlockSpec((1, C), lambda n, i: (0, 0)),
            pl.BlockSpec((1, C), lambda n, i: (0, 0)),
        ],
        out_specs=(
            pl.BlockSpec((1, TH, W, C), lambda n, i: (n, i, 0, 0)),
            pl.BlockSpec((1, 1, 2, C), lambda n, i: (n, i, 0, 0)),
        ),
        compiler_params=pltpu.CompilerParams(
            dimension_semantics=("parallel", "parallel"),
            vmem_limit_bytes=VMEM_LIMIT),
    )(x, x, x, k_dw, scale, shift)


# ---------------------------------------------------------------------------
# Kernel: BN affine + ReLU -> pointwise 1x1 conv (bf16 MXU matmul) -> stats
# ---------------------------------------------------------------------------
def _pw_kernel(h_ref, scale_ref, shift_ref, w_ref, y_ref, ps_ref):
    a = jnp.maximum(h_ref[...] * scale_ref[...] + shift_ref[...], 0.0)  # (TM, Cin)
    y = jnp.dot(a.astype(jnp.bfloat16), w_ref[...],
                preferred_element_type=jnp.float32)                     # (TM, Cout)
    y_ref[...] = y
    s = jnp.sum(y, axis=0, keepdims=True)
    ss = jnp.sum(y * y, axis=0, keepdims=True)
    ps_ref[0] = jnp.concatenate([s, ss], axis=0)                        # (2, Cout)


def pw_matmul_stats(h2d, scale, shift, w_pw, *, tm_target=256):
    M, Cin = h2d.shape
    Cout = w_pw.shape[1]
    TM = _pick_row_tile(M, tm_target)
    nT = M // TM
    return pl.pallas_call(
        _pw_kernel,
        out_shape=(jax.ShapeDtypeStruct((M, Cout), jnp.float32),
                   jax.ShapeDtypeStruct((nT, 2, Cout), jnp.float32)),
        grid=(nT,),
        in_specs=[
            pl.BlockSpec((TM, Cin), lambda i: (i, 0)),
            pl.BlockSpec((1, Cin), lambda i: (0, 0)),
            pl.BlockSpec((1, Cin), lambda i: (0, 0)),
            pl.BlockSpec((Cin, Cout), lambda i: (0, 0)),
        ],
        out_specs=(
            pl.BlockSpec((TM, Cout), lambda i: (i, 0)),
            pl.BlockSpec((1, 2, Cout), lambda i: (i, 0, 0)),
        ),
        compiler_params=pltpu.CompilerParams(
            dimension_semantics=("parallel",),
            vmem_limit_bytes=VMEM_LIMIT),
    )(h2d, scale, shift, w_pw.astype(jnp.bfloat16))


# ---------------------------------------------------------------------------
# Kernel: final BN affine + ReLU
# ---------------------------------------------------------------------------
def _act_kernel(y_ref, scale_ref, shift_ref, o_ref):
    o_ref[...] = jnp.maximum(y_ref[...] * scale_ref[...] + shift_ref[...], 0.0)


def affine_relu(y2d, scale, shift, *, tm_target=512):
    M, C = y2d.shape
    TM = _pick_row_tile(M, tm_target)
    return pl.pallas_call(
        _act_kernel,
        out_shape=jax.ShapeDtypeStruct((M, C), jnp.float32),
        grid=(M // TM,),
        in_specs=[pl.BlockSpec((TM, C), lambda i: (i, 0)),
                  pl.BlockSpec((1, C), lambda i: (0, 0)),
                  pl.BlockSpec((1, C), lambda i: (0, 0))],
        out_specs=pl.BlockSpec((TM, C), lambda i: (i, 0)),
        compiler_params=pltpu.CompilerParams(
            dimension_semantics=("parallel",),
            vmem_limit_bytes=VMEM_LIMIT),
    )(y2d, scale, shift)


# ---------------------------------------------------------------------------
# BN statistics -> folded per-channel affine (tiny, plain JAX)
# ---------------------------------------------------------------------------
def _bn_affine(pstats, gamma, beta, count):
    """Training-mode BatchNorm (batch stats, biased var, eps=1e-5) folded into
    one per-channel affine: y = x*scale + shift (followed by ReLU in-kernel)."""
    C = pstats.shape[-1]
    tot = jnp.sum(pstats.reshape(-1, 2, C), axis=0)            # (2, C) in f32
    mean = tot[0] / count
    var = jnp.maximum(tot[1] / count - mean * mean, 0.0)       # guard cancellation
    scale = gamma.reshape(-1) * jax.lax.rsqrt(var + EPS)
    shift = beta.reshape(-1) - mean * scale
    return scale.reshape(1, C), shift.reshape(1, C)


# ---------------------------------------------------------------------------
# Glue: bilinear x2 upsample (align_corners=True), center pad, concat (NHWC)
# ---------------------------------------------------------------------------
def _bilinear_matrix(in_size, out_size):
    """M (out, in) s.t. y = M @ x matches torch Upsample(bilinear,
    align_corners=True) along one axis."""
    i = jnp.arange(out_size, dtype=jnp.float32)
    src = i * (in_size - 1) / (out_size - 1)
    lo = jnp.clip(jnp.floor(src).astype(jnp.int32), 0, max(in_size - 2, 0))
    frac = src - lo.astype(jnp.float32)
    rows = jnp.arange(out_size)
    M = jnp.zeros((out_size, in_size), jnp.float32)
    M = M.at[rows, lo].add(1.0 - frac)
    M = M.at[rows, jnp.minimum(lo + 1, in_size - 1)].add(frac)
    return M


def init_dsconv_params(key, cin, cout):
    k = jax.random.split(key, 4)
    return dict(
        # depthwise 3x3 taps, row = dh*3 + dw, column = channel
        k_dw=0.1 * jax.random.normal(k[0], (9, cin), jnp.float32),
        # Conv biases kept for parameter parity with nn.Conv2d but NOT used in
        # compute: a per-channel constant added before a training-mode BN is
        # exactly cancelled by the mean subtraction.
        b_dw=0.1 * jax.random.normal(k[1], (1, cin), jnp.float32),
        g1=jnp.ones((1, cin), jnp.float32),
        be1=jnp.zeros((1, cin), jnp.float32),
        w_pw=0.1 * jax.random.normal(k[2], (cin, cout), jnp.float32),
        b_pw=0.1 * jax.random.normal(k[3], (1, cout), jnp.float32),
        g2=jnp.ones((1, cout), jnp.float32),
        be2=jnp.zeros((1, cout), jnp.float32),
    )


def init_up_dsc_params(key, in_ch, out_ch):
    k1, k2 = jax.random.split(key)
    return dict(ds1=init_dsconv_params(k1, in_ch, out_ch),
                ds2=init_dsconv_params(k2, out_ch, out_ch))


@jax.jit
def up_dsc_forward(x1, x2, params):
    """x1: (N, C1, H1, W1) low-res features (upsampled x2); x2: (N, C2, H2, W2)
    skip connection.  NCHW in / NCHW out, like the PyTorch module."""
    N, _, H1, W1 = x1.shape
    _, _, H2, W2 = x2.shape

    # NCHW -> NHWC once; all glue stays channel-last (no extra transposes).
    x1n = jnp.transpose(x1, (0, 2, 3, 1))
    x2n = jnp.transpose(x2, (0, 2, 3, 1))

    # nn.Upsample(scale_factor=2, mode='bilinear', align_corners=True)
    Mh = _bilinear_matrix(H1, 2 * H1)
    Mw = _bilinear_matrix(W1, 2 * W1)
    x1u = jnp.einsum('nhwc,Hh,Ww->nHWc', x1n, Mh, Mw)

    # F.pad centring to x2's spatial size
    dY = H2 - x1u.shape[1]
    dX = W2 - x1u.shape[2]
    x1u = jnp.pad(x1u, ((0, 0), (dY // 2, dY - dY // 2),
                        (dX // 2, dX - dX // 2), (0, 0)))

    # cat([x2, x1], channel axis)
    x = jnp.concatenate([x2n, x1u], axis=-1)            # (N, H2, W2, in_ch)
    N_, H, W, Cin = x.shape
    cnt = jnp.float32(N_ * H * W)
    ds1, ds2 = params["ds1"], params["ds2"]
    Cmid = ds1["w_pw"].shape[1]
    Cout = ds2["w_pw"].shape[1]

    # ---- dsconv 1 --------------------------------------------------------
    h1, ps1 = dwconv_stats(x, ds1["k_dw"], fuse_act=False)
    sc1, sh1 = _bn_affine(ps1, ds1["g1"], ds1["be1"], cnt)              # bn1
    y1, ps2 = pw_matmul_stats(h1.reshape(N_ * H * W, Cin), sc1, sh1, ds1["w_pw"])
    sc2, sh2 = _bn_affine(ps2, ds1["g2"], ds1["be2"], cnt)              # bn2

    # ---- dsconv 2 (dsconv1's bn2+ReLU fused into its depthwise conv) -----
    h2, ps3 = dwconv_stats(y1.reshape(N_, H, W, Cmid), ds2["k_dw"],
                           sc2, sh2, fuse_act=True)
    sc3, sh3 = _bn_affine(ps3, ds2["g1"], ds2["be1"], cnt)              # bn1
    y2, ps4 = pw_matmul_stats(h2.reshape(N_ * H * W, Cmid), sc3, sh3, ds2["w_pw"])
    sc4, sh4 = _bn_affine(ps4, ds2["g2"], ds2["be2"], cnt)              # bn2
    out2d = affine_relu(y2, sc4, sh4)

    out = out2d.reshape(N_, H, W, Cout)
    return jnp.transpose(out, (0, 3, 1, 2))             # back to NCHW


# ---------------------------------------------------------------------------
if __name__ == "__main__":
    key = jax.random.PRNGKey(0)
    k_x1, k_x2, k_p = jax.random.split(key, 3)

    in_ch, out_ch = 4, 4
    N = 2
    # x1: low-resolution feature map (in_ch//2 channels, half spatial size)
    # x2: skip connection (in_ch//2 channels, full spatial size)
    x1 = jax.random.normal(k_x1, (N, in_ch // 2, 8, 8), jnp.float32)
    x2 = jax.random.normal(k_x2, (N, in_ch // 2, 16, 16), jnp.float32)

    params = init_up_dsc_params(k_p, in_ch, out_ch)

    out = up_dsc_forward(x1, x2, params)
    jax.block_until_ready(out)
    assert out.shape == (N, out_ch, 16, 16), out.shape
    assert bool(jnp.all(jnp.isfinite(out)))
    print("KERNEL_OK")
</pallas_src>

<mosaic_0001>
module attributes {stable_mosaic.version = 11 : i64} {
  func.func private @main(%arg0: i32) attributes {dimension_semantics = [#tpu.dimension_semantics<core_parallel>], iteration_bounds = array<i64: 2>, tpu.core_type = #tpu.core_type<sc_scalar_subcore>, window_params = []} {
    return
  }
}

module attributes {stable_mosaic.version = 11 : i64} {
  func.func private @main(%arg0: i32) attributes {dimension_semantics = [#tpu.dimension_semantics<core_parallel>], iteration_bounds = array<i64: 2>, tpu.core_type = #tpu.core_type<sc_scalar_subcore>, window_params = []} {
    return
  }
}

module attributes {stable_mosaic.version = 11 : i64} {
  func.func @_dwconv_kernel(%arg0: i32, %arg1: i32, %arg2: memref<1x8x16x4xf32, #tpu.memory_space<vmem>>, %arg3: memref<1x1x16x4xf32, #tpu.memory_space<vmem>>, %arg4: memref<1x1x16x4xf32, #tpu.memory_space<vmem>>, %arg5: memref<9x4xf32, #tpu.memory_space<vmem>>, %arg6: memref<1x4xf32, #tpu.memory_space<vmem>>, %arg7: memref<1x4xf32, #tpu.memory_space<vmem>>, %arg8: memref<1x8x16x4xf32, #tpu.memory_space<vmem>>, %arg9: memref<1x1x2x4xf32, #tpu.memory_space<vmem>>) attributes {dimension_semantics = [#tpu.dimension_semantics<parallel>, #tpu.dimension_semantics<parallel>], iteration_bounds = array<i64: 2, 2>, scalar_prefetch = 0 : i64, scratch_operands = 0 : i64, tpu.core_type = #tpu.core_type<tc>, window_params = [{transform_indices = @transform_0, window_bounds = array<i64: 1, 8, 16, 4>}, {transform_indices = @transform_1, window_bounds = array<i64: 1, 1, 16, 4>}, {transform_indices = @transform_2, window_bounds = array<i64: 1, 1, 16, 4>}, {pipeline_mode = #tpu.pipeline_mode<synchronous>, transform_indices = @transform_3, window_bounds = array<i64: 9, 4>}, {pipeline_mode = #tpu.pipeline_mode<synchronous>, transform_indices = @transform_4, window_bounds = array<i64: 1, 4>}, {pipeline_mode = #tpu.pipeline_mode<synchronous>, transform_indices = @transform_5, window_bounds = array<i64: 1, 4>}, {transform_indices = @transform_6, window_bounds = array<i64: 1, 8, 16, 4>}, {transform_indices = @transform_7, window_bounds = array<i64: 1, 1, 2, 4>}]} {
    %c0 = arith.constant 0 : index
    %c0_0 = arith.constant 0 : index
    %c0_1 = arith.constant 0 : index
    %c0_2 = arith.constant 0 : index
    %0 = vector.load %arg2[%c0, %c0_0, %c0_1, %c0_2] : memref<1x8x16x4xf32, #tpu.memory_space<vmem>>, vector<1x8x16x4xf32>
    %1 = vector.shape_cast %0 : vector<1x8x16x4xf32> to vector<8x16x4xf32>
    %c0_3 = arith.constant 0 : index
    %c0_4 = arith.constant 0 : index
    %c0_5 = arith.constant 0 : index
    %c0_6 = arith.constant 0 : index
    %2 = vector.load %arg3[%c0_3, %c0_4, %c0_5, %c0_6] : memref<1x1x16x4xf32, #tpu.memory_space<vmem>>, vector<1x1x16x4xf32>
    %3 = vector.shape_cast %2 : vector<1x1x16x4xf32> to vector<1x16x4xf32>
    %c0_7 = arith.constant 0 : index
    %c0_8 = arith.constant 0 : index
    %c0_9 = arith.constant 0 : index
    %c0_10 = arith.constant 0 : index
    %4 = vector.load %arg4[%c0_7, %c0_8, %c0_9, %c0_10] : memref<1x1x16x4xf32, #tpu.memory_space<vmem>>, vector<1x1x16x4xf32>
    %5 = vector.shape_cast %4 : vector<1x1x16x4xf32> to vector<1x16x4xf32>
    %c0_i32 = arith.constant 0 : i32
    %6 = arith.cmpi eq, %arg1, %c0_i32 : i32
    %cst = arith.constant 0.000000e+00 : f32
    %7 = vector.broadcast %cst : f32 to vector<1x16x4xf32>
    %8 = arith.select %6, %7, %3 : vector<1x16x4xf32>
    %c1_i32 = arith.constant 1 : i32
    %9 = arith.cmpi eq, %arg1, %c1_i32 : i32
    %cst_11 = arith.constant 0.000000e+00 : f32
    %10 = vector.broadcast %cst_11 : f32 to vector<1x16x4xf32>
    %11 = arith.select %9, %10, %5 : vector<1x16x4xf32>
    %12 = tpu.concatenate %8, %1, %11 in 0 : vector<1x16x4xf32>, vector<8x16x4xf32>, vector<1x16x4xf32> -> vector<10x16x4xf32>
    %cst_12 = arith.constant 0.000000e+00 : f32
    %13 = vector.broadcast %cst_12 : f32 to vector<10x1x4xf32>
    %14 = vector.extract_strided_slice %12 {offsets = [0, 0, 0], sizes = [10, 15, 4], strides = [1, 1, 1]} : vector<10x16x4xf32> to vector<10x15x4xf32>
    %15 = tpu.concatenate %13, %14 in 1 : vector<10x1x4xf32>, vector<10x15x4xf32> -> vector<10x16x4xf32>
    %16 = vector.extract_strided_slice %12 {offsets = [0, 1, 0], sizes = [10, 15, 4], strides = [1, 1, 1]} : vector<10x16x4xf32> to vector<10x15x4xf32>
    %17 = tpu.concatenate %16, %13 in 1 : vector<10x15x4xf32>, vector<10x1x4xf32> -> vector<10x16x4xf32>
    %c0_13 = arith.constant 0 : index
    %c0_14 = arith.constant 0 : index
    %18 = vector.load %arg5[%c0_13, %c0_14] : memref<9x4xf32, #tpu.memory_space<vmem>>, vector<9x4xf32>
    %19 = vector.extract_strided_slice %15 {offsets = [0, 0, 0], sizes = [8, 16, 4], strides = [1, 1, 1]} : vector<10x16x4xf32> to vector<8x16x4xf32>
    %20 = vector.extract_strided_slice %18 {offsets = [0, 0], sizes = [1, 4], strides = [1, 1]} : vector<9x4xf32> to vector<1x4xf32>
    %21 = vector.shape_cast %20 : vector<1x4xf32> to vector<1x1x4xf32>
    %22 = vector.broadcast %21 : vector<1x1x4xf32> to vector<8x16x4xf32>
    %23 = arith.mulf %19, %22 : vector<8x16x4xf32>
    %24 = vector.extract_strided_slice %12 {offsets = [0, 0, 0], sizes = [8, 16, 4], strides = [1, 1, 1]} : vector<10x16x4xf32> to vector<8x16x4xf32>
    %25 = vector.extract_strided_slice %18 {offsets = [1, 0], sizes = [1, 4], strides = [1, 1]} : vector<9x4xf32> to vector<1x4xf32>
    %26 = vector.shape_cast %25 : vector<1x4xf32> to vector<1x1x4xf32>
    %27 = vector.broadcast %26 : vector<1x1x4xf32> to vector<8x16x4xf32>
    %28 = arith.mulf %24, %27 : vector<8x16x4xf32>
    %29 = arith.addf %23, %28 : vector<8x16x4xf32>
    %30 = vector.extract_strided_slice %17 {offsets = [0, 0, 0], sizes = [8, 16, 4], strides = [1, 1, 1]} : vector<10x16x4xf32> to vector<8x16x4xf32>
    %31 = vector.extract_strided_slice %18 {offsets = [2, 0], sizes = [1, 4], strides = [1, 1]} : vector<9x4xf32> to vector<1x4xf32>
    %32 = vector.shape_cast %31 : vector<1x4xf32> to vector<1x1x4xf32>
    %33 = vector.broadcast %32 : vector<1x1x4xf32> to vector<8x16x4xf32>
    %34 = arith.mulf %30, %33 : vector<8x16x4xf32>
    %35 = arith.addf %29, %34 : vector<8x16x4xf32>
    %36 = vector.extract_strided_slice %15 {offsets = [1, 0, 0], sizes = [8, 16, 4], strides = [1, 1, 1]} : vector<10x16x4xf32> to vector<8x16x4xf32>
    %37 = vector.extract_strided_slice %18 {offsets = [3, 0], sizes = [1, 4], strides = [1, 1]} : vector<9x4xf32> to vector<1x4xf32>
    %38 = vector.shape_cast %37 : vector<1x4xf32> to vector<1x1x4xf32>
    %39 = vector.broadcast %38 : vector<1x1x4xf32> to vector<8x16x4xf32>
    %40 = arith.mulf %36, %39 : vector<8x16x4xf32>
    %41 = arith.addf %35, %40 : vector<8x16x4xf32>
    %42 = vector.extract_strided_slice %12 {offsets = [1, 0, 0], sizes = [8, 16, 4], strides = [1, 1, 1]} : vector<10x16x4xf32> to vector<8x16x4xf32>
    %43 = vector.extract_strided_slice %18 {offsets = [4, 0], sizes = [1, 4], strides = [1, 1]} : vector<9x4xf32> to vector<1x4xf32>
    %44 = vector.shape_cast %43 : vector<1x4xf32> to vector<1x1x4xf32>
    %45 = vector.broadcast %44 : vector<1x1x4xf32> to vector<8x16x4xf32>
    %46 = arith.mulf %42, %45 : vector<8x16x4xf32>
    %47 = arith.addf %41, %46 : vector<8x16x4xf32>
    %48 = vector.extract_strided_slice %17 {offsets = [1, 0, 0], sizes = [8, 16, 4], strides = [1, 1, 1]} : vector<10x16x4xf32> to vector<8x16x4xf32>
    %49 = vector.extract_strided_slice %18 {offsets = [5, 0], sizes = [1, 4], strides = [1, 1]} : vector<9x4xf32> to vector<1x4xf32>
    %50 = vector.shape_cast %49 : vector<1x4xf32> to vector<1x1x4xf32>
    %51 = vector.broadcast %50 : vector<1x1x4xf32> to vector<8x16x4xf32>
    %52 = arith.mulf %48, %51 : vector<8x16x4xf32>
    %53 = arith.addf %47, %52 : vector<8x16x4xf32>
    %54 = vector.extract_strided_slice %15 {offsets = [2, 0, 0], sizes = [8, 16, 4], strides = [1, 1, 1]} : vector<10x16x4xf32> to vector<8x16x4xf32>
    %55 = vector.extract_strided_slice %18 {offsets = [6, 0], sizes = [1, 4], strides = [1, 1]} : vector<9x4xf32> to vector<1x4xf32>
    %56 = vector.shape_cast %55 : vector<1x4xf32> to vector<1x1x4xf32>
    %57 = vector.broadcast %56 : vector<1x1x4xf32> to vector<8x16x4xf32>
    %58 = arith.mulf %54, %57 : vector<8x16x4xf32>
    %59 = arith.addf %53, %58 : vector<8x16x4xf32>
    %60 = vector.extract_strided_slice %12 {offsets = [2, 0, 0], sizes = [8, 16, 4], strides = [1, 1, 1]} : vector<10x16x4xf32> to vector<8x16x4xf32>
    %61 = vector.extract_strided_slice %18 {offsets = [7, 0], sizes = [1, 4], strides = [1, 1]} : vector<9x4xf32> to vector<1x4xf32>
    %62 = vector.shape_cast %61 : vector<1x4xf32> to vector<1x1x4xf32>
    %63 = vector.broadcast %62 : vector<1x1x4xf32> to vector<8x16x4xf32>
    %64 = arith.mulf %60, %63 : vector<8x16x4xf32>
    %65 = arith.addf %59, %64 : vector<8x16x4xf32>
    %66 = vector.extract_strided_slice %17 {offsets = [2, 0, 0], sizes = [8, 16, 4], strides = [1, 1, 1]} : vector<10x16x4xf32> to vector<8x16x4xf32>
    %67 = vector.extract_strided_slice %18 {offsets = [8, 0], sizes = [1, 4], strides = [1, 1]} : vector<9x4xf32> to vector<1x4xf32>
    %68 = vector.shape_cast %67 : vector<1x4xf32> to vector<1x1x4xf32>
    %69 = vector.broadcast %68 : vector<1x1x4xf32> to vector<8x16x4xf32>
    %70 = arith.mulf %66, %69 : vector<8x16x4xf32>
    %71 = arith.addf %65, %70 : vector<8x16x4xf32>
    %c0_15 = arith.constant 0 : index
    %c0_16 = arith.constant 0 : index
    %c0_17 = arith.constant 0 : index
    %c0_18 = arith.constant 0 : index
    %72 = vector.load %arg8[%c0_15, %c0_16, %c0_17, %c0_18] : memref<1x8x16x4xf32, #tpu.memory_space<vmem>>, vector<1x8x16x4xf32>
    %73 = vector.shape_cast %72 : vector<1x8x16x4xf32> to vector<8x16x4xf32>
    %74 = vector.shape_cast %71 : vector<8x16x4xf32> to vector<1x8x16x4xf32>
    tpu.vector_store %arg8[%c0_15, %c0_16, %c0_17, %c0_18], %74 {strides = array<i32>} : memref<1x8x16x4xf32, #tpu.memory_space<vmem>>, vector<1x8x16x4xf32>,
    %75 = vector.shape_cast %71 : vector<8x16x4xf32> to vector<128x4xf32>
    %cst_19 = arith.constant dense<0.000000e+00> : vector<4xf32>
    %76 = vector.multi_reduction <add>, %75, %cst_19 [0] : vector<128x4xf32> to vector<4xf32>
    %77 = vector.shape_cast %76 : vector<4xf32> to vector<1x4xf32>
    %78 = arith.mulf %75, %75 : vector<128x4xf32>
    %cst_20 = arith.constant dense<0.000000e+00> : vector<4xf32>
    %79 = vector.multi_reduction <add>, %78, %cst_20 [0] : vector<128x4xf32> to vector<4xf32>
    %80 = vector.shape_cast %79 : vector<4xf32> to vector<1x4xf32>
    %81 = tpu.concatenate %77, %80 in 0 : vector<1x4xf32>, vector<1x4xf32> -> vector<2x4xf32>
    %c0_21 = arith.constant 0 : index
    %c0_22 = arith.constant 0 : index
    %c0_23 = arith.constant 0 : index
    %c0_24 = arith.constant 0 : index
    %82 = vector.load %arg9[%c0_21, %c0_22, %c0_23, %c0_24] : memref<1x1x2x4xf32, #tpu.memory_space<vmem>>, vector<1x1x2x4xf32>
    %83 = vector.shape_cast %82 : vector<1x1x2x4xf32> to vector<2x4xf32>
    %84 = vector.shape_cast %81 : vector<2x4xf32> to vector<1x1x2x4xf32>
    tpu.vector_store %arg9[%c0_21, %c0_22, %c0_23, %c0_24], %84 {strides = array<i32>} : memref<1x1x2x4xf32, #tpu.memory_space<vmem>>, vector<1x1x2x4xf32>,
    return
  }
  func.func @transform_0(%arg0: i32, %arg1: i32) -> (i32, i32, i32, i32) {
    %c0_i32 = arith.constant 0 : i32
    %c0_i32_0 = arith.constant 0 : i32
    %c0_i32_1 = arith.constant 0 : i32
    return %arg0, %arg1, %c0_i32, %c0_i32_0 : i32, i32, i32, i32
  }
  func.func @transform_1(%arg0: i32, %arg1: i32) -> (i32, i32, i32, i32) {
    %c8_i32 = arith.constant 8 : i32
    %0 = arith.muli %arg1, %c8_i32 : i32
    %c1_i32 = arith.constant 1 : i32
    %1 = arith.subi %0, %c1_i32 : i32
    %c0_i32 = arith.constant 0 : i32
    %2 = arith.maxsi %1, %c0_i32 : i32
    %c0_i32_0 = arith.constant 0 : i32
    %c0_i32_1 = arith.constant 0 : i32
    %c0_i32_2 = arith.constant 0 : i32
    return %arg0, %2, %c0_i32_0, %c0_i32_1 : i32, i32, i32, i32
  }
  func.func @transform_2(%arg0: i32, %arg1: i32) -> (i32, i32, i32, i32) {
    %c1_i32 = arith.constant 1 : i32
    %0 = arith.addi %arg1, %c1_i32 : i32
    %c8_i32 = arith.constant 8 : i32
    %1 = arith.muli %0, %c8_i32 : i32
    %c15_i32 = arith.constant 15 : i32
    %2 = arith.minsi %1, %c15_i32 : i32
    %c0_i32 = arith.constant 0 : i32
    %c0_i32_0 = arith.constant 0 : i32
    %c0_i32_1 = arith.constant 0 : i32
    return %arg0, %2, %c0_i32, %c0_i32_0 : i32, i32, i32, i32
  }
  func.func @transform_3(%arg0: i32, %arg1: i32) -> (i32, i32) {
    %c0_i32 = arith.constant 0 : i32
    %c0_i32_0 = arith.constant 0 : i32
    %c0_i32_1 = arith.constant 0 : i32
    return %c0_i32, %c0_i32_0 : i32, i32
  }
  func.func @transform_4(%arg0: i32, %arg1: i32) -> (i32, i32) {
    %c0_i32 = arith.constant 0 : i32
    %c0_i32_0 = arith.constant 0 : i32
    %c0_i32_1 = arith.constant 0 : i32
    return %c0_i32, %c0_i32_0 : i32, i32
  }
  func.func @transform_5(%arg0: i32, %arg1: i32) -> (i32, i32) {
    %c0_i32 = arith.constant 0 : i32
    %c0_i32_0 = arith.constant 0 : i32
    %c0_i32_1 = arith.constant 0 : i32
    return %c0_i32, %c0_i32_0 : i32, i32
  }
  func.func @transform_6(%arg0: i32, %arg1: i32) -> (i32, i32, i32, i32) {
    %c0_i32 = arith.constant 0 : i32
    %c0_i32_0 = arith.constant 0 : i32
    %c0_i32_1 = arith.constant 0 : i32
    return %arg0, %arg1, %c0_i32, %c0_i32_0 : i32, i32, i32, i32
  }
  func.func @transform_7(%arg0: i32, %arg1: i32) -> (i32, i32, i32, i32) {
    %c0_i32 = arith.constant 0 : i32
    %c0_i32_0 = arith.constant 0 : i32
    %c0_i32_1 = arith.constant 0 : i32
    return %arg0, %arg1, %c0_i32, %c0_i32_0 : i32, i32, i32, i32
  }
}

module attributes {stable_mosaic.version = 11 : i64} {
  func.func @_pw_kernel(%arg0: i32, %arg1: memref<256x4xf32, #tpu.memory_space<vmem>>, %arg2: memref<1x4xf32, #tpu.memory_space<vmem>>, %arg3: memref<1x4xf32, #tpu.memory_space<vmem>>, %arg4: memref<4x4xbf16, #tpu.memory_space<vmem>>, %arg5: memref<256x4xf32, #tpu.memory_space<vmem>>, %arg6: memref<1x2x4xf32, #tpu.memory_space<vmem>>) attributes {dimension_semantics = [#tpu.dimension_semantics<parallel>], iteration_bounds = array<i64: 2>, scalar_prefetch = 0 : i64, scratch_operands = 0 : i64, tpu.core_type = #tpu.core_type<tc>, window_params = [{transform_indices = @transform_0, window_bounds = array<i64: 256, 4>}, {pipeline_mode = #tpu.pipeline_mode<synchronous>, transform_indices = @transform_1, window_bounds = array<i64: 1, 4>}, {pipeline_mode = #tpu.pipeline_mode<synchronous>, transform_indices = @transform_2, window_bounds = array<i64: 1, 4>}, {pipeline_mode = #tpu.pipeline_mode<synchronous>, transform_indices = @transform_3, window_bounds = array<i64: 4, 4>}, {transform_indices = @transform_4, window_bounds = array<i64: 256, 4>}, {transform_indices = @transform_5, window_bounds = array<i64: 1, 2, 4>}]} {
    %c0 = arith.constant 0 : index
    %c0_0 = arith.constant 0 : index
    %0 = vector.load %arg1[%c0, %c0_0] : memref<256x4xf32, #tpu.memory_space<vmem>>, vector<256x4xf32>
    %c0_1 = arith.constant 0 : index
    %c0_2 = arith.constant 0 : index
    %1 = vector.load %arg2[%c0_1, %c0_2] : memref<1x4xf32, #tpu.memory_space<vmem>>, vector<1x4xf32>
    %2 = vector.broadcast %1 : vector<1x4xf32> to vector<256x4xf32>
    %3 = arith.mulf %0, %2 : vector<256x4xf32>
    %c0_3 = arith.constant 0 : index
    %c0_4 = arith.constant 0 : index
    %4 = vector.load %arg3[%c0_3, %c0_4] : memref<1x4xf32, #tpu.memory_space<vmem>>, vector<1x4xf32>
    %5 = vector.broadcast %4 : vector<1x4xf32> to vector<256x4xf32>
    %6 = arith.addf %3, %5 : vector<256x4xf32>
    %cst = arith.constant 0.000000e+00 : f32
    %7 = vector.broadcast %cst : f32 to vector<256x4xf32>
    %8 = arith.maximumf %6, %7 : vector<256x4xf32>
    %9 = arith.truncf %8 : vector<256x4xf32> to vector<256x4xbf16>
    %c0_5 = arith.constant 0 : index
    %c0_6 = arith.constant 0 : index
    %10 = vector.load %arg4[%c0_5, %c0_6] : memref<4x4xbf16, #tpu.memory_space<vmem>>, vector<4x4xbf16>
    %cst_7 = arith.constant dense<0.000000e+00> : vector<256x4xf32>
    %11 = tpu.matmul %9, %10, %cst_7 {dimension_numbers = #tpu.dot_dimension_numbers<[1], [0], [0], [1], [0, 0, 1, 1], [], []>} : vector<256x4xbf16>, vector<4x4xbf16>, vector<256x4xf32> -> vector<256x4xf32>
    %c0_8 = arith.constant 0 : index
    %c0_9 = arith.constant 0 : index
    %12 = vector.load %arg5[%c0_8, %c0_9] : memref<256x4xf32, #tpu.memory_space<vmem>>, vector<256x4xf32>
    tpu.vector_store %arg5[%c0_8, %c0_9], %11 {strides = array<i32>} : memref<256x4xf32, #tpu.memory_space<vmem>>, vector<256x4xf32>,
    %cst_10 = arith.constant dense<0.000000e+00> : vector<4xf32>
    %13 = vector.multi_reduction <add>, %11, %cst_10 [0] : vector<256x4xf32> to vector<4xf32>
    %14 = vector.shape_cast %13 : vector<4xf32> to vector<1x4xf32>
    %15 = arith.mulf %11, %11 : vector<256x4xf32>
    %cst_11 = arith.constant dense<0.000000e+00> : vector<4xf32>
    %16 = vector.multi_reduction <add>, %15, %cst_11 [0] : vector<256x4xf32> to vector<4xf32>
    %17 = vector.shape_cast %16 : vector<4xf32> to vector<1x4xf32>
    %18 = tpu.concatenate %14, %17 in 0 : vector<1x4xf32>, vector<1x4xf32> -> vector<2x4xf32>
    %c0_12 = arith.constant 0 : index
    %c0_13 = arith.constant 0 : index
    %c0_14 = arith.constant 0 : index
    %19 = vector.load %arg6[%c0_12, %c0_13, %c0_14] : memref<1x2x4xf32, #tpu.memory_space<vmem>>, vector<1x2x4xf32>
    %20 = vector.shape_cast %19 : vector<1x2x4xf32> to vector<2x4xf32>
    %21 = vector.shape_cast %18 : vector<2x4xf32> to vector<1x2x4xf32>
    tpu.vector_store %arg6[%c0_12, %c0_13, %c0_14], %21 {strides = array<i32>} : memref<1x2x4xf32, #tpu.memory_space<vmem>>, vector<1x2x4xf32>,
    return
  }
  func.func @transform_0(%arg0: i32) -> (i32, i32) {
    %c0_i32 = arith.constant 0 : i32
    %c0_i32_0 = arith.constant 0 : i32
    return %arg0, %c0_i32 : i32, i32
  }
  func.func @transform_1(%arg0: i32) -> (i32, i32) {
    %c0_i32 = arith.constant 0 : i32
    %c0_i32_0 = arith.constant 0 : i32
    %c0_i32_1 = arith.constant 0 : i32
    return %c0_i32, %c0_i32_0 : i32, i32
  }
  func.func @transform_2(%arg0: i32) -> (i32, i32) {
    %c0_i32 = arith.constant 0 : i32
    %c0_i32_0 = arith.constant 0 : i32
    %c0_i32_1 = arith.constant 0 : i32
    return %c0_i32, %c0_i32_0 : i32, i32
  }
  func.func @transform_3(%arg0: i32) -> (i32, i32) {
    %c0_i32 = arith.constant 0 : i32
    %c0_i32_0 = arith.constant 0 : i32
    %c0_i32_1 = arith.constant 0 : i32
    return %c0_i32, %c0_i32_0 : i32, i32
  }
  func.func @transform_4(%arg0: i32) -> (i32, i32) {
    %c0_i32 = arith.constant 0 : i32
    %c0_i32_0 = arith.constant 0 : i32
    return %arg0, %c0_i32 : i32, i32
  }
  func.func @transform_5(%arg0: i32) -> (i32, i32, i32) {
    %c0_i32 = arith.constant 0 : i32
    %c0_i32_0 = arith.constant 0 : i32
    %c0_i32_1 = arith.constant 0 : i32
    return %arg0, %c0_i32, %c0_i32_0 : i32, i32, i32
  }
}

module attributes {stable_mosaic.version = 11 : i64} {
  func.func @_dwconv_kernel(%arg0: i32, %arg1: i32, %arg2: memref<1x8x16x4xf32, #tpu.memory_space<vmem>>, %arg3: memref<1x1x16x4xf32, #tpu.memory_space<vmem>>, %arg4: memref<1x1x16x4xf32, #tpu.memory_space<vmem>>, %arg5: memref<9x4xf32, #tpu.memory_space<vmem>>, %arg6: memref<1x4xf32, #tpu.memory_space<vmem>>, %arg7: memref<1x4xf32, #tpu.memory_space<vmem>>, %arg8: memref<1x8x16x4xf32, #tpu.memory_space<vmem>>, %arg9: memref<1x1x2x4xf32, #tpu.memory_space<vmem>>) attributes {dimension_semantics = [#tpu.dimension_semantics<parallel>, #tpu.dimension_semantics<parallel>], iteration_bounds = array<i64: 2, 2>, scalar_prefetch = 0 : i64, scratch_operands = 0 : i64, tpu.core_type = #tpu.core_type<tc>, window_params = [{transform_indices = @transform_0, window_bounds = array<i64: 1, 8, 16, 4>}, {transform_indices = @transform_1, window_bounds = array<i64: 1, 1, 16, 4>}, {transform_indices = @transform_2, window_bounds = array<i64: 1, 1, 16, 4>}, {pipeline_mode = #tpu.pipeline_mode<synchronous>, transform_indices = @transform_3, window_bounds = array<i64: 9, 4>}, {pipeline_mode = #tpu.pipeline_mode<synchronous>, transform_indices = @transform_4, window_bounds = array<i64: 1, 4>}, {pipeline_mode = #tpu.pipeline_mode<synchronous>, transform_indices = @transform_5, window_bounds = array<i64: 1, 4>}, {transform_indices = @transform_6, window_bounds = array<i64: 1, 8, 16, 4>}, {transform_indices = @transform_7, window_bounds = array<i64: 1, 1, 2, 4>}]} {
    %c0 = arith.constant 0 : index
    %c0_0 = arith.constant 0 : index
    %c0_1 = arith.constant 0 : index
    %c0_2 = arith.constant 0 : index
    %0 = vector.load %arg2[%c0, %c0_0, %c0_1, %c0_2] : memref<1x8x16x4xf32, #tpu.memory_space<vmem>>, vector<1x8x16x4xf32>
    %1 = vector.shape_cast %0 : vector<1x8x16x4xf32> to vector<8x16x4xf32>
    %c0_3 = arith.constant 0 : index
    %c0_4 = arith.constant 0 : index
    %c0_5 = arith.constant 0 : index
    %c0_6 = arith.constant 0 : index
    %2 = vector.load %arg3[%c0_3, %c0_4, %c0_5, %c0_6] : memref<1x1x16x4xf32, #tpu.memory_space<vmem>>, vector<1x1x16x4xf32>
    %3 = vector.shape_cast %2 : vector<1x1x16x4xf32> to vector<1x16x4xf32>
    %c0_7 = arith.constant 0 : index
    %c0_8 = arith.constant 0 : index
    %c0_9 = arith.constant 0 : index
    %c0_10 = arith.constant 0 : index
    %4 = vector.load %arg4[%c0_7, %c0_8, %c0_9, %c0_10] : memref<1x1x16x4xf32, #tpu.memory_space<vmem>>, vector<1x1x16x4xf32>
    %5 = vector.shape_cast %4 : vector<1x1x16x4xf32> to vector<1x16x4xf32>
    %c0_11 = arith.constant 0 : index
    %c0_12 = arith.constant 0 : index
    %6 = vector.load %arg6[%c0_11, %c0_12] : memref<1x4xf32, #tpu.memory_space<vmem>>, vector<1x4xf32>
    %7 = vector.shape_cast %6 : vector<1x4xf32> to vector<1x1x4xf32>
    %c0_13 = arith.constant 0 : index
    %c0_14 = arith.constant 0 : index
    %8 = vector.load %arg7[%c0_13, %c0_14] : memref<1x4xf32, #tpu.memory_space<vmem>>, vector<1x4xf32>
    %9 = vector.shape_cast %8 : vector<1x4xf32> to vector<1x1x4xf32>
    %10 = vector.broadcast %7 : vector<1x1x4xf32> to vector<8x16x4xf32>
    %11 = arith.mulf %1, %10 : vector<8x16x4xf32>
    %12 = vector.broadcast %9 : vector<1x1x4xf32> to vector<8x16x4xf32>
    %13 = arith.addf %11, %12 : vector<8x16x4xf32>
    %cst = arith.constant 0.000000e+00 : f32
    %14 = vector.broadcast %cst : f32 to vector<8x16x4xf32>
    %15 = arith.maximumf %13, %14 : vector<8x16x4xf32>
    %16 = vector.broadcast %7 : vector<1x1x4xf32> to vector<1x16x4xf32>
    %17 = arith.mulf %3, %16 : vector<1x16x4xf32>
    %18 = vector.broadcast %9 : vector<1x1x4xf32> to vector<1x16x4xf32>
    %19 = arith.addf %17, %18 : vector<1x16x4xf32>
    %cst_15 = arith.constant 0.000000e+00 : f32
    %20 = vector.broadcast %cst_15 : f32 to vector<1x16x4xf32>
    %21 = arith.maximumf %19, %20 : vector<1x16x4xf32>
    %22 = vector.broadcast %7 : vector<1x1x4xf32> to vector<1x16x4xf32>
    %23 = arith.mulf %5, %22 : vector<1x16x4xf32>
    %24 = vector.broadcast %9 : vector<1x1x4xf32> to vector<1x16x4xf32>
    %25 = arith.addf %23, %24 : vector<1x16x4xf32>
    %cst_16 = arith.constant 0.000000e+00 : f32
    %26 = vector.broadcast %cst_16 : f32 to vector<1x16x4xf32>
    %27 = arith.maximumf %25, %26 : vector<1x16x4xf32>
    %c0_i32 = arith.constant 0 : i32
    %28 = arith.cmpi eq, %arg1, %c0_i32 : i32
    %cst_17 = arith.constant 0.000000e+00 : f32
    %29 = vector.broadcast %cst_17 : f32 to vector<1x16x4xf32>
    %30 = arith.select %28, %29, %21 : vector<1x16x4xf32>
    %c1_i32 = arith.constant 1 : i32
    %31 = arith.cmpi eq, %arg1, %c1_i32 : i32
    %cst_18 = arith.constant 0.000000e+00 : f32
    %32 = vector.broadcast %cst_18 : f32 to vector<1x16x4xf32>
    %33 = arith.select %31, %32, %27 : vector<1x16x4xf32>
    %34 = tpu.concatenate %30, %15, %33 in 0 : vector<1x16x4xf32>, vector<8x16x4xf32>, vector<1x16x4xf32> -> vector<10x16x4xf32>
    %cst_19 = arith.constant 0.000000e+00 : f32
    %35 = vector.broadcast %cst_19 : f32 to vector<10x1x4xf32>
    %36 = vector.extract_strided_slice %34 {offsets = [0, 0, 0], sizes = [10, 15, 4], strides = [1, 1, 1]} : vector<10x16x4xf32> to vector<10x15x4xf32>
    %37 = tpu.concatenate %35, %36 in 1 : vector<10x1x4xf32>, vector<10x15x4xf32> -> vector<10x16x4xf32>
    %38 = vector.extract_strided_slice %34 {offsets = [0, 1, 0], sizes = [10, 15, 4], strides = [1, 1, 1]} : vector<10x16x4xf32> to vector<10x15x4xf32>
    %39 = tpu.concatenate %38, %35 in 1 : vector<10x15x4xf32>, vector<10x1x4xf32> -> vector<10x16x4xf32>
    %c0_20 = arith.constant 0 : index
    %c0_21 = arith.constant 0 : index
    %40 = vector.load %arg5[%c0_20, %c0_21] : memref<9x4xf32, #tpu.memory_space<vmem>>, vector<9x4xf32>
    %41 = vector.extract_strided_slice %37 {offsets = [0, 0, 0], sizes = [8, 16, 4], strides = [1, 1, 1]} : vector<10x16x4xf32> to vector<8x16x4xf32>
    %42 = vector.extract_strided_slice %40 {offsets = [0, 0], sizes = [1, 4], strides = [1, 1]} : vector<9x4xf32> to vector<1x4xf32>
    %43 = vector.shape_cast %42 : vector<1x4xf32> to vector<1x1x4xf32>
    %44 = vector.broadcast %43 : vector<1x1x4xf32> to vector<8x16x4xf32>
    %45 = arith.mulf %41, %44 : vector<8x16x4xf32>
    %46 = vector.extract_strided_slice %34 {offsets = [0, 0, 0], sizes = [8, 16, 4], strides = [1, 1, 1]} : vector<10x16x4xf32> to vector<8x16x4xf32>
    %47 = vector.extract_strided_slice %40 {offsets = [1, 0], sizes = [1, 4], strides = [1, 1]} : vector<9x4xf32> to vector<1x4xf32>
    %48 = vector.shape_cast %47 : vector<1x4xf32> to vector<1x1x4xf32>
    %49 = vector.broadcast %48 : vector<1x1x4xf32> to vector<8x16x4xf32>
    %50 = arith.mulf %46, %49 : vector<8x16x4xf32>
    %51 = arith.addf %45, %50 : vector<8x16x4xf32>
    %52 = vector.extract_strided_slice %39 {offsets = [0, 0, 0], sizes = [8, 16, 4], strides = [1, 1, 1]} : vector<10x16x4xf32> to vector<8x16x4xf32>
    %53 = vector.extract_strided_slice %40 {offsets = [2, 0], sizes = [1, 4], strides = [1, 1]} : vector<9x4xf32> to vector<1x4xf32>
    %54 = vector.shape_cast %53 : vector<1x4xf32> to vector<1x1x4xf32>
    %55 = vector.broadcast %54 : vector<1x1x4xf32> to vector<8x16x4xf32>
    %56 = arith.mulf %52, %55 : vector<8x16x4xf32>
    %57 = arith.addf %51, %56 : vector<8x16x4xf32>
    %58 = vector.extract_strided_slice %37 {offsets = [1, 0, 0], sizes = [8, 16, 4], strides = [1, 1, 1]} : vector<10x16x4xf32> to vector<8x16x4xf32>
    %59 = vector.extract_strided_slice %40 {offsets = [3, 0], sizes = [1, 4], strides = [1, 1]} : vector<9x4xf32> to vector<1x4xf32>
    %60 = vector.shape_cast %59 : vector<1x4xf32> to vector<1x1x4xf32>
    %61 = vector.broadcast %60 : vector<1x1x4xf32> to vector<8x16x4xf32>
    %62 = arith.mulf %58, %61 : vector<8x16x4xf32>
    %63 = arith.addf %57, %62 : vector<8x16x4xf32>
    %64 = vector.extract_strided_slice %34 {offsets = [1, 0, 0], sizes = [8, 16, 4], strides = [1, 1, 1]} : vector<10x16x4xf32> to vector<8x16x4xf32>
    %65 = vector.extract_strided_slice %40 {offsets = [4, 0], sizes = [1, 4], strides = [1, 1]} : vector<9x4xf32> to vector<1x4xf32>
    %66 = vector.shape_cast %65 : vector<1x4xf32> to vector<1x1x4xf32>
    %67 = vector.broadcast %66 : vector<1x1x4xf32> to vector<8x16x4xf32>
    %68 = arith.mulf %64, %67 : vector<8x16x4xf32>
    %69 = arith.addf %63, %68 : vector<8x16x4xf32>
    %70 = vector.extract_strided_slice %39 {offsets = [1, 0, 0], sizes = [8, 16, 4], strides = [1, 1, 1]} : vector<10x16x4xf32> to vector<8x16x4xf32>
    %71 = vector.extract_strided_slice %40 {offsets = [5, 0], sizes = [1, 4], strides = [1, 1]} : vector<9x4xf32> to vector<1x4xf32>
    %72 = vector.shape_cast %71 : vector<1x4xf32> to vector<1x1x4xf32>
    %73 = vector.broadcast %72 : vector<1x1x4xf32> to vector<8x16x4xf32>
    %74 = arith.mulf %70, %73 : vector<8x16x4xf32>
    %75 = arith.addf %69, %74 : vector<8x16x4xf32>
    %76 = vector.extract_strided_slice %37 {offsets = [2, 0, 0], sizes = [8, 16, 4], strides = [1, 1, 1]} : vector<10x16x4xf32> to vector<8x16x4xf32>
    %77 = vector.extract_strided_slice %40 {offsets = [6, 0], sizes = [1, 4], strides = [1, 1]} : vector<9x4xf32> to vector<1x4xf32>
    %78 = vector.shape_cast %77 : vector<1x4xf32> to vector<1x1x4xf32>
    %79 = vector.broadcast %78 : vector<1x1x4xf32> to vector<8x16x4xf32>
    %80 = arith.mulf %76, %79 : vector<8x16x4xf32>
    %81 = arith.addf %75, %80 : vector<8x16x4xf32>
    %82 = vector.extract_strided_slice %34 {offsets = [2, 0, 0], sizes = [8, 16, 4], strides = [1, 1, 1]} : vector<10x16x4xf32> to vector<8x16x4xf32>
    %83 = vector.extract_strided_slice %40 {offsets = [7, 0], sizes = [1, 4], strides = [1, 1]} : vector<9x4xf32> to vector<1x4xf32>
    %84 = vector.shape_cast %83 : vector<1x4xf32> to vector<1x1x4xf32>
    %85 = vector.broadcast %84 : vector<1x1x4xf32> to vector<8x16x4xf32>
    %86 = arith.mulf %82, %85 : vector<8x16x4xf32>
    %87 = arith.addf %81, %86 : vector<8x16x4xf32>
    %88 = vector.extract_strided_slice %39 {offsets = [2, 0, 0], sizes = [8, 16, 4], strides = [1, 1, 1]} : vector<10x16x4xf32> to vector<8x16x4xf32>
    %89 = vector.extract_strided_slice %40 {offsets = [8, 0], sizes = [1, 4], strides = [1, 1]} : vector<9x4xf32> to vector<1x4xf32>
    %90 = vector.shape_cast %89 : vector<1x4xf32> to vector<1x1x4xf32>
    %91 = vector.broadcast %90 : vector<1x1x4xf32> to vector<8x16x4xf32>
    %92 = arith.mulf %88, %91 : vector<8x16x4xf32>
    %93 = arith.addf %87, %92 : vector<8x16x4xf32>
    %c0_22 = arith.constant 0 : index
    %c0_23 = arith.constant 0 : index
    %c0_24 = arith.constant 0 : index
    %c0_25 = arith.constant 0 : index
    %94 = vector.load %arg8[%c0_22, %c0_23, %c0_24, %c0_25] : memref<1x8x16x4xf32, #tpu.memory_space<vmem>>, vector<1x8x16x4xf32>
    %95 = vector.shape_cast %94 : vector<1x8x16x4xf32> to vector<8x16x4xf32>
    %96 = vector.shape_cast %93 : vector<8x16x4xf32> to vector<1x8x16x4xf32>
    tpu.vector_store %arg8[%c0_22, %c0_23, %c0_24, %c0_25], %96 {strides = array<i32>} : memref<1x8x16x4xf32, #tpu.memory_space<vmem>>, vector<1x8x16x4xf32>,
    %97 = vector.shape_cast %93 : vector<8x16x4xf32> to vector<128x4xf32>
    %cst_26 = arith.constant dense<0.000000e+00> : vector<4xf32>
    %98 = vector.multi_reduction <add>, %97, %cst_26 [0] : vector<128x4xf32> to vector<4xf32>
    %99 = vector.shape_cast %98 : vector<4xf32> to vector<1x4xf32>
    %100 = arith.mulf %97, %97 : vector<128x4xf32>
    %cst_27 = arith.constant dense<0.000000e+00> : vector<4xf32>
    %101 = vector.multi_reduction <add>, %100, %cst_27 [0] : vector<128x4xf32> to vector<4xf32>
    %102 = vector.shape_cast %101 : vector<4xf32> to vector<1x4xf32>
    %103 = tpu.concatenate %99, %102 in 0 : vector<1x4xf32>, vector<1x4xf32> -> vector<2x4xf32>
    %c0_28 = arith.constant 0 : index
    %c0_29 = arith.constant 0 : index
    %c0_30 = arith.constant 0 : index
    %c0_31 = arith.constant 0 : index
    %104 = vector.load %arg9[%c0_28, %c0_29, %c0_30, %c0_31] : memref<1x1x2x4xf32, #tpu.memory_space<vmem>>, vector<1x1x2x4xf32>
    %105 = vector.shape_cast %104 : vector<1x1x2x4xf32> to vector<2x4xf32>
    %106 = vector.shape_cast %103 : vector<2x4xf32> to vector<1x1x2x4xf32>
    tpu.vector_store %arg9[%c0_28, %c0_29, %c0_30, %c0_31], %106 {strides = array<i32>} : memref<1x1x2x4xf32, #tpu.memory_space<vmem>>, vector<1x1x2x4xf32>,
    return
  }
  func.func @transform_0(%arg0: i32, %arg1: i32) -> (i32, i32, i32, i32) {
    %c0_i32 = arith.constant 0 : i32
    %c0_i32_0 = arith.constant 0 : i32
    %c0_i32_1 = arith.constant 0 : i32
    return %arg0, %arg1, %c0_i32, %c0_i32_0 : i32, i32, i32, i32
  }
  func.func @transform_1(%arg0: i32, %arg1: i32) -> (i32, i32, i32, i32) {
    %c8_i32 = arith.constant 8 : i32
    %0 = arith.muli %arg1, %c8_i32 : i32
    %c1_i32 = arith.constant 1 : i32
    %1 = arith.subi %0, %c1_i32 : i32
    %c0_i32 = arith.constant 0 : i32
    %2 = arith.maxsi %1, %c0_i32 : i32
    %c0_i32_0 = arith.constant 0 : i32
    %c0_i32_1 = arith.constant 0 : i32
    %c0_i32_2 = arith.constant 0 : i32
    return %arg0, %2, %c0_i32_0, %c0_i32_1 : i32, i32, i32, i32
  }
  func.func @transform_2(%arg0: i32, %arg1: i32) -> (i32, i32, i32, i32) {
    %c1_i32 = arith.constant 1 : i32
    %0 = arith.addi %arg1, %c1_i32 : i32
    %c8_i32 = arith.constant 8 : i32
    %1 = arith.muli %0, %c8_i32 : i32
    %c15_i32 = arith.constant 15 : i32
    %2 = arith.minsi %1, %c15_i32 : i32
    %c0_i32 = arith.constant 0 : i32
    %c0_i32_0 = arith.constant 0 : i32
    %c0_i32_1 = arith.constant 0 : i32
    return %arg0, %2, %c0_i32, %c0_i32_0 : i32, i32, i32, i32
  }
  func.func @transform_3(%arg0: i32, %arg1: i32) -> (i32, i32) {
    %c0_i32 = arith.constant 0 : i32
    %c0_i32_0 = arith.constant 0 : i32
    %c0_i32_1 = arith.constant 0 : i32
    return %c0_i32, %c0_i32_0 : i32, i32
  }
  func.func @transform_4(%arg0: i32, %arg1: i32) -> (i32, i32) {
    %c0_i32 = arith.constant 0 : i32
    %c0_i32_0 = arith.constant 0 : i32
    %c0_i32_1 = arith.constant 0 : i32
    return %c0_i32, %c0_i32_0 : i32, i32
  }
  func.func @transform_5(%arg0: i32, %arg1: i32) -> (i32, i32) {
    %c0_i32 = arith.constant 0 : i32
    %c0_i32_0 = arith.constant 0 : i32
    %c0_i32_1 = arith.constant 0 : i32
    return %c0_i32, %c0_i32_0 : i32, i32
  }
  func.func @transform_6(%arg0: i32, %arg1: i32) -> (i32, i32, i32, i32) {
    %c0_i32 = arith.constant 0 : i32
    %c0_i32_0 = arith.constant 0 : i32
    %c0_i32_1 = arith.constant 0 : i32
    return %arg0, %arg1, %c0_i32, %c0_i32_0 : i32, i32, i32, i32
  }
  func.func @transform_7(%arg0: i32, %arg1: i32) -> (i32, i32, i32, i32) {
    %c0_i32 = arith.constant 0 : i32
    %c0_i32_0 = arith.constant 0 : i32
    %c0_i32_1 = arith.constant 0 : i32
    return %arg0, %arg1, %c0_i32, %c0_i32_0 : i32, i32, i32, i32
  }
}

module attributes {stable_mosaic.version = 11 : i64} {
  func.func @_act_kernel(%arg0: i32, %arg1: memref<512x4xf32, #tpu.memory_space<vmem>>, %arg2: memref<1x4xf32, #tpu.memory_space<vmem>>, %arg3: memref<1x4xf32, #tpu.memory_space<vmem>>, %arg4: memref<512x4xf32, #tpu.memory_space<vmem>>) attributes {dimension_semantics = [#tpu.dimension_semantics<parallel>], iteration_bounds = array<i64: 1>, scalar_prefetch = 0 : i64, scratch_operands = 0 : i64, tpu.core_type = #tpu.core_type<tc>, window_params = [{transform_indices = @transform_0, window_bounds = array<i64: 512, 4>}, {pipeline_mode = #tpu.pipeline_mode<synchronous>, transform_indices = @transform_1, window_bounds = array<i64: 1, 4>}, {pipeline_mode = #tpu.pipeline_mode<synchronous>, transform_indices = @transform_2, window_bounds = array<i64: 1, 4>}, {transform_indices = @transform_3, window_bounds = array<i64: 512, 4>}]} {
    %c0 = arith.constant 0 : index
    %c0_0 = arith.constant 0 : index
    %0 = vector.load %arg1[%c0, %c0_0] : memref<512x4xf32, #tpu.memory_space<vmem>>, vector<512x4xf32>
    %c0_1 = arith.constant 0 : index
    %c0_2 = arith.constant 0 : index
    %1 = vector.load %arg2[%c0_1, %c0_2] : memref<1x4xf32, #tpu.memory_space<vmem>>, vector<1x4xf32>
    %2 = vector.broadcast %1 : vector<1x4xf32> to vector<512x4xf32>
    %3 = arith.mulf %0, %2 : vector<512x4xf32>
    %c0_3 = arith.constant 0 : index
    %c0_4 = arith.constant 0 : index
    %4 = vector.load %arg3[%c0_3, %c0_4] : memref<1x4xf32, #tpu.memory_space<vmem>>, vector<1x4xf32>
    %5 = vector.broadcast %4 : vector<1x4xf32> to vector<512x4xf32>
    %6 = arith.addf %3, %5 : vector<512x4xf32>
    %cst = arith.constant 0.000000e+00 : f32
    %7 = vector.broadcast %cst : f32 to vector<512x4xf32>
    %8 = arith.maximumf %6, %7 : vector<512x4xf32>
    %c0_5 = arith.constant 0 : index
    %c0_6 = arith.constant 0 : index
    %9 = vector.load %arg4[%c0_5, %c0_6] : memref<512x4xf32, #tpu.memory_space<vmem>>, vector<512x4xf32>
    tpu.vector_store %arg4[%c0_5, %c0_6], %8 {strides = array<i32>} : memref<512x4xf32, #tpu.memory_space<vmem>>, vector<512x4xf32>,
    return
  }
  func.func @transform_0(%arg0: i32) -> (i32, i32) {
    %c0_i32 = arith.constant 0 : i32
    %c0_i32_0 = arith.constant 0 : i32
    return %arg0, %c0_i32 : i32, i32
  }
  func.func @transform_1(%arg0: i32) -> (i32, i32) {
    %c0_i32 = arith.constant 0 : i32
    %c0_i32_0 = arith.constant 0 : i32
    %c0_i32_1 = arith.constant 0 : i32
    return %c0_i32, %c0_i32_0 : i32, i32
  }
  func.func @transform_2(%arg0: i32) -> (i32, i32) {
    %c0_i32 = arith.constant 0 : i32
    %c0_i32_0 = arith.constant 0 : i32
    %c0_i32_1 = arith.constant 0 : i32
    return %c0_i32, %c0_i32_0 : i32, i32
  }
  func.func @transform_3(%arg0: i32) -> (i32, i32) {
    %c0_i32 = arith.constant 0 : i32
    %c0_i32_0 = arith.constant 0 : i32
    return %arg0, %c0_i32 : i32, i32
  }
}

</mosaic_0001>

<bundles_post_ra>
// kernel: up_dsc_forward.6
= control target key start
LH: loop header
LB: loop body
LE: loop exit
PB: predicated region body
PF: predicated region fallthrough
CT: control target
= control target key end

     0   :  { %s1037_s18 = smov 0   ;;  %s1407_s0 = inlined_call_operand.vmem [shape: f32[512,4], index: 0, kind: input, shape index: {}]   ;;  %s1408_s1 = inlined_call_operand.vmem [shape: f32[1,4], index: 1, kind: input, shape index: {}]   ;;  %s1409_s2 = inlined_call_operand.vmem [shape: f32[1,4], index: 2, kind: input, shape index: {}]   ;;  %s1410_s3 = inlined_call_operand.vmem [shape: bf16[4,4], index: 3, kind: input, shape index: {}]   ;;  %s1411_s4 = inlined_call_operand.vmem [shape: f32[512,4], index: 4, kind: output, shape index: {0}]   ;;  %s1412_s5 = inlined_call_operand.vmem [shape: f32[2,2,4], index: 5, kind: output, shape index: {1}]  }
   0x1 LB: > { %s1043_s19 = sadd.s32 4294967295, %s1005_s18   ;;  %p910_p0 = scmp.ge.s32.totalorder %s1005_s18, 1  ;;  %s1005_s18 = sphi %s1037_s18, %s16_s18  }
   0x2   : > { %p191_p1 = scmp.lt.s32.totalorder %s1005_s18, 3 }
   0x4   : > { %p192_p2 = pnand %p910_p0, %p191_p1 }
   0x5   : > { %s911_s22 = sshll.u32 (!%p192_p2), %s1043_s19, 5  ;;  %p235_p4 = scmp.lt.s32.totalorder (!%p192_p2), %s1043_s19, 1 }
   0x6   : > { %195 = sbr.rel (%p192_p2) target bundleno = 302 (0x12e), region = 36  ;;  %p224_p3 = scmp.lt.s32.totalorder (!%p192_p2), %s911_s22, 63 }
   0xb   : > { %v398_v0 = vld [vmem:[%s1410_s3] sm:$0x3]  ;;  %vm448_vm0 = vcmask 1041408   ;;  %s1414_s22 = smov (!%p224_p3, %s911_s22), 63  ;;  %vm399_vm1 = vcmask 31744   ;;  %s1416_s19 = smov (!%p235_p4, %s1043_s19), 1 }
   0xc   : > { %989 = vmatprep.subr.msk.bf16.mxu0 %vm448_vm0, %v398_v0  ;;  %v450_v1 = vsel %vm448_vm0, %v398_v0, 0  ;;  %990 = vmatprep.subr.msk.bf16.mxu1 %vm448_vm0, %v398_v0  ;;  %s912_s23 = sshll.u32 %s1414_s22, 3  ;;  %v1057_v2 = vld [vmem:[%s1408_s1] ss:$0 sm:$0xff]  ;;  %s915_s9 = sshll.u32 %s1416_s19, 1  ;;  %vm815_vm2 = vcmask 1040384  }
   0xd   : > { %954 = vmatpush3.bf16.msra.mxu0 %v450_v1  ;;  %988 = vmatpush3.bf16.msra.mxu1 %v450_v1  ;;  %s1064_s28 = scalar_lea.vmem %s1407_s0, %s912_s23  ;;  %v1069_v3 = vld [vmem:[%s1409_s2] ss:$0 sm:$0xff]  ;;  %s1191_s8 = scalar_lea.vmem %s1411_s4, %s912_s23  ;;  %vm817_vm3 = vcmask 25600  }
   0xe   : > { %v240_v4 = vld [vmem:[%s1064_s28] sm:$0xff]  ;;  %v241_v5 = vld [vmem:[%s1064_s28 + $0x8] sm:$0xff]  ;;  %v242_v6 = vld [vmem:[%s1064_s28 + $0x10] sm:$0xff]  ;;  %s238_s12 = scalar_lea.vmem %s1412_s5, %s915_s9 }
   0xf   : > { %v279_v7 = vmul.f32 %v1057_v2, %v240_v4  ;;  %v280_v8 = vmul.f32 %v1057_v2, %v241_v5  ;;  %v243_v9 = vld [vmem:[%s1064_s28 + $0x18] sm:$0xff]  ;;  %v281_v10 = vmul.f32 %v1057_v2, %v242_v6  ;;  %v244_v11 = vld [vmem:[%s1064_s28 + $0x20] sm:$0xff]  ;;  %v245_v12 = vld [vmem:[%s1064_s28 + $0x28] sm:$0xff] }
  0x10   : > { %v282_v13 = vmul.f32 %v1057_v2, %v243_v9  ;;  %v283_v14 = vmul.f32 %v1057_v2, %v244_v11  ;;  %v284_v15 = vmul.f32 %v1057_v2, %v245_v12  ;;  %v246_v16 = vld [vmem:[%s1064_s28 + $0x30] sm:$0xff]  ;;  %v247_v17 = vld [vmem:[%s1064_s28 + $0x38] sm:$0xff]  ;;  %v248_v26 = vld [vmem:[%s1064_s28 + $0x40] sm:$0xff] }
  0x11   : > { %v318_v18 = vadd.f32 %v1069_v3, %v279_v7  ;;  %v319_v19 = vadd.f32 %v1069_v3, %v280_v8  ;;  %v320_v20 = vadd.f32 %v1069_v3, %v281_v10  ;;  %v285_v21 = vmul.f32 %v1057_v2, %v246_v16  ;;  %v249_v27 = vld [vmem:[%s1064_s28 + $0x48] sm:$0xff]  ;;  %v250_v32 = vld [vmem:[%s1064_s28 + $0x50] sm:$0xff]  ;;  %v251_v37 = vld [vmem:[%s1064_s28 + $0x58] sm:$0xff] }
  0x12   : > { %v321_v22 = vadd.f32 %v1069_v3, %v282_v13  ;;  %v322_v23 = vadd.f32 %v1069_v3, %v283_v14  ;;  %v323_v24 = vadd.f32 %v1069_v3, %v284_v15  ;;  %v286_v25 = vmul.f32 %v1057_v2, %v247_v17  ;;  %v252_v38 = vld [vmem:[%s1064_s28 + $0x60] sm:$0xff]  ;;  %v253_v43 = vld [vmem:[%s1064_s28 + $0x68] sm:$0xff]  ;;  %v254_v44 = vld [vmem:[%s1064_s28 + $0x70] sm:$0xff] }
  0x13   : > { %v350_v28 = vmax.f32 %v318_v18, 0.0  ;;  %v351_v29 = vmax.f32 %v319_v19, 0.0  ;;  %v352_v30 = vmax.f32 %v320_v20, 0.0  ;;  %v324_v31 = vadd.f32 %v1069_v3, %v285_v21  ;;  %v255_v53 = vld [vmem:[%s1064_s28 + $0x78] sm:$0xff]  ;;  %v256_v57 = vld [vmem:[%s1064_s28 + $0x80] sm:$0xff]  ;;  %v257_v62 = vld [vmem:[%s1064_s28 + $0x88] sm:$0xff] }
  0x14   : > { %v353_v33 = vmax.f32 %v321_v22, 0.0  ;;  %v354_v34 = vmax.f32 %v322_v23, 0.0  ;;  %v355_v35 = vmax.f32 %v323_v24, 0.0  ;;  %v325_v36 = vadd.f32 %v1069_v3, %v286_v25  ;;  %v258_v1 = vld [vmem:[%s1064_s28 + $0x90] sm:$0xff]  ;;  %v259_v4 = vld [vmem:[%s1064_s28 + $0x98] sm:$0xff]  ;;  %v260_v8 = vld [vmem:[%s1064_s28 + $0xa0] sm:$0xff] }
  0x15   : > { %v382_v39 = vpack.c.bf16 %v351_v29, %v350_v28  ;;  %v356_v40 = vmax.f32 %v324_v31, 0.0  ;;  %v287_v41 = vmul.f32 %v1057_v2, %v248_v26  ;;  %v288_v42 = vmul.f32 %v1057_v2, %v249_v27  ;;  %v261_v13 = vld [vmem:[%s1064_s28 + $0xa8] sm:$0xff]  ;;  %v262_v18 = vld [vmem:[%s1064_s28 + $0xb0] sm:$0xff]  ;;  %v263_v23 = vld [vmem:[%s1064_s28 + $0xb8] sm:$0xff] }
  0x16   : > { %v383_v45 = vpack.c.bf16 %v353_v33, %v352_v30  ;;  %v384_v46 = vpack.c.bf16 %v355_v35, %v354_v34  ;;  %v357_v47 = vmax.f32 %v325_v36, 0.0  ;;  %v289_v48 = vmul.f32 %v1057_v2, %v250_v32  ;;  %v264_v28 = vld [vmem:[%s1064_s28 + $0xc0] sm:$0xff]  ;;  %v265_v33 = vld [vmem:[%s1064_s28 + $0xc8] sm:$0xff] }
  0x17   : > { %955 = vmatprep.mubr.msk.bf16.mxu0 %vm399_vm1, %v382_v39  ;;  %v326_v49 = vadd.f32 %v1069_v3, %v287_v41  ;;  %v327_v50 = vadd.f32 %v1069_v3, %v288_v42  ;;  %v290_v51 = vmul.f32 %v1057_v2, %v251_v37  ;;  %v291_v52 = vmul.f32 %v1057_v2, %v252_v38  ;;  %v266_v38 = vld [vmem:[%s1064_s28 + $0xd0] sm:$0xff] }
  0x18   : > { %956 = vmatmul.mubr.msk.bf16.vlgmr.msra.gmra.mxu0 %vm399_vm1, %v383_v45  ;;  %v328_v54 = vadd.f32 %v1069_v3, %v289_v48  ;;  %v292_v55 = vmul.f32 %v1057_v2, %v253_v43  ;;  %v293_v56 = vmul.f32 %v1057_v2, %v254_v44  ;;  %v294_v0 = vmul.f32 %v1057_v2, %v255_v53  ;;  %v267_v43 = vld [vmem:[%s1064_s28 + $0xd8] sm:$0xff]  ;;  %v268_v48 = vld [vmem:[%s1064_s28 + $0xe0] sm:$0xff] }
  0x19   : > { %959 = vmatprep.mubr.msk.bf16.mxu0 %vm399_vm1, %v384_v46  ;;  %v358_v58 = vmax.f32 %v326_v49, 0.0  ;;  %v359_v59 = vmax.f32 %v327_v50, 0.0  ;;  %v329_v60 = vadd.f32 %v1069_v3, %v290_v51  ;;  %v330_v61 = vadd.f32 %v1069_v3, %v291_v52  ;;  %v269_v49 = vld [vmem:[%s1064_s28 + $0xe8] sm:$0xff] }
  0x1a   : > { %v331_v63 = vadd.f32 %v1069_v3, %v292_v55  ;;  %v385_v5 = vpack.c.bf16 %v357_v47, %v356_v40  ;;  %v360_v6 = vmax.f32 %v328_v54, 0.0  ;;  %v295_v7 = vmul.f32 %v1057_v2, %v256_v57 }
  0x1b   : > { %v386_v9 = vpack.c.bf16 %v359_v59, %v358_v58  ;;  %v361_v10 = vmax.f32 %v329_v60, 0.0  ;;  %v1127_v11 = vadd.f32 %v1069_v3, %v293_v56  ;;  %v296_v12 = vmul.f32 %v1057_v2, %v257_v62 }
  0x1c   : > { %v362_v14 = vmax.f32 %v330_v61, 0.0  ;;  %v334_v15 = vadd.f32 %v1069_v3, %v295_v7  ;;  %v297_v16 = vmul.f32 %v1057_v2, %v258_v1  ;;  %v298_v17 = vmul.f32 %v1057_v2, %v259_v4 }
  0x1d   : > { %v363_v19 = vmax.f32 %v331_v63, 0.0  ;;  %v333_v20 = vadd.f32 %v1069_v3, %v294_v0  ;;  %v335_v21 = vadd.f32 %v1069_v3, %v296_v12  ;;  %v299_v22 = vmul.f32 %v1057_v2, %v260_v8  ;;  %v270_v8 = vld [vmem:[%s1064_s28 + $0xf0] sm:$0xff] }
  0x1e   : > { %v366_v24 = vmax.f32 %v334_v15, 0.0  ;;  %v336_v25 = vadd.f32 %v1069_v3, %v297_v16  ;;  %v337_v26 = vadd.f32 %v1069_v3, %v298_v17  ;;  %v300_v27 = vmul.f32 %v1057_v2, %v261_v13 }
  0x1f   : > { %v387_v29 = vpack.c.bf16 %v361_v10, %v360_v6  ;;  %v367_v30 = vmax.f32 %v335_v21, 0.0  ;;  %v338_v31 = vadd.f32 %v1069_v3, %v299_v22  ;;  %v301_v32 = vmul.f32 %v1057_v2, %v262_v18 }
  0x20   : > { %960 = vmatmul.mubr.msk.bf16.gmra.mxu0 %vm399_vm1, %v385_v5  ;;  %v368_v34 = vmax.f32 %v336_v25, 0.0  ;;  %v369_v35 = vmax.f32 %v337_v26, 0.0  ;;  %v339_v36 = vadd.f32 %v1069_v3, %v300_v27  ;;  %v302_v37 = vmul.f32 %v1057_v2, %v263_v23 }
  0x21   : > { %963 = vmatprep.mubr.msk.bf16.mxu0 %vm399_vm1, %v386_v9  ;;  %v390_v39 = vpack.c.bf16 %v367_v30, %v366_v24  ;;  %v370_v40 = vmax.f32 %v338_v31, 0.0  ;;  %v340_v41 = vadd.f32 %v1069_v3, %v301_v32  ;;  %v303_v42 = vmul.f32 %v1057_v2, %v264_v28  ;;  %v271_v9 = vld [vmem:[%s1064_s28 + $0xf8] sm:$0xff] }
  0x22   : > { %v391_v44 = vpack.c.bf16 %v369_v35, %v368_v34  ;;  %v371_v45 = vmax.f32 %v339_v36, 0.0  ;;  %v341_v46 = vadd.f32 %v1069_v3, %v302_v37  ;;  %v304_v47 = vmul.f32 %v1057_v2, %v265_v33 }
  0x23   : > { %v388_v50 = vpack.c.bf16 %v363_v19, %v362_v14  ;;  %971 = vmatprep.mubr.msk.bf16.mxu1 %vm399_vm1, %v390_v39  ;;  %v372_v51 = vmax.f32 %v340_v41, 0.0  ;;  %v342_v52 = vadd.f32 %v1069_v3, %v303_v42  ;;  %v305_v53 = vmul.f32 %v1057_v2, %v266_v38 }
  0x24   : > { %972 = vmatmul.mubr.msk.bf16.vlgmr.msra.gmra.mxu1 %vm399_vm1, %v391_v44  ;;  %v392_v54 = vpack.c.bf16 %v371_v45, %v370_v40  ;;  %v373_v55 = vmax.f32 %v341_v46, 0.0  ;;  %v343_v56 = vadd.f32 %v1069_v3, %v304_v47  ;;  %v306_v57 = vmul.f32 %v1057_v2, %v267_v43 }
  0x25   : > { %v374_v58 = vmax.f32 %v342_v52, 0.0  ;;  %v307_v59 = vmul.f32 %v1057_v2, %v268_v48  ;;  %v308_v60 = vmul.f32 %v1057_v2, %v269_v49  ;;  %v364_v62 = vmax.f32 %v1127_v11, 0.0 }
  0x26   : > { %975 = vmatprep.mubr.msk.bf16.mxu1 %vm399_vm1, %v392_v54  ;;  %v375_v61 = vmax.f32 %v343_v56, 0.0  ;;  %v365_v63 = vmax.f32 %v333_v20, 0.0  ;;  %v393_v0 = vpack.c.bf16 %v373_v55, %v372_v51  ;;  %v344_v1 = vadd.f32 %v1069_v3, %v305_v53 }
  0x27   : > { %v345_v4 = vadd.f32 %v1069_v3, %v306_v57  ;;  %v346_v6 = vadd.f32 %v1069_v3, %v307_v59  ;;  %v347_v7 = vadd.f32 %v1069_v3, %v308_v60  ;;  %v309_v13 = vmul.f32 %v1057_v2, %v270_v8 }
  0x28   : > { %964 = vmatmul.mubr.msk.bf16.gmra.mxu0 %vm399_vm1, %v387_v29  ;;  %v394_v5 = vpack.c.bf16 %v375_v61, %v374_v58  ;;  %v389_v10 = vpack.c.bf16 %v365_v63, %v364_v62  ;;  %v376_v12 = vmax.f32 %v344_v1, 0.0  ;;  %v310_v14 = vmul.f32 %v1057_v2, %v271_v9 }
  0x29   : > { %967 = vmatprep.mubr.msk.bf16.mxu0 %vm399_vm1, %v388_v50  ;;  %v377_v11 = vmax.f32 %v345_v4, 0.0  ;;  %v378_v15 = vmax.f32 %v346_v6, 0.0  ;;  %v379_v16 = vmax.f32 %v347_v7, 0.0  ;;  %v348_v18 = vadd.f32 %v1069_v3, %v309_v13 }
  0x2a   : > { %v349_v19 = vadd.f32 %v1069_v3, %v310_v14 }
  0x2b   : > { %v395_v17 = vpack.c.bf16 %v377_v11, %v376_v12  ;;  %v396_v20 = vpack.c.bf16 %v379_v16, %v378_v15  ;;  %v380_v21 = vmax.f32 %v348_v18, 0.0 }
  0x2c   : > { %976 = vmatmul.mubr.msk.bf16.gmra.mxu1 %vm399_vm1, %v393_v0  ;;  %v381_v22 = vmax.f32 %v349_v19, 0.0 }
  0x2d   : > { %979 = vmatprep.mubr.msk.bf16.mxu1 %vm399_vm1, %v394_v5 }
  0x2e   : > { %v397_v23 = vpack.c.bf16 %v381_v22, %v380_v21 }
  0x30   : > { %968 = vmatmul.mubr.msk.bf16.gmra.mxu0 %vm399_vm1, %v389_v10 }
  0x34   : > { %980 = vmatmul.mubr.msk.bf16.gmra.mxu1 %vm399_vm1, %v395_v17 }
  0x35   : > { %983 = vmatprep.mubr.msk.bf16.mxu1 %vm399_vm1, %v396_v20 }
  0x3c   : > { %984 = vmatmul.mubr.msk.bf16.gmra.mxu1 %vm399_vm1, %v397_v23 }
  0xd8   : > { %v957_v2 = vpop.f32.mrf.mxu0 }
  0xd9   : > { %615 = vst.msk [vmem:[%s1191_s8 + $0x10] sm:$0xff] %vm399_vm1, %v957_v2  ;;  %v716_v27 = vmul.f32 %v957_v2, %v957_v2  ;;  %v648_v33 = vsel %vm399_vm1, %v957_v2, 0.0 }
  0xda   : > { %v486_v3 = vpop.f32.mrf.mxu0 }
  0xdb   : > { %613 = vst.msk [vmem:[%s1191_s8] sm:$0xff] %vm399_vm1, %v486_v3  ;;  %v714_v25 = vmul.f32 %v486_v3, %v486_v3  ;;  %v645_v28 = vsel %vm399_vm1, %v486_v3, 0.0  ;;  %v749_v40 = vsel %vm399_vm1, %v716_v27, 0.0 }
  0xdc   : > { %v958_v24 = vpop.f32.mrf.mxu0 }
  0xdd   : > { %616 = vst.msk [vmem:[%s1191_s8 + $0x18] sm:$0xff] %vm399_vm1, %v958_v24  ;;  %v746_v34 = vsel %vm399_vm1, %v714_v25, 0.0  ;;  %v717_v35 = vmul.f32 %v958_v24, %v958_v24  ;;  %v650_v41 = vsel %vm399_vm1, %v958_v24, 0.0 }
  0xde   : > { %v489_v26 = vpop.f32.mrf.mxu0 }
  0xdf   : > { %614 = vst.msk [vmem:[%s1191_s8 + $0x8] sm:$0xff] %vm399_vm1, %v489_v26  ;;  %v646_v29 = vsel %vm399_vm1, %v489_v26, 0.0  ;;  %v715_v30 = vmul.f32 %v489_v26, %v489_v26  ;;  %v751_v46 = vsel %vm399_vm1, %v717_v35, 0.0 }
  0xe0   : > { %v647_v31 = vadd.f32 %v646_v29, %v645_v28  ;;  %v961_v32 = vpop.f32.mrf.mxu0 }
  0xe1   : > { %v747_v36 = vsel %vm399_vm1, %v715_v30, 0.0  ;;  %619 = vst.msk [vmem:[%s1191_s8 + $0x30] sm:$0xff] %vm399_vm1, %v961_v32  ;;  %v720_v52 = vmul.f32 %v961_v32, %v961_v32  ;;  %v656_v60 = vsel %vm399_vm1, %v961_v32, 0.0 }
  0xe2   : > { %v649_v37 = vadd.f32 %v648_v33, %v647_v31  ;;  %v748_v38 = vadd.f32 %v747_v36, %v746_v34  ;;  %v502_v39 = vpop.f32.mrf.mxu0 }
  0xe3   : > { %617 = vst.msk [vmem:[%s1191_s8 + $0x20] sm:$0xff] %vm399_vm1, %v502_v39  ;;  %v718_v42 = vmul.f32 %v502_v39, %v502_v39  ;;  %v652_v47 = vsel %vm399_vm1, %v502_v39, 0.0  ;;  %v757_v5 = vsel %vm399_vm1, %v720_v52, 0.0 }
  0xe4   : > { %v750_v43 = vadd.f32 %v749_v40, %v748_v38  ;;  %v651_v44 = vadd.f32 %v650_v41, %v649_v37  ;;  %v962_v45 = vpop.f32.mrf.mxu0  ;;  %v1216_v48 = vpop.f32.mrf.mxu1 }
  0xe5   : > { %620 = vst.msk [vmem:[%s1191_s8 + $0x38] sm:$0xff] %vm399_vm1, %v962_v45  ;;  %631 = vst.msk [vmem:[%s1191_s8 + $0x90] sm:$0xff] %vm399_vm1, %v1216_v48  ;;  %v753_v53 = vsel %vm399_vm1, %v718_v42, 0.0  ;;  %v721_v61 = vmul.f32 %v962_v45, %v962_v45  ;;  %v658_v6 = vsel %vm399_vm1, %v962_v45, 0.0 }
  0xe6   : > { %v653_v49 = vadd.f32 %v652_v47, %v651_v44  ;;  %v752_v50 = vadd.f32 %v751_v46, %v750_v43  ;;  %v505_v51 = vpop.f32.mrf.mxu0  ;;  %v1225_v56 = vpop.f32.mrf.mxu1 }
  0xe7   : > { %618 = vst.msk [vmem:[%s1191_s8 + $0x28] sm:$0xff] %vm399_vm1, %v505_v51  ;;  %v654_v54 = vsel %vm399_vm1, %v505_v51, 0.0  ;;  %v719_v55 = vmul.f32 %v505_v51, %v505_v51  ;;  %629 = vst.msk [vmem:[%s1191_s8 + $0x80] sm:$0xff] %vm399_vm1, %v1225_v56  ;;  %v759_v11 = vsel %vm399_vm1, %v721_v61, 0.0  ;;  %v730_v61 = vmul.f32 %v1225_v56, %v1225_v56 }
  0xe8   : > { %v754_v57 = vadd.f32 %v753_v53, %v752_v50  ;;  %v655_v58 = vadd.f32 %v654_v54, %v653_v49  ;;  %v965_v59 = vpop.f32.mrf.mxu0  ;;  %v1234_v63 = vpop.f32.mrf.mxu1 }
  0xe9   : > { %v755_v62 = vsel %vm399_vm1, %v719_v55, 0.0  ;;  %623 = vst.msk [vmem:[%s1191_s8 + $0x50] sm:$0xff] %vm399_vm1, %v965_v59  ;;  %632 = vst.msk [vmem:[%s1191_s8 + $0x98] sm:$0xff] %vm399_vm1, %v1234_v63  ;;  %v724_v18 = vmul.f32 %v965_v59, %v965_v59  ;;  %v664_v24 = vsel %vm399_vm1, %v965_v59, 0.0 }
  0xea   : > { %v657_v0 = vadd.f32 %v656_v60, %v655_v58  ;;  %v756_v1 = vadd.f32 %v755_v62, %v754_v57  ;;  %v518_v4 = vpop.f32.mrf.mxu0  ;;  %v1243_v8 = vpop.f32.mrf.mxu1 }
  0xeb   : > { %621 = vst.msk [vmem:[%s1191_s8 + $0x40] sm:$0xff] %vm399_vm1, %v518_v4  ;;  %v722_v7 = vmul.f32 %v518_v4, %v518_v4  ;;  %630 = vst.msk [vmem:[%s1191_s8 + $0x88] sm:$0xff] %vm399_vm1, %v1243_v8  ;;  %v660_v13 = vsel %vm399_vm1, %v518_v4, 0.0  ;;  %v765_v31 = vsel %vm399_vm1, %v724_v18, 0.0  ;;  %v733_v18 = vmul.f32 %v1234_v63, %v1234_v63 }
  0xec   : > { %v758_v9 = vadd.f32 %v757_v5, %v756_v1  ;;  %v659_v10 = vadd.f32 %v658_v6, %v657_v0  ;;  %v966_v12 = vpop.f32.mrf.mxu0  ;;  %v1252_v14 = vpop.f32.mrf.mxu1  ;;  %v676_v5 = vsel %vm399_vm1, %v1225_v56, 0.0  ;;  %v731_v6 = vmul.f32 %v1243_v8, %v1243_v8 }
  0xed   : > { %624 = vst.msk [vmem:[%s1191_s8 + $0x58] sm:$0xff] %vm399_vm1, %v966_v12  ;;  %635 = vst.msk [vmem:[%s1191_s8 + $0xb0] sm:$0xff] %vm399_vm1, %v1252_v14  ;;  %v761_v19 = vsel %vm399_vm1, %v722_v7, 0.0  ;;  %v725_v25 = vmul.f32 %v966_v12, %v966_v12  ;;  %v666_v32 = vsel %vm399_vm1, %v966_v12, 0.0  ;;  %v732_v12 = vmul.f32 %v1216_v48, %v1216_v48 }
  0xee   : > { %v661_v15 = vadd.f32 %v660_v13, %v659_v10  ;;  %v760_v16 = vadd.f32 %v759_v11, %v758_v9  ;;  %v521_v17 = vpop.f32.mrf.mxu0  ;;  %v1261_v22 = vpop.f32.mrf.mxu1  ;;  %v777_v11 = vsel %vm399_vm1, %v730_v61, 0.0  ;;  %v678_v13 = vsel %vm399_vm1, %v1243_v8, 0.0 }
  0xef   : > { %622 = vst.msk [vmem:[%s1191_s8 + $0x48] sm:$0xff] %vm399_vm1, %v521_v17  ;;  %v662_v20 = vsel %vm399_vm1, %v521_v17, 0.0  ;;  %v723_v21 = vmul.f32 %v521_v17, %v521_v17  ;;  %633 = vst.msk [vmem:[%s1191_s8 + $0xa0] sm:$0xff] %vm399_vm1, %v1261_v22  ;;  %v767_v38 = vsel %vm399_vm1, %v725_v25, 0.0  ;;  %v680_v17 = vsel %vm399_vm1, %v1216_v48, 0.0 }
  0xf0   : > { %v762_v23 = vadd.f32 %v761_v19, %v760_v16  ;;  %v663_v2 = vadd.f32 %v662_v20, %v661_v15  ;;  %v969_v3 = vpop.f32.mrf.mxu0  ;;  %v1270_v27 = vpop.f32.mrf.mxu1  ;;  %v779_v19 = vsel %vm399_vm1, %v731_v6, 0.0  ;;  %v781_v8 = vsel %vm399_vm1, %v732_v12, 0.0 }
  0xf1   : > { %v763_v26 = vsel %vm399_vm1, %v723_v21, 0.0  ;;  %627 = vst.msk [vmem:[%s1191_s8 + $0x70] sm:$0xff] %vm399_vm1, %v969_v3  ;;  %636 = vst.msk [vmem:[%s1191_s8 + $0xb8] sm:$0xff] %vm399_vm1, %v1270_v27  ;;  %v728_v44 = vmul.f32 %v969_v3, %v969_v3  ;;  %v672_v52 = vsel %vm399_vm1, %v969_v3, 0.0  ;;  %v734_v48 = vmul.f32 %v1261_v22, %v1261_v22 }
  0xf2   : > { %v665_v28 = vadd.f32 %v664_v24, %v663_v2  ;;  %v764_v29 = vadd.f32 %v763_v26, %v762_v23  ;;  %v534_v30 = vpop.f32.mrf.mxu0  ;;  %v1279_v34 = vpop.f32.mrf.mxu1  ;;  %v682_v2 = vsel %vm399_vm1, %v1234_v63, 0.0  ;;  %v783_v26 = vsel %vm399_vm1, %v733_v18, 0.0 }
  0xf3   : > { %625 = vst.msk [vmem:[%s1191_s8 + $0x60] sm:$0xff] %vm399_vm1, %v534_v30  ;;  %v726_v33 = vmul.f32 %v534_v30, %v534_v30  ;;  %634 = vst.msk [vmem:[%s1191_s8 + $0xa8] sm:$0xff] %vm399_vm1, %v1279_v34  ;;  %v668_v39 = vsel %vm399_vm1, %v534_v30, 0.0  ;;  %v773_v59 = vsel %vm399_vm1, %v728_v44, 0.0  ;;  %v736_v63 = vmul.f32 %v1252_v14, %v1252_v14 }
  0xf4   : > { %v766_v35 = vadd.f32 %v765_v31, %v764_v29  ;;  %v667_v36 = vadd.f32 %v666_v32, %v665_v28  ;;  %v970_v37 = vpop.f32.mrf.mxu0  ;;  %v1288_v40 = vpop.f32.mrf.mxu1  ;;  %v684_v28 = vsel %vm399_vm1, %v1261_v22, 0.0  ;;  %v735_v29 = vmul.f32 %v1279_v34, %v1279_v34 }
  0xf5   : > { %628 = vst.msk [vmem:[%s1191_s8 + $0x78] sm:$0xff] %vm399_vm1, %v970_v37  ;;  %639 = vst.msk [vmem:[%s1191_s8 + $0xd0] sm:$0xff] %vm399_vm1, %v1288_v40  ;;  %v769_v45 = vsel %vm399_vm1, %v726_v33, 0.0  ;;  %v729_v53 = vmul.f32 %v970_v37, %v970_v37  ;;  %v674_v60 = vsel %vm399_vm1, %v970_v37, 0.0  ;;  %v785_v32 = vsel %vm399_vm1, %v734_v48, 0.0 }
  0xf6   : > { %v669_v41 = vadd.f32 %v668_v39, %v667_v36  ;;  %v768_v42 = vadd.f32 %v767_v38, %v766_v35  ;;  %v537_v43 = vpop.f32.mrf.mxu0  ;;  %v1297_v49 = vpop.f32.mrf.mxu1  ;;  %v686_v33 = vsel %vm399_vm1, %v1279_v34, 0.0  ;;  %v688_v37 = vsel %vm399_vm1, %v1252_v14, 0.0 }
  0xf7   : > { %626 = vst.msk [vmem:[%s1191_s8 + $0x68] sm:$0xff] %vm399_vm1, %v537_v43  ;;  %v670_v46 = vsel %vm399_vm1, %v537_v43, 0.0  ;;  %v727_v47 = vmul.f32 %v537_v43, %v537_v43  ;;  %637 = vst.msk [vmem:[%s1191_s8 + $0xc0] sm:$0xff] %vm399_vm1, %v1297_v49  ;;  %v775_v4 = vsel %vm399_vm1, %v729_v53, 0.0  ;;  %v737_v22 = vmul.f32 %v1270_v27, %v1270_v27 }
  0xf8   : > { %v770_v50 = vadd.f32 %v769_v45, %v768_v42  ;;  %v671_v51 = vadd.f32 %v670_v46, %v669_v41  ;;  %v1304_v55 = vpop.f32.mrf.mxu1  ;;  %v787_v38 = vsel %vm399_vm1, %v735_v29, 0.0  ;;  %v789_v42 = vsel %vm399_vm1, %v736_v63, 0.0 }
  0xf9   : > { %v771_v54 = vsel %vm399_vm1, %v727_v47, 0.0  ;;  %640 = vst.msk [vmem:[%s1191_s8 + $0xd8] sm:$0xff] %vm399_vm1, %v1304_v55  ;;  %v690_v43 = vsel %vm399_vm1, %v1270_v27, 0.0  ;;  %v738_v34 = vmul.f32 %v1297_v49, %v1297_v49  ;;  %v791_v46 = vsel %vm399_vm1, %v737_v22, 0.0 }
  0xfa   : > { %v673_v57 = vadd.f32 %v672_v52, %v671_v51  ;;  %v772_v58 = vadd.f32 %v771_v54, %v770_v50  ;;  %v585_v62 = vpop.f32.mrf.mxu1  ;;  %v692_v14 = vsel %vm399_vm1, %v1297_v49, 0.0  ;;  %v740_v52 = vmul.f32 %v1288_v40, %v1288_v40 }
  0xfb   : > { %638 = vst.msk [vmem:[%s1191_s8 + $0xc8] sm:$0xff] %vm399_vm1, %v585_v62  ;;  %v739_v47 = vmul.f32 %v585_v62, %v585_v62  ;;  %v793_v53 = vsel %vm399_vm1, %v738_v34, 0.0  ;;  %v694_v27 = vsel %vm399_vm1, %v585_v62, 0.0 }
  0xfc   : > { %v675_v0 = vadd.f32 %v674_v60, %v673_v57  ;;  %v774_v1 = vadd.f32 %v773_v59, %v772_v58  ;;  %v1320_v7 = vpop.f32.mrf.mxu1  ;;  %v696_v58 = vsel %vm399_vm1, %v1288_v40, 0.0  ;;  %v741_v59 = vmul.f32 %v1304_v55, %v1304_v55 }
  0xfd   : > { %643 = vst.msk [vmem:[%s1191_s8 + $0xf0] sm:$0xff] %vm399_vm1, %v1320_v7  ;;  %v795_v49 = vsel %vm399_vm1, %v739_v47, 0.0 }
  0xfe   : > { %v776_v9 = vadd.f32 %v775_v4, %v774_v1  ;;  %v677_v10 = vadd.f32 %v676_v5, %v675_v0  ;;  %v598_v56 = vpop.f32.mrf.mxu1  ;;  %v797_v0 = vsel %vm399_vm1, %v740_v52, 0.0  ;;  %v698_v1 = vsel %vm399_vm1, %v1304_v55, 0.0 }
  0xff   : > { %641 = vst.msk [vmem:[%s1191_s8 + $0xe0] sm:$0xff] %vm399_vm1, %v598_v56  ;;  %v742_v4 = vmul.f32 %v598_v56, %v598_v56  ;;  %v799_v6 = vsel %vm399_vm1, %v741_v59, 0.0 }
 0x100   : > { %v679_v15 = vadd.f32 %v678_v13, %v677_v10  ;;  %v778_v16 = vadd.f32 %v777_v11, %v776_v9  ;;  %v1337_v20 = vpop.f32.mrf.mxu1  ;;  %v700_v9 = vsel %vm399_vm1, %v598_v56, 0.0  ;;  %v744_v11 = vmul.f32 %v1320_v7, %v1320_v7 }
 0x101   : > { %644 = vst.msk [vmem:[%s1191_s8 + $0xf8] sm:$0xff] %vm399_vm1, %v1337_v20  ;;  %v801_v13 = vsel %vm399_vm1, %v742_v4, 0.0  ;;  %v745_v18 = vmul.f32 %v1337_v20, %v1337_v20 }
 0x102   : > { %v681_v21 = vadd.f32 %v680_v17, %v679_v15  ;;  %v780_v23 = vadd.f32 %v779_v19, %v778_v16  ;;  %v601_v3 = vpop.f32.mrf.mxu1  ;;  %v704_v17 = vsel %vm399_vm1, %v1320_v7, 0.0 }
 0x103   : > { %642 = vst.msk [vmem:[%s1191_s8 + $0xe8] sm:$0xff] %vm399_vm1, %v601_v3  ;;  %v743_v40 = vmul.f32 %v601_v3, %v601_v3  ;;  %v702_v15 = vsel %vm399_vm1, %v601_v3, 0.0  ;;  %v807_v3 = vsel %vm399_vm1, %v745_v18, 0.0 }
 0x104   : > { %v782_v24 = vadd.f32 %v781_v8, %v780_v23  ;;  %v683_v25 = vadd.f32 %v682_v2, %v681_v21  ;;  %v805_v23 = vsel %vm399_vm1, %v744_v11, 0.0  ;;  %v706_v8 = vsel %vm399_vm1, %v1337_v20, 0.0 }
 0x105   : > { %v803_v56 = vsel %vm399_vm1, %v743_v40, 0.0 }
 0x106   : > { %v685_v30 = vadd.f32 %v684_v28, %v683_v25  ;;  %v784_v31 = vadd.f32 %v783_v26, %v782_v24 }
 0x108   : > { %v786_v35 = vadd.f32 %v785_v32, %v784_v31  ;;  %v687_v36 = vadd.f32 %v686_v33, %v685_v30 }
 0x10a   : > { %v689_v39 = vadd.f32 %v688_v37, %v687_v36  ;;  %v788_v41 = vadd.f32 %v787_v38, %v786_v35 }
 0x10c   : > { %v790_v44 = vadd.f32 %v789_v42, %v788_v41  ;;  %v691_v45 = vadd.f32 %v690_v43, %v689_v39 }
 0x10e   : > { %v693_v50 = vadd.f32 %v692_v14, %v691_v45  ;;  %v792_v51 = vadd.f32 %v791_v46, %v790_v44 }
 0x110   : > { %v794_v54 = vadd.f32 %v793_v53, %v792_v51  ;;  %v695_v57 = vadd.f32 %v694_v27, %v693_v50 }
 0x112   : > { %v697_v60 = vadd.f32 %v696_v58, %v695_v57  ;;  %v796_v61 = vadd.f32 %v795_v49, %v794_v54 }
 0x114   : > { %v798_v5 = vadd.f32 %v797_v0, %v796_v61  ;;  %v699_v62 = vadd.f32 %v698_v1, %v697_v60 }
 0x116   : > { %v701_v10 = vadd.f32 %v700_v9, %v699_v62  ;;  %v800_v12 = vadd.f32 %v799_v6, %v798_v5 }
 0x118   : > { %v802_v16 = vadd.f32 %v801_v13, %v800_v12  ;;  %v703_v55 = vadd.f32 %v702_v15, %v701_v10 }
 0x11a   : > { %v705_v19 = vadd.f32 %v704_v17, %v703_v55  ;;  %v804_v21 = vadd.f32 %v803_v56, %v802_v16 }
 0x11c   : > { %v707_v2 = vadd.f32 %v706_v8, %v705_v19  ;;  %v806_v48 = vadd.f32 %v805_v23, %v804_v21 }
 0x11e   : > { %v708_v24 = vrot.slane %v707_v2, 4  ;;  %v808_v25 = vadd.f32 %v807_v3, %v806_v48 }
 0x120   : > { %v709_v7 = vadd.f32 %v708_v24, %v707_v2  ;;  %v809_v26 = vrot.slane %v808_v25, 4 }
 0x122   : > { %v710_v28 = vrot.slane %v709_v7, 2  ;;  %v810_v29 = vadd.f32 %v809_v26, %v808_v25 }
 0x124   : > { %v711_v30 = vadd.f32 %v710_v28, %v709_v7  ;;  %v811_v31 = vrot.slane %v810_v29, 2 }
 0x126   : > { %v712_v63 = vrot.slane %v711_v30, 1  ;;  %v812_v32 = vadd.f32 %v811_v31, %v810_v29 }
 0x128   : > { %v813_v33 = vrot.slane %v812_v32, 1  ;;  %v713_v20 = vadd.f32 %v712_v63, %v711_v30 }
 0x12a   : > { %v814_v35 = vadd.f32 %v813_v33, %v812_v32 }
 0x12c   : > { %v816_v36 = vsel %vm815_vm2, %v713_v20, %v814_v35 }
 0x12d   : > { %818 = vst.msk [vmem:[%s238_s12] sm:$0x3] %vm817_vm3, %v816_v36 }
 0x12e PF: > { %s16_s18 = sadd.s32 1, %s1005_s18  }
 0x12f   : > { %p13_p5 = scmp.ge.s32.totalorder %s16_s18, 4  }
 0x131   :  { %15 = sbr.rel (!%p13_p5) target bundleno = 1 (0x1), region = 78 }

// kernel: up_dsc_forward.7
= control target key start
LH: loop header
LB: loop body
LE: loop exit
PB: predicated region body
PF: predicated region fallthrough
CT: control target
= control target key end

     0   :  { %s1495_s24 = smov 0   ;;  %s1497_s25 = smov 0   ;;  %s2108_s0 = inlined_call_operand.vmem [shape: f32[2,16,16,4], index: 0, kind: input, shape index: {}, may-alias: {0,1,2}]   ;;  %s2109_s1 = inlined_call_operand.vmem [shape: f32[2,16,16,4], index: 1, kind: input, shape index: {}, may-alias: {0,1,2}]   ;;  %s2110_s2 = inlined_call_operand.vmem [shape: f32[2,16,16,4], index: 2, kind: input, shape index: {}, may-alias: {0,1,2}]   ;;  %s2111_s3 = inlined_call_operand.vmem [shape: f32[9,4], index: 3, kind: input, shape index: {}]   ;;  %s2112_s4 = inlined_call_operand.vmem [shape: f32[1,4], index: 4, kind: input, shape index: {}]   ;;  %s2113_s5 = inlined_call_operand.vmem [shape: f32[1,4], index: 5, kind: input, shape index: {}]   ;;  %s2114_s6 = inlined_call_operand.vmem [shape: f32[2,16,16,4], index: 6, kind: output, shape index: {0}]   ;;  %s2115_s7 = inlined_call_operand.vmem [shape: f32[2,2,2,4], index: 7, kind: output, shape index: {1}]  }
   0x1   :  { %s1499_s26 = smov 0   ;;  %s1501_s27 = smov 0  }
   0x2   :  { %s1503_s28 = smov 0  }
   0x3 LB: > { %s27_s29 = sadd.s32 1, %s1445_s26  ;;  %s30_s30 = sadd.s32 1, %s1449_s27  ;;  %s1453_s28 = sphi %s1503_s28, %s18_s28   ;;  %s1449_s27 = sphi %s1501_s27, %s2122_s27   ;;  %s1445_s26 = sphi %s1499_s26, %s2121_s26   ;;  %s1441_s25 = sphi %s1497_s25, %s2120_s25   ;;  %s1437_s24 = sphi %s1495_s24, %s2119_s24  }
   0x4   : > { %p28_p0 = scmp.ge.s32.totalorder %s27_s29, 2  ;;  %p1334_p1 = scmp.ge.s32.totalorder %s1453_s28, 1 }
   0x5   : > { %p328_p2 = scmp.lt.s32.totalorder %s1453_s28, 5 }
   0x6   : > { %s2124_s29 = smov (%p28_p0, %s27_s29), 0  ;;  %s2126_s30 = smov (!%p28_p0, %s30_s30), %s1449_s27 }
   0x7   : > { %p329_p3 = pnand %p1334_p1, %p328_p2  ;;  %p32_p4 = scmp.ge.s32.totalorder %s2126_s30, 2 }
   0x8   : > { %s1528_s8 = sshll.u32 (!%p329_p3), %s1437_s24, 3  ;;  %p405_p5 = scmp.lt.s32.totalorder (!%p329_p3), %s1441_s25, 1 }
   0x9   : > { %s2128_s30 = smov (%p32_p4, %s2126_s30), 0  ;;  %332 = sbr.rel (%p329_p3) target bundleno = 170 (0xaa), region = 44 }
   0xa   : > { %p407_p6 = scmp.lt.s32.totalorder (!%p329_p3), %s1528_s8, 15  ;;  %s1532_s9 = sadd.s32 (!%p329_p3), 4294967295, %s1528_s8 }
   0xb   : > { %p417_p7 = scmp.gt.s32.totalorder (!%p329_p3), %s1532_s9, 0  ;;  %p562_p8 = scmp.eq.s32.totalorder (!%p329_p3), %s1437_s24, 0 }
   0xc   : > { %p1341_p9 = scmp.lt.s32.totalorder (!%p329_p3), %s1532_s9, 15  ;;  %s1374_s22 = sadd.s32 (!%p329_p3), 8, %s1528_s8 }
   0xd   : > { %p1612_p10 = scmp.lt.s32.totalorder (!%p329_p3), %s1374_s22, 15  ;;  %p568_p11 = scmp.eq.s32.totalorder (!%p329_p3), %s1437_s24, 1 }
   0xe   : > { %v718_v0 = vlaneseq  ;;  %s2130_s25 = smov (!%p405_p5, %s1441_s25), 1  ;;  %v716_v2 = vld [vmem:[%s2111_s3] sm:$0xff]  ;;  %vm594_vm0 = vcmask 1040384   ;;  %vm655_vm1 = vcmask 1046528   ;;  %vm1026_vm3 = vcmask 31744   ;;  %p462_p12 = scmp.lt.s32.totalorder %s1437_s24, 1 }
   0xf   : > { %s408_s10 = scalar_select %p407_p6, %s1528_s8, 15  ;;  %v1560_v10 = vld [vmem:[%s2112_s4] ss:$0 sm:$0xff]  ;;  %vm1134_vm5 = vcmask 25600  }
  0x10   : > { %v719_v1 = vshrl.u32 %v718_v0, 7  ;;  %s1538_s11 = sshll.u32 %s2130_s25, 5  ;;  %v1594_v27 = vld [vmem:[%s2113_s5] ss:$0 sm:$0xff]  ;;  %s2134_s22 = smov (!%p1612_p10, %s1374_s22), 15 }
  0x11   : > { %s1336_s14 = sshll.u32 %s408_s10, 1  ;;  %s2136_s22 = smov (!%p1612_p10, %s2134_s22), 15 }
  0x12   : > { %v720_v3 = vsub.s32 0, %v719_v1  ;;  %v740_v4 = vsub.s32 1, %v719_v1  ;;  %v776_v5 = vsub.s32 2, %v719_v1  ;;  %v812_v6 = vsub.s32 3, %v719_v1  ;;  %s1545_s15 = sadd.s32 %s1538_s11, %s1336_s14  ;;  %s1686_s12 = sshll.u32 %s2136_s22, 1 }
  0x13   : > { %v848_v7 = vsub.s32 4, %v719_v1  ;;  %v884_v8 = vsub.s32 5, %v719_v1  ;;  %s1338_s16 = sshll.u32 %s1545_s15, 3  ;;  %v920_v9 = vsub.s32 6, %v719_v1  ;;  %v956_v12 = vsub.s32 7, %v719_v1  ;;  %s442_s13 = sadd.s32 %s1686_s12, %s1538_s11 }
  0x14   : > { %s1555_s19 = scalar_lea.vmem %s2108_s0, %s1338_s16  ;;  %v1562_v11 = vrot.slane %v716_v2, %v720_v3  ;;  %v1571_v16 = vrot.slane %v716_v2, %v740_v4  ;;  %v1573_v17 = vrot.slane %v716_v2, %v776_v5  ;;  %v1575_v18 = vrot.slane %v716_v2, %v812_v6  ;;  %s1790_s14 = scalar_lea.vmem %s2114_s6, %s1338_s16 }
  0x15   : > { %s418_s23 = scalar_select %p417_p7, %s1532_s9, 0  ;;  %v468_v13 = vld [vmem:[%s1555_s19] sm:$0xff]  ;;  %v469_v14 = vld [vmem:[%s1555_s19 + $0x8] sm:$0xff]  ;;  %v470_v15 = vld [vmem:[%s1555_s19 + $0x10] sm:$0xff]  ;;  %v1577_v19 = vrot.slane %v716_v2, %v848_v7  ;;  %v1585_v24 = vrot.slane %v716_v2, %v884_v8  ;;  %v1597_v29 = vrot.slane %v716_v2, %v920_v9  ;;  %v1606_v38 = vrot.slane %v716_v2, %v956_v12 }
  0x16   : > { %v471_v20 = vld [vmem:[%s1555_s19 + $0x18] sm:$0xff]  ;;  %v496_v21 = vmul.f32 %v1560_v10, %v468_v13  ;;  %v497_v22 = vmul.f32 %v1560_v10, %v469_v14  ;;  %v498_v23 = vmul.f32 %v1560_v10, %v470_v15  ;;  %s563_s10 = scalar_select %p562_p8, 1, 0  ;;  %v472_v25 = vld [vmem:[%s1555_s19 + $0x20] sm:$0xff]  ;;  %v473_v26 = vld [vmem:[%s1555_s19 + $0x28] sm:$0xff] }
  0x17   : > { %s2132_s23 = smov (!%p1341_p9, %s418_s23), 15  ;;  %v499_v28 = vmul.f32 %v1560_v10, %v471_v20  ;;  %v500_v30 = vmul.f32 %v1560_v10, %v472_v25  ;;  %v501_v31 = vmul.f32 %v1560_v10, %v473_v26  ;;  %v474_v36 = vld [vmem:[%s1555_s19 + $0x30] sm:$0xff]  ;;  %v475_v45 = vld [vmem:[%s1555_s19 + $0x38] sm:$0xff]  ;;  %v1677_v8 = vld [vmem:[%s2111_s3 + $0x8] ss:$0 sm:$0xff]  ;;  %s1355_s15 = sshll.u32 %s442_s13, 3 }
  0x18   : > { %v518_v32 = vadd.f32 %v1594_v27, %v496_v21  ;;  %v519_v33 = vadd.f32 %v1594_v27, %v497_v22  ;;  %v520_v34 = vadd.f32 %v1594_v27, %v498_v23  ;;  %v564_v35 = vstv %s563_s10  ;;  %s1346_s9 = sshll.u32 %s2132_s23, 1  ;;  %s2138_s24 = smov (!%p462_p12, %s1437_s24), 1 }
  0x19   : > { %v521_v37 = vadd.f32 %v1594_v27, %v499_v28  ;;  %v522_v39 = vadd.f32 %v1594_v27, %v500_v30  ;;  %v523_v40 = vadd.f32 %v1594_v27, %v501_v31  ;;  %s425_s17 = sadd.s32 %s1346_s9, %s1538_s11  ;;  %vm1623_vm2 = vcmp.eq.s32.totalorder %v564_v35, 1 }
  0x1a   : > { %v1617_v41 = vmax.f32 %v518_v32, 0.0  ;;  %v1619_v42 = vmax.f32 %v519_v33, 0.0  ;;  %v1621_v43 = vmax.f32 %v520_v34, 0.0  ;;  %s1348_s18 = sshll.u32 %s425_s17, 3  ;;  %v1635_v49 = vmul.f32 %v1560_v10, %v474_v36  ;;  %s444_s17 = scalar_lea.vmem %s2110_s2, %s1355_s15 }
  0x1b   : > { %v1628_v46 = vmax.f32 %v521_v37, 0.0  ;;  %v1630_v47 = vmax.f32 %v522_v39, 0.0  ;;  %v1632_v48 = vmax.f32 %v523_v40, 0.0  ;;  %s427_s23 = scalar_lea.vmem %s2109_s1, %s1348_s18  ;;  %v1649_v59 = vmul.f32 %v1560_v10, %v475_v45  ;;  %s1360_s18 = sshll.u32 %s2130_s25, 1 }
  0x1c   : > { %v598_v50 = vrot.slane %v1617_v41, 7  ;;  %v601_v51 = vrot.slane %v1621_v43, 7  ;;  %v659_v52 = vrot.slane %v1617_v41, 1  ;;  %v660_v53 = vrot.slane %v1619_v42, 1  ;;  %v484_v54 = vld [vmem:[%s427_s23] sm:$0xff]  ;;  %v485_v55 = vld [vmem:[%s427_s23 + $0x8] sm:$0xff]  ;;  %s465_s20 = sadd.s32 %s1360_s18, %s2138_s24 }
  0x1d   : > { %v662_v56 = vrot.slane %v1621_v43, 1  ;;  %v663_v57 = vrot.slane %v1628_v46, 1  ;;  %v746_v58 = vmul.f32 %v1571_v16, %v1621_v43  ;;  %v550_v60 = vmul.f32 %v1560_v10, %v484_v54  ;;  %s1361_s21 = sshll.u32 %s465_s20, 1 }
  0x1e   : > { %v551_v61 = vmul.f32 %v1560_v10, %v485_v55  ;;  %v646_v62 = vsel %vm594_vm0, 0.0, %v598_v50  ;;  %v647_v63 = vsel %vm594_vm0, 0.0, %v601_v51  ;;  %v661_v0 = vsel %vm655_vm1, %v659_v52, %v660_v53  ;;  %s467_s10 = scalar_lea.vmem %s2115_s7, %s1361_s21 }
  0x1f   : > { %v664_v1 = vsel %vm655_vm1, %v662_v56, %v663_v57  ;;  %v726_v2 = vmul.f32 %v1562_v11, %v647_v63  ;;  %v1664_v3 = vmul.f32 %v1577_v19, %v1617_v41  ;;  %v552_v4 = vadd.f32 %v1594_v27, %v550_v60 }
  0x20   : > { %v553_v5 = vadd.f32 %v1594_v27, %v551_v61  ;;  %v1671_v6 = vmul.f32 %v1562_v11, %v646_v62  ;;  %v782_v7 = vmul.f32 %v1573_v17, %v664_v1  ;;  %v1680_v12 = vmul.f32 %v1573_v17, %v661_v0 }
  0x21   : > { %v762_v9 = vadd.f32 %v746_v58, %v726_v2  ;;  %v814_v13 = vmul.f32 %v1575_v18, %v646_v62  ;;  %v1684_v14 = vmul.f32 %v1575_v18, %v647_v63  ;;  %v554_v15 = vmax.f32 %v552_v4, 0.0 }
  0x22   : > { %v555_v20 = vmax.f32 %v553_v5, 0.0  ;;  %v1689_v21 = vmul.f32 %v1585_v24, %v661_v0  ;;  %v1692_v22 = vmul.f32 %v1585_v24, %v664_v1  ;;  %v1699_v25 = vmul.f32 %v1597_v29, %v647_v63 }
  0x23   : > { %v1696_v23 = vadd.f32 %v782_v7, %v762_v9  ;;  %v1703_v26 = vmul.f32 %v1606_v38, %v1621_v43  ;;  %v599_v28 = vrot.slane %v1619_v42, 7  ;;  %v566_v30 = vsel %vm1623_vm2, 0.0, %v554_v15 }
  0x24   : > { %v567_v31 = vsel %vm1623_vm2, 0.0, %v555_v20  ;;  %v1711_v32 = vmul.f32 %v1677_v8, %v664_v1  ;;  %v602_v33 = vrot.slane %v1628_v46, 7  ;;  %v595_v34 = vrot.slane %v566_v30, 7 }
  0x25   : > { %v656_v35 = vrot.slane %v566_v30, 1  ;;  %v657_v36 = vrot.slane %v567_v31, 1  ;;  %v707_v37 = vsel %vm655_vm1, %v660_v53, 0.0  ;;  %v742_v39 = vmul.f32 %v1571_v16, %v566_v30 }
  0x26   : > { %v596_v40 = vrot.slane %v567_v31, 7  ;;  %v600_v45 = vsel %vm594_vm0, %v598_v50, %v599_v28  ;;  %v603_v52 = vsel %vm594_vm0, %v601_v51, %v602_v33  ;;  %v645_v44 = vsel %vm594_vm0, 0.0, %v595_v34 }
  0x27   : > { %v658_v54 = vsel %vm655_vm1, %v656_v35, %v657_v36  ;;  %v706_v55 = vsel %vm655_vm1, %v657_v36, 0.0  ;;  %v708_v56 = vsel %vm655_vm1, %v663_v57, 0.0  ;;  %v722_v58 = vmul.f32 %v1562_v11, %v645_v44 }
  0x28   : > { %v778_v60 = vmul.f32 %v1573_v17, %v658_v54  ;;  %v597_v53 = vsel %vm594_vm0, %v595_v34, %v596_v40  ;;  %v727_v61 = vmul.f32 %v1562_v11, %v603_v52  ;;  %v743_v51 = vmul.f32 %v1571_v16, %v567_v31 }
  0x29   : > { %v723_v50 = vmul.f32 %v1562_v11, %v597_v53  ;;  %v747_v62 = vmul.f32 %v1571_v16, %v1628_v46  ;;  %v779_v63 = vmul.f32 %v1573_v17, %v706_v55  ;;  %v758_v0 = vadd.f32 %v742_v39, %v722_v58 }
  0x2a   : > { %v725_v57 = vmul.f32 %v1562_v11, %v600_v45  ;;  %v781_v1 = vmul.f32 %v1573_v17, %v707_v37  ;;  %v783_v2 = vmul.f32 %v1573_v17, %v708_v56  ;;  %v815_v7 = vmul.f32 %v1575_v18, %v600_v45 }
  0x2b   : > { %v759_v4 = vadd.f32 %v743_v51, %v723_v50  ;;  %v763_v5 = vadd.f32 %v747_v62, %v727_v61  ;;  %v817_v9 = vmul.f32 %v1575_v18, %v603_v52  ;;  %v794_v15 = vadd.f32 %v778_v60, %v758_v0 }
  0x2c   : > { %v851_v20 = vmul.f32 %v1577_v19, %v1619_v42  ;;  %v887_v28 = vmul.f32 %v1585_v24, %v707_v37  ;;  %v1740_v30 = vmul.f32 %v1585_v24, %v708_v56  ;;  %v923_v34 = vmul.f32 %v1597_v29, %v603_v52 }
  0x2d   : > { %v795_v31 = vadd.f32 %v779_v63, %v759_v4  ;;  %v1742_v33 = vadd.f32 %v783_v2, %v763_v5  ;;  %v959_v35 = vmul.f32 %v1606_v38, %v1628_v46  ;;  %v830_v36 = vadd.f32 %v814_v13, %v794_v15 }
  0x2e   : > { %v604_v39 = vrot.slane %v1630_v47, 7  ;;  %v665_v40 = vrot.slane %v1630_v47, 1  ;;  %v666_v45 = vrot.slane %v1632_v48, 1  ;;  %v995_v44 = vmul.f32 %v1677_v8, %v708_v56 }
  0x2f   : > { %v831_v37 = vadd.f32 %v815_v7, %v795_v31  ;;  %v744_v54 = vmul.f32 %v1571_v16, %v1617_v41  ;;  %v748_v52 = vmul.f32 %v1571_v16, %v1630_v47  ;;  %v866_v55 = vadd.f32 %v1664_v3, %v830_v36 }
  0x30   : > { %v648_v13 = vsel %vm594_vm0, 0.0, %v604_v39  ;;  %v667_v58 = vsel %vm655_vm1, %v665_v40, %v666_v45  ;;  %v852_v60 = vmul.f32 %v1577_v19, %v1621_v43  ;;  %v960_v41 = vmul.f32 %v1606_v38, %v1630_v47 }
  0x31   : > { %v867_v53 = vadd.f32 %v851_v20, %v831_v37  ;;  %v728_v61 = vmul.f32 %v1562_v11, %v648_v13  ;;  %v760_v56 = vadd.f32 %v744_v54, %v1671_v6  ;;  %v902_v50 = vadd.f32 %v1689_v21, %v866_v55 }
  0x32   : > { %v784_v51 = vmul.f32 %v1573_v17, %v667_v58  ;;  %v818_v3 = vmul.f32 %v1575_v18, %v648_v13  ;;  %v1768_v62 = vmul.f32 %v1585_v24, %v667_v58  ;;  %v924_v2 = vmul.f32 %v1597_v29, %v648_v13 }
  0x33   : > { %v903_v63 = vadd.f32 %v887_v28, %v867_v53  ;;  %v764_v43 = vadd.f32 %v748_v52, %v728_v61  ;;  %v796_v0 = vadd.f32 %v1680_v12, %v760_v56  ;;  %v938_v6 = vadd.f32 %v1699_v25, %v902_v50 }
  0x34   : > { %v605_v4 = vrot.slane %v1632_v48, 7  ;;  %v709_v21 = vsel %vm655_vm1, %v666_v45, 0.0  ;;  %v745_v5 = vmul.f32 %v1571_v16, %v1619_v42  ;;  %v996_v20 = vmul.f32 %v1677_v8, %v667_v58 }
  0x35   : > { %v939_v7 = vadd.f32 %v923_v34, %v903_v63  ;;  %v832_v15 = vadd.f32 %v1684_v14, %v796_v0  ;;  %v749_v28 = vmul.f32 %v1571_v16, %v1632_v48  ;;  %v974_v12 = vadd.f32 %v1703_v26, %v938_v6 }
  0x36   : > { %v1782_v31 = vadd.f32 %v784_v51, %v764_v43  ;;  %v606_v25 = vsel %vm594_vm0, %v604_v39, %v605_v4  ;;  %v761_v36 = vadd.f32 %v745_v5, %v725_v57  ;;  %v785_v40 = vmul.f32 %v1573_v17, %v709_v21 }
  0x37   : > { %v975_v42 = vadd.f32 %v959_v35, %v939_v7  ;;  %v868_v14 = vadd.f32 %v852_v60, %v832_v15  ;;  %v729_v34 = vmul.f32 %v1562_v11, %v606_v25  ;;  %v1010_v26 = vadd.f32 %v1711_v32, %v974_v12  ;;  %v476_v12 = vld [vmem:[%s1555_s19 + $0x40] sm:$0xff] }
  0x38   : > { %v797_v45 = vadd.f32 %v781_v1, %v761_v36  ;;  %v819_v39 = vmul.f32 %v1575_v18, %v606_v25  ;;  %v853_v57 = vmul.f32 %v1577_v19, %v1628_v46  ;;  %v1800_v35 = vmul.f32 %v1585_v24, %v709_v21 }
  0x39   : > { %v1011_v37 = vadd.f32 %v995_v44, %v975_v42  ;;  %v904_v54 = vadd.f32 %v1692_v22, %v868_v14  ;;  %v765_v52 = vadd.f32 %v749_v28, %v729_v34  ;;  %1027 = vst.msk [vmem:[%s1790_s14] sm:$0xff] %vm1026_vm3, %v1010_v26  ;;  %v1043_v55 = vsel %vm1026_vm3, %v1010_v26, 0.0 }
  0x3a   : > { %v1080_v13 = vmul.f32 %v1010_v26, %v1010_v26  ;;  %v833_v58 = vadd.f32 %v817_v9, %v797_v45  ;;  %v925_v32 = vmul.f32 %v1597_v29, %v606_v25  ;;  %v961_v22 = vmul.f32 %v1606_v38, %v1632_v48 }
  0x3b   : > { %1028 = vst.msk [vmem:[%s1790_s14 + $0x8] sm:$0xff] %vm1026_vm3, %v1011_v37  ;;  %v1044_v1 = vsel %vm1026_vm3, %v1011_v37, 0.0  ;;  %v1081_v46 = vmul.f32 %v1011_v37, %v1011_v37  ;;  %v940_v44 = vadd.f32 %v924_v2, %v904_v54  ;;  %v1812_v61 = vadd.f32 %v785_v40, %v765_v52 }
  0x3c   : > { %v1096_v60 = vsel %vm1026_vm3, %v1080_v13, 0.0  ;;  %v1045_v53 = vadd.f32 %v1044_v1, %v1043_v55  ;;  %v869_v56 = vadd.f32 %v853_v57, %v833_v58  ;;  %v524_v51 = vadd.f32 %v1594_v27, %v1635_v49 }
  0x3d   : > { %v1097_v50 = vsel %vm1026_vm3, %v1081_v46, 0.0  ;;  %v976_v9 = vadd.f32 %v960_v41, %v940_v44  ;;  %v525_v63 = vadd.f32 %v1594_v27, %v1649_v59  ;;  %v834_v2 = vadd.f32 %v818_v3, %v1696_v23 }
  0x3e   : > { %v1098_v43 = vadd.f32 %v1097_v50, %v1096_v60  ;;  %v905_v0 = vadd.f32 %v1740_v30, %v869_v56  ;;  %v854_v6 = vmul.f32 %v1577_v19, %v1630_v47  ;;  %v997_v5 = vmul.f32 %v1677_v8, %v709_v21 }
  0x3f   : > { %v1012_v4 = vadd.f32 %v996_v20, %v976_v9  ;;  %v540_v7 = vmax.f32 %v524_v51, 0.0  ;;  %v1824_v41 = vmax.f32 %v525_v63, 0.0  ;;  %v835_v49 = vadd.f32 %v819_v39, %v1742_v33  ;;  %v477_v63 = vld [vmem:[%s1555_s19 + $0x48] sm:$0xff] }
  0x40   : > { %v941_v15 = vadd.f32 %v925_v32, %v905_v0  ;;  %v870_v28 = vadd.f32 %v854_v6, %v834_v2  ;;  %v855_v59 = vmul.f32 %v1577_v19, %v1632_v48  ;;  %v504_v14 = vmul.f32 %v1560_v10, %v476_v12 }
  0x41   : > { %1029 = vst.msk [vmem:[%s1790_s14 + $0x10] sm:$0xff] %vm1026_vm3, %v1012_v4  ;;  %v1046_v23 = vsel %vm1026_vm3, %v1012_v4, 0.0  ;;  %v1082_v30 = vmul.f32 %v1012_v4, %v1012_v4  ;;  %v607_v47 = vrot.slane %v540_v7, 7  ;;  %v668_v3 = vrot.slane %v540_v7, 1 }
  0x42   : > { %v1047_v20 = vadd.f32 %v1046_v23, %v1045_v53  ;;  %v977_v21 = vadd.f32 %v961_v22, %v941_v15  ;;  %v669_v25 = vrot.slane %v1824_v41, 1  ;;  %v750_v36 = vmul.f32 %v1571_v16, %v540_v7 }
  0x43   : > { %v1099_v33 = vsel %vm1026_vm3, %v1082_v30, 0.0  ;;  %v649_v42 = vsel %vm594_vm0, 0.0, %v607_v47  ;;  %v906_v48 = vadd.f32 %v1768_v62, %v870_v28  ;;  %v962_v45 = vmul.f32 %v1606_v38, %v540_v7 }
  0x44   : > { %v1013_v34 = vadd.f32 %v997_v5, %v977_v21  ;;  %v670_v40 = vsel %vm655_vm1, %v668_v3, %v669_v25  ;;  %v730_v26 = vmul.f32 %v1562_v11, %v649_v42  ;;  %v1100_v39 = vadd.f32 %v1099_v33, %v1098_v43 }
  0x45   : > { %v786_v57 = vmul.f32 %v1573_v17, %v670_v40  ;;  %v820_v37 = vmul.f32 %v1575_v18, %v649_v42  ;;  %v926_v54 = vmul.f32 %v1597_v29, %v649_v42  ;;  %v892_v13 = vmul.f32 %v1585_v24, %v670_v40 }
  0x46   : > { %1030 = vst.msk [vmem:[%s1790_s14 + $0x18] sm:$0xff] %vm1026_vm3, %v1013_v34  ;;  %v1048_v62 = vsel %vm1026_vm3, %v1013_v34, 0.0  ;;  %v1083_v52 = vmul.f32 %v1013_v34, %v1013_v34  ;;  %v766_v55 = vadd.f32 %v750_v36, %v730_v26  ;;  %v998_v32 = vmul.f32 %v1677_v8, %v670_v40 }
  0x47   : > { %v942_v58 = vadd.f32 %v926_v54, %v906_v48  ;;  %v608_v1 = vrot.slane %v1824_v41, 7  ;;  %v710_v46 = vsel %vm655_vm1, %v669_v25, 0.0  ;;  %v1049_v44 = vadd.f32 %v1048_v62, %v1047_v20 }
  0x48   : > { %v1101_v22 = vsel %vm1026_vm3, %v1083_v52, 0.0  ;;  %v1853_v60 = vadd.f32 %v786_v57, %v766_v55  ;;  %v751_v53 = vmul.f32 %v1571_v16, %v1824_v41  ;;  %v787_v9 = vmul.f32 %v1573_v17, %v710_v46 }
  0x49   : > { %v978_v56 = vadd.f32 %v962_v45, %v942_v58  ;;  %v609_v50 = vsel %vm594_vm0, %v607_v47, %v608_v1  ;;  %v871_v51 = vadd.f32 %v855_v59, %v835_v49  ;;  %v1102_v43 = vadd.f32 %v1101_v22, %v1100_v39 }
  0x4a   : > { %v731_v0 = vmul.f32 %v1562_v11, %v609_v50  ;;  %v821_v2 = vmul.f32 %v1575_v18, %v609_v50  ;;  %v927_v6 = vmul.f32 %v1597_v29, %v609_v50  ;;  %v963_v15 = vmul.f32 %v1606_v38, %v1824_v41 }
  0x4b   : > { %v1014_v4 = vadd.f32 %v998_v32, %v978_v56  ;;  %v907_v5 = vadd.f32 %v1800_v35, %v871_v51  ;;  %v999_v28 = vmul.f32 %v1677_v8, %v710_v46  ;;  %v505_v23 = vmul.f32 %v1560_v10, %v477_v63 }
  0x4c   : > { %v767_v12 = vadd.f32 %v751_v53, %v731_v0  ;;  %v526_v49 = vadd.f32 %v1594_v27, %v504_v14  ;;  %v836_v59 = vadd.f32 %v820_v37, %v1782_v31  ;;  %v856_v35 = vmul.f32 %v1577_v19, %v540_v7  ;;  %v478_v0 = vld [vmem:[%s1555_s19 + $0x50] sm:$0xff] }
  0x4d   : > { %1031 = vst.msk [vmem:[%s1790_s14 + $0x20] sm:$0xff] %vm1026_vm3, %v1014_v4  ;;  %v1050_v30 = vsel %vm1026_vm3, %v1014_v4, 0.0  ;;  %v1084_v47 = vmul.f32 %v1014_v4, %v1014_v4  ;;  %v943_v3 = vadd.f32 %v927_v6, %v907_v5  ;;  %v893_v21 = vmul.f32 %v1585_v24, %v710_v46 }
  0x4e   : > { %v1051_v20 = vadd.f32 %v1050_v30, %v1049_v44  ;;  %v527_v25 = vadd.f32 %v1594_v27, %v505_v23  ;;  %v542_v36 = vmax.f32 %v526_v49, 0.0  ;;  %v1877_v42 = vadd.f32 %v787_v9, %v767_v12 }
  0x4f   : > { %v1103_v33 = vsel %vm1026_vm3, %v1084_v47, 0.0  ;;  %v979_v31 = vadd.f32 %v963_v15, %v943_v3  ;;  %v872_v48 = vadd.f32 %v856_v35, %v836_v59  ;;  %v837_v26 = vadd.f32 %v821_v2, %v1812_v61  ;;  %v479_v15 = vld [vmem:[%s1555_s19 + $0x58] sm:$0xff] }
  0x50   : > { %v1879_v14 = vmax.f32 %v527_v25, 0.0  ;;  %v610_v34 = vrot.slane %v542_v36, 7  ;;  %v671_v40 = vrot.slane %v542_v36, 1  ;;  %v1104_v7 = vadd.f32 %v1103_v33, %v1102_v43 }
  0x51   : > { %v1015_v45 = vadd.f32 %v999_v28, %v979_v31  ;;  %v752_v39 = vmul.f32 %v1571_v16, %v542_v36  ;;  %v908_v57 = vadd.f32 %v892_v13, %v872_v48  ;;  %v964_v62 = vmul.f32 %v1606_v38, %v542_v36 }
  0x52   : > { %v650_v37 = vsel %vm594_vm0, 0.0, %v610_v34  ;;  %v672_v54 = vrot.slane %v1879_v14, 1  ;;  %v611_v52 = vrot.slane %v1879_v14, 7  ;;  %v753_v32 = vmul.f32 %v1571_v16, %v1879_v14 }
  0x53   : > { %1032 = vst.msk [vmem:[%s1790_s14 + $0x28] sm:$0xff] %vm1026_vm3, %v1015_v45  ;;  %v1052_v55 = vsel %vm1026_vm3, %v1015_v45, 0.0  ;;  %v1085_v58 = vmul.f32 %v1015_v45, %v1015_v45  ;;  %v732_v61 = vmul.f32 %v1562_v11, %v650_v37  ;;  %v822_v1 = vmul.f32 %v1575_v18, %v650_v37 }
  0x54   : > { %v673_v13 = vsel %vm655_vm1, %v671_v40, %v672_v54  ;;  %v928_v46 = vmul.f32 %v1597_v29, %v650_v37  ;;  %v612_v44 = vsel %vm594_vm0, %v610_v34, %v611_v52  ;;  %v1053_v22 = vadd.f32 %v1052_v55, %v1051_v20 }
  0x55   : > { %v1105_v53 = vsel %vm1026_vm3, %v1085_v58, 0.0  ;;  %v768_v56 = vadd.f32 %v752_v39, %v732_v61  ;;  %v788_v50 = vmul.f32 %v1573_v17, %v673_v13  ;;  %v894_v9 = vmul.f32 %v1585_v24, %v673_v13  ;;  %v480_v39 = vld [vmem:[%s1555_s19 + $0x60] sm:$0xff] }
  0x56   : > { %v944_v51 = vadd.f32 %v928_v46, %v908_v57  ;;  %v1000_v63 = vmul.f32 %v1677_v8, %v673_v13  ;;  %v711_v43 = vsel %vm655_vm1, %v672_v54, 0.0  ;;  %v1106_v2 = vadd.f32 %v1105_v53, %v1104_v7 }
  0x57   : > { %v1903_v6 = vadd.f32 %v788_v50, %v768_v56  ;;  %v733_v4 = vmul.f32 %v1562_v11, %v612_v44  ;;  %v789_v5 = vmul.f32 %v1573_v17, %v711_v43  ;;  %v823_v12 = vmul.f32 %v1575_v18, %v612_v44 }
  0x58   : > { %v980_v28 = vadd.f32 %v964_v62, %v944_v51  ;;  %v857_v23 = vmul.f32 %v1577_v19, %v1824_v41  ;;  %v1912_v49 = vmul.f32 %v1585_v24, %v711_v43  ;;  %v929_v30 = vmul.f32 %v1597_v29, %v612_v44 }
  0x59   : > { %v769_v59 = vadd.f32 %v753_v32, %v733_v4  ;;  %v965_v47 = vmul.f32 %v1606_v38, %v1879_v14  ;;  %v506_v3 = vmul.f32 %v1560_v10, %v478_v0  ;;  %v507_v25 = vmul.f32 %v1560_v10, %v479_v15 }
  0x5a   : > { %v1016_v35 = vadd.f32 %v1000_v63, %v980_v28  ;;  %v873_v20 = vadd.f32 %v857_v23, %v837_v26  ;;  %v838_v33 = vadd.f32 %v822_v1, %v1853_v60  ;;  %v1001_v41 = vmul.f32 %v1677_v8, %v711_v43 }
  0x5b   : > { %v1920_v31 = vadd.f32 %v789_v5, %v769_v59  ;;  %v528_v48 = vadd.f32 %v1594_v27, %v506_v3  ;;  %v858_v34 = vmul.f32 %v1577_v19, %v542_v36  ;;  %v529_v26 = vadd.f32 %v1594_v27, %v507_v25  ;;  %v481_v25 = vld [vmem:[%s1555_s19 + $0x68] sm:$0xff] }
  0x5c   : > { %1033 = vst.msk [vmem:[%s1790_s14 + $0x30] sm:$0xff] %vm1026_vm3, %v1016_v35  ;;  %v1054_v40 = vsel %vm1026_vm3, %v1016_v35, 0.0  ;;  %v1086_v7 = vmul.f32 %v1016_v35, %v1016_v35  ;;  %v909_v45 = vadd.f32 %v893_v21, %v873_v20  ;;  %v839_v54 = vadd.f32 %v823_v12, %v1877_v42 }
  0x5d   : > { %v1055_v57 = vadd.f32 %v1054_v40, %v1053_v22  ;;  %v544_v37 = vmax.f32 %v528_v48, 0.0  ;;  %v874_v60 = vadd.f32 %v858_v34, %v838_v33  ;;  %v1932_v55 = vmax.f32 %v529_v26, 0.0 }
  0x5e   : > { %v1107_v62 = vsel %vm1026_vm3, %v1086_v7, 0.0  ;;  %v945_v52 = vadd.f32 %v929_v30, %v909_v45  ;;  %v859_v36 = vmul.f32 %v1577_v19, %v1879_v14  ;;  %v508_v21 = vmul.f32 %v1560_v10, %v480_v39 }
  0x5f   : > { %v1108_v58 = vadd.f32 %v1107_v62, %v1106_v2  ;;  %v613_v61 = vrot.slane %v544_v37, 7  ;;  %v674_v32 = vrot.slane %v544_v37, 1  ;;  %v675_v1 = vrot.slane %v1932_v55, 1 }
  0x60   : > { %v981_v13 = vadd.f32 %v965_v47, %v945_v52  ;;  %v754_v46 = vmul.f32 %v1571_v16, %v544_v37  ;;  %v910_v42 = vadd.f32 %v894_v9, %v874_v60  ;;  %v966_v22 = vmul.f32 %v1606_v38, %v544_v37 }
  0x61   : > { %v651_v44 = vsel %vm594_vm0, 0.0, %v613_v61  ;;  %v614_v53 = vrot.slane %v1932_v55, 7  ;;  %v755_v14 = vmul.f32 %v1571_v16, %v1932_v55  ;;  %v676_v50 = vsel %vm655_vm1, %v674_v32, %v675_v1 }
  0x62   : > { %v1017_v56 = vadd.f32 %v1001_v41, %v981_v13  ;;  %v734_v51 = vmul.f32 %v1562_v11, %v651_v44  ;;  %v875_v63 = vadd.f32 %v859_v36, %v839_v54  ;;  %v790_v43 = vmul.f32 %v1573_v17, %v676_v50 }
  0x63   : > { %v824_v0 = vmul.f32 %v1575_v18, %v651_v44  ;;  %v896_v9 = vmul.f32 %v1585_v24, %v676_v50  ;;  %v930_v2 = vmul.f32 %v1597_v29, %v651_v44  ;;  %v615_v28 = vsel %vm594_vm0, %v613_v61, %v614_v53 }
  0x64   : > { %1034 = vst.msk [vmem:[%s1790_s14 + $0x38] sm:$0xff] %vm1026_vm3, %v1017_v56  ;;  %v1056_v4 = vsel %vm1026_vm3, %v1017_v56, 0.0  ;;  %v1087_v5 = vmul.f32 %v1017_v56, %v1017_v56  ;;  %v770_v15 = vadd.f32 %v754_v46, %v734_v51  ;;  %v1002_v23 = vmul.f32 %v1677_v8, %v676_v50 }
  0x65   : > { %v946_v12 = vadd.f32 %v930_v2, %v910_v42  ;;  %v712_v59 = vsel %vm655_vm1, %v675_v1, 0.0  ;;  %v735_v30 = vmul.f32 %v1562_v11, %v615_v28  ;;  %v1057_v47 = vadd.f32 %v1056_v4, %v1055_v57 }
  0x66   : > { %v1109_v3 = vsel %vm1026_vm3, %v1087_v5, 0.0  ;;  %v1958_v35 = vadd.f32 %v790_v43, %v770_v15  ;;  %v791_v20 = vmul.f32 %v1573_v17, %v712_v59  ;;  %v825_v34 = vmul.f32 %v1575_v18, %v615_v28 }
  0x67   : > { %v1110_v33 = vadd.f32 %v1109_v3, %v1108_v58  ;;  %v982_v41 = vadd.f32 %v966_v22, %v946_v12  ;;  %v771_v48 = vadd.f32 %v755_v14, %v735_v30  ;;  %v1964_v40 = vmul.f32 %v1585_v24, %v712_v59 }
  0x68   : > { %v911_v7 = vadd.f32 %v1912_v49, %v875_v63  ;;  %v931_v45 = vmul.f32 %v1597_v29, %v615_v28  ;;  %v967_v26 = vmul.f32 %v1606_v38, %v1932_v55  ;;  %v1003_v57 = vmul.f32 %v1677_v8, %v712_v59 }
  0x69   : > { %v1018_v39 = vadd.f32 %v1002_v23, %v982_v41  ;;  %v509_v60 = vmul.f32 %v1560_v10, %v481_v25  ;;  %v530_v54 = vadd.f32 %v1594_v27, %v508_v21  ;;  %v1973_v62 = vadd.f32 %v791_v20, %v771_v48 }
  0x6a   : > { %v947_v52 = vadd.f32 %v931_v45, %v911_v7  ;;  %v840_v36 = vadd.f32 %v824_v0, %v1903_v6  ;;  %v860_v58 = vmul.f32 %v1577_v19, %v544_v37  ;;  %v841_v21 = vadd.f32 %v825_v34, %v1920_v31  ;;  %v482_v7 = vld [vmem:[%s1555_s19 + $0x70] sm:$0xff]  ;;  %v483_v45 = vld [vmem:[%s1555_s19 + $0x78] sm:$0xff]  ;;  %s569_s19 = scalar_select %p568_p11, 1, 0 }
  0x6b   : > { %1035 = vst.msk [vmem:[%s1790_s14 + $0x40] sm:$0xff] %vm1026_vm3, %v1018_v39  ;;  %v1058_v49 = vsel %vm1026_vm3, %v1018_v39, 0.0  ;;  %v1088_v61 = vmul.f32 %v1018_v39, %v1018_v39  ;;  %v531_v32 = vadd.f32 %v1594_v27, %v509_v60  ;;  %v546_v13 = vmax.f32 %v530_v54, 0.0 }
  0x6c   : > { %v1059_v1 = vadd.f32 %v1058_v49, %v1057_v47  ;;  %v983_v46 = vadd.f32 %v967_v26, %v947_v52  ;;  %v876_v42 = vadd.f32 %v860_v58, %v840_v36  ;;  %v861_v50 = vmul.f32 %v1577_v19, %v1932_v55 }
  0x6d   : > { %v1111_v44 = vsel %vm1026_vm3, %v1088_v61, 0.0  ;;  %v547_v22 = vmax.f32 %v531_v32, 0.0  ;;  %v616_v6 = vrot.slane %v546_v13, 7  ;;  %v677_v53 = vrot.slane %v546_v13, 1 }
  0x6e   : > { %v1112_v37 = vadd.f32 %v1111_v44, %v1110_v33  ;;  %v1019_v14 = vadd.f32 %v1003_v57, %v983_v46  ;;  %v756_v56 = vmul.f32 %v1571_v16, %v546_v13  ;;  %v912_v43 = vadd.f32 %v896_v9, %v876_v42 }
  0x6f   : > { %v652_v51 = vsel %vm594_vm0, 0.0, %v616_v6  ;;  %v678_v63 = vrot.slane %v547_v22, 1  ;;  %v617_v0 = vrot.slane %v547_v22, 7  ;;  %v968_v5 = vmul.f32 %v1606_v38, %v546_v13 }
  0x70   : > { %1036 = vst.msk [vmem:[%s1790_s14 + $0x48] sm:$0xff] %vm1026_vm3, %v1019_v14  ;;  %v1060_v31 = vsel %vm1026_vm3, %v1019_v14, 0.0  ;;  %v1089_v2 = vmul.f32 %v1019_v14, %v1019_v14  ;;  %v736_v4 = vmul.f32 %v1562_v11, %v652_v51  ;;  %v826_v55 = vmul.f32 %v1575_v18, %v652_v51 }
  0x71   : > { %v679_v15 = vsel %vm655_vm1, %v677_v53, %v678_v63  ;;  %v932_v28 = vmul.f32 %v1597_v29, %v652_v51  ;;  %v618_v9 = vsel %vm594_vm0, %v616_v6, %v617_v0  ;;  %v1061_v12 = vadd.f32 %v1060_v31, %v1059_v1  ;;  %v486_v6 = vld [vmem:[%s444_s17] sm:$0xff]  ;;  %v487_v0 = vld [vmem:[%s444_s17 + $0x8] sm:$0xff] }
  0x72   : > { %v1113_v23 = vsel %vm1026_vm3, %v1089_v2, 0.0  ;;  %v772_v59 = vadd.f32 %v756_v56, %v736_v4  ;;  %v792_v30 = vmul.f32 %v1573_v17, %v679_v15  ;;  %v898_v47 = vmul.f32 %v1585_v24, %v679_v15 }
  0x73   : > { %v948_v3 = vadd.f32 %v932_v28, %v912_v43  ;;  %v1004_v20 = vmul.f32 %v1677_v8, %v679_v15  ;;  %v713_v25 = vsel %vm655_vm1, %v678_v63, 0.0  ;;  %v1114_v33 = vadd.f32 %v1113_v23, %v1112_v37 }
  0x74   : > { %v2004_v41 = vadd.f32 %v792_v30, %v772_v59  ;;  %v737_v48 = vmul.f32 %v1562_v11, %v618_v9  ;;  %v757_v34 = vmul.f32 %v1571_v16, %v547_v22  ;;  %v793_v39 = vmul.f32 %v1573_v17, %v713_v25 }
  0x75   : > { %v984_v26 = vadd.f32 %v968_v5, %v948_v3  ;;  %v827_v57 = vmul.f32 %v1575_v18, %v618_v9  ;;  %v877_v60 = vadd.f32 %v861_v50, %v841_v21  ;;  %v899_v52 = vmul.f32 %v1585_v24, %v713_v25 }
  0x76   : > { %v773_v54 = vadd.f32 %v757_v34, %v737_v48  ;;  %v933_v36 = vmul.f32 %v1597_v29, %v618_v9  ;;  %v969_v58 = vmul.f32 %v1606_v38, %v547_v22  ;;  %v510_v17 = vmul.f32 %v1560_v10, %v482_v7 }
  0x77   : > { %v1020_v11 = vadd.f32 %v1004_v20, %v984_v26  ;;  %v913_v16 = vadd.f32 %v1964_v40, %v877_v60  ;;  %v511_v49 = vmul.f32 %v1560_v10, %v483_v45  ;;  %v1005_v61 = vmul.f32 %v1677_v8, %v713_v25 }
  0x78   : > { %v842_v32 = vadd.f32 %v826_v55, %v1958_v35  ;;  %v862_v1 = vmul.f32 %v1577_v19, %v546_v13  ;;  %v843_v46 = vadd.f32 %v827_v57, %v1973_v62  ;;  %v532_v40 = vadd.f32 %v1594_v27, %v510_v17 }
  0x79   : > { %1037 = vst.msk [vmem:[%s1790_s14 + $0x50] sm:$0xff] %vm1026_vm3, %v1020_v11  ;;  %v1062_v42 = vsel %vm1026_vm3, %v1020_v11, 0.0  ;;  %v1090_v21 = vmul.f32 %v1020_v11, %v1020_v11  ;;  %v949_v44 = vadd.f32 %v933_v36, %v913_v16  ;;  %v533_v37 = vadd.f32 %v1594_v27, %v511_v49 }
  0x7a   : > { %v1063_v53 = vadd.f32 %v1062_v42, %v1061_v12  ;;  %v878_v14 = vadd.f32 %v862_v1, %v842_v32  ;;  %v863_v35 = vmul.f32 %v1577_v19, %v547_v22  ;;  %v809_v56 = vadd.f32 %v793_v39, %v773_v54 }
  0x7b   : > { %v1115_v13 = vsel %vm1026_vm3, %v1090_v21, 0.0  ;;  %v985_v62 = vadd.f32 %v969_v58, %v949_v44  ;;  %v548_v50 = vmax.f32 %v532_v40, 0.0  ;;  %v549_v63 = vmax.f32 %v533_v37, 0.0 }
  0x7c   : > { %v1116_v51 = vadd.f32 %v1115_v13, %v1114_v33  ;;  %v879_v43 = vadd.f32 %v863_v35, %v843_v46  ;;  %v556_v31 = vmul.f32 %v1560_v10, %v486_v6  ;;  %v914_v15 = vadd.f32 %v898_v47, %v878_v14 }
  0x7d   : > { %v1021_v2 = vadd.f32 %v1005_v61, %v985_v62  ;;  %v619_v4 = vrot.slane %v548_v50, 7  ;;  %v680_v5 = vrot.slane %v548_v50, 1  ;;  %v681_v55 = vrot.slane %v549_v63, 1 }
  0x7e   : > { %v970_v22 = vmul.f32 %v1606_v38, %v548_v50  ;;  %v620_v28 = vrot.slane %v549_v63, 7  ;;  %v915_v9 = vadd.f32 %v899_v52, %v879_v43  ;;  %v557_v30 = vmul.f32 %v1560_v10, %v487_v0 }
  0x7f   : > { %1038 = vst.msk [vmem:[%s1790_s14 + $0x58] sm:$0xff] %vm1026_vm3, %v1021_v2  ;;  %v1064_v12 = vsel %vm1026_vm3, %v1021_v2, 0.0  ;;  %v1091_v23 = vmul.f32 %v1021_v2, %v1021_v2  ;;  %v653_v59 = vsel %vm594_vm0, 0.0, %v619_v4  ;;  %v682_v20 = vsel %vm655_vm1, %v680_v5, %v681_v55 }
  0x80   : > { %v1065_v3 = vadd.f32 %v1064_v12, %v1063_v53  ;;  %v828_v25 = vmul.f32 %v1575_v18, %v653_v59  ;;  %v934_v47 = vmul.f32 %v1597_v29, %v653_v59  ;;  %v1006_v48 = vmul.f32 %v1677_v8, %v682_v20 }
  0x81   : > { %v1117_v33 = vsel %vm1026_vm3, %v1091_v23, 0.0  ;;  %v621_v34 = vsel %vm594_vm0, %v619_v4, %v620_v28  ;;  %v971_v7 = vmul.f32 %v1606_v38, %v549_v63  ;;  %v714_v10 = vsel %vm655_vm1, %v681_v55, 0.0 }
  0x82   : > { %v1118_v45 = vadd.f32 %v1117_v33, %v1116_v51  ;;  %v950_v26 = vadd.f32 %v934_v47, %v914_v15  ;;  %v829_v39 = vmul.f32 %v1575_v18, %v621_v34  ;;  %v900_v57 = vmul.f32 %v1585_v24, %v682_v20 }
  0x83   : > { %v935_v60 = vmul.f32 %v1597_v29, %v621_v34  ;;  %v1007_v54 = vmul.f32 %v1677_v8, %v714_v10  ;;  %v558_v52 = vadd.f32 %v1594_v27, %v556_v31  ;;  %v559_v58 = vadd.f32 %v1594_v27, %v557_v30 }
  0x84   : > { %v986_v36 = vadd.f32 %v970_v22, %v950_v26  ;;  %v570_v11 = vstv %s569_s19  ;;  %v844_v16 = vadd.f32 %v828_v25, %v2004_v41  ;;  %v864_v18 = vmul.f32 %v1577_v19, %v548_v50 }
  0x85   : > { %v951_v17 = vadd.f32 %v935_v60, %v915_v9  ;;  %v560_v49 = vmax.f32 %v558_v52, 0.0  ;;  %vm571_vm4 = vcmp.eq.s32.totalorder %v570_v11, 1  ;;  %v901_v32 = vmul.f32 %v1585_v24, %v714_v10 }
  0x86   : > { %v1022_v61 = vadd.f32 %v1006_v48, %v986_v36  ;;  %v561_v1 = vmax.f32 %v559_v58, 0.0  ;;  %v845_v46 = vadd.f32 %v829_v39, %v809_v56  ;;  %v880_v44 = vadd.f32 %v864_v18, %v844_v16 }
  0x87   : > { %v987_v42 = vadd.f32 %v971_v7, %v951_v17  ;;  %v572_v21 = vsel %vm571_vm4, 0.0, %v560_v49  ;;  %v865_v40 = vmul.f32 %v1577_v19, %v549_v63 }
  0x88   : > { %1039 = vst.msk [vmem:[%s1790_s14 + $0x60] sm:$0xff] %vm1026_vm3, %v1022_v61  ;;  %v1066_v27 = vsel %vm1026_vm3, %v1022_v61, 0.0  ;;  %v1092_v41 = vmul.f32 %v1022_v61, %v1022_v61  ;;  %v573_v6 = vsel %vm571_vm4, 0.0, %v561_v1  ;;  %v622_v53 = vrot.slane %v572_v21, 7 }
  0x89   : > { %v1067_v37 = vadd.f32 %v1066_v27, %v1065_v3  ;;  %v1023_v14 = vadd.f32 %v1007_v54, %v987_v42  ;;  %v623_v35 = vrot.slane %v573_v6, 7  ;;  %v683_v13 = vrot.slane %v572_v21, 1 }
  0x8a   : > { %v1119_v24 = vsel %vm1026_vm3, %v1092_v41, 0.0  ;;  %v654_v56 = vsel %vm594_vm0, 0.0, %v622_v53  ;;  %v684_v62 = vrot.slane %v573_v6, 1  ;;  %v916_v50 = vadd.f32 %v900_v57, %v880_v44 }
  0x8b   : > { %v1120_v51 = vadd.f32 %v1119_v24, %v1118_v45  ;;  %1040 = vst.msk [vmem:[%s1790_s14 + $0x68] sm:$0xff] %vm1026_vm3, %v1023_v14  ;;  %v1068_v19 = vsel %vm1026_vm3, %v1023_v14, 0.0  ;;  %v1093_v63 = vmul.f32 %v1023_v14, %v1023_v14  ;;  %v936_v43 = vmul.f32 %v1597_v29, %v654_v56 }
  0x8c   : > { %v1069_v0 = vadd.f32 %v1068_v19, %v1067_v37  ;;  %v685_v31 = vsel %vm655_vm1, %v683_v13, %v684_v62  ;;  %v972_v2 = vmul.f32 %v1606_v38, %v572_v21  ;;  %v624_v4 = vsel %vm594_vm0, %v622_v53, %v623_v35 }
  0x8d   : > { %v1121_v5 = vsel %vm1026_vm3, %v1093_v63, 0.0  ;;  %v952_v15 = vadd.f32 %v936_v43, %v916_v50  ;;  %v1008_v55 = vmul.f32 %v1677_v8, %v685_v31  ;;  %v881_v28 = vadd.f32 %v865_v40, %v845_v46 }
  0x8e   : > { %v1122_v22 = vadd.f32 %v1121_v5, %v1120_v51  ;;  %v937_v9 = vmul.f32 %v1597_v29, %v624_v4  ;;  %v715_v23 = vsel %vm655_vm1, %v684_v62, 0.0  ;;  %v973_v30 = vmul.f32 %v1606_v38, %v573_v6 }
  0x8f   : > { %v988_v12 = vadd.f32 %v972_v2, %v952_v15  ;;  %v917_v59 = vadd.f32 %v901_v32, %v881_v28  ;;  %v1009_v25 = vmul.f32 %v1677_v8, %v715_v23 }
  0x91   : > { %v1024_v3 = vadd.f32 %v1008_v55, %v988_v12  ;;  %v953_v20 = vadd.f32 %v937_v9, %v917_v59 }
  0x93   : > { %1041 = vst.msk [vmem:[%s1790_s14 + $0x70] sm:$0xff] %vm1026_vm3, %v1024_v3  ;;  %v1070_v47 = vsel %vm1026_vm3, %v1024_v3, 0.0  ;;  %v1094_v33 = vmul.f32 %v1024_v3, %v1024_v3  ;;  %v989_v29 = vadd.f32 %v973_v30, %v953_v20 }
  0x94   : > { %v1071_v48 = vadd.f32 %v1070_v47, %v1069_v0 }
  0x95   : > { %v1123_v34 = vsel %vm1026_vm3, %v1094_v33, 0.0  ;;  %v1025_v45 = vadd.f32 %v1009_v25, %v989_v29 }
  0x96   : > { %v1124_v7 = vadd.f32 %v1123_v34, %v1122_v22 }
  0x97   : > { %1042 = vst.msk [vmem:[%s1790_s14 + $0x78] sm:$0xff] %vm1026_vm3, %v1025_v45  ;;  %v1072_v38 = vsel %vm1026_vm3, %v1025_v45, 0.0  ;;  %v1095_v26 = vmul.f32 %v1025_v45, %v1025_v45 }
  0x98   : > { %v1073_v10 = vadd.f32 %v1072_v38, %v1071_v48 }
  0x99   : > { %v1125_v8 = vsel %vm1026_vm3, %v1095_v26, 0.0 }
  0x9a   : > { %v1074_v39 = vrot.slane %v1073_v10, 4  ;;  %v1126_v57 = vadd.f32 %v1125_v8, %v1124_v7 }
  0x9c   : > { %v1075_v60 = vadd.f32 %v1074_v39, %v1073_v10  ;;  %v1127_v54 = vrot.slane %v1126_v57, 4 }
  0x9e   : > { %v1076_v52 = vrot.slane %v1075_v60, 2  ;;  %v1128_v36 = vadd.f32 %v1127_v54, %v1126_v57 }
  0xa0   : > { %v1077_v58 = vadd.f32 %v1076_v52, %v1075_v60  ;;  %v1129_v11 = vrot.slane %v1128_v36, 2 }
  0xa2   : > { %v1078_v16 = vrot.slane %v1077_v58, 1  ;;  %v1130_v17 = vadd.f32 %v1129_v11, %v1128_v36 }
  0xa4   : > { %v1079_v49 = vadd.f32 %v1078_v16, %v1077_v58  ;;  %v1131_v18 = vrot.slane %v1130_v17, 1 }
  0xa6   : > { %v1132_v61 = vadd.f32 %v1131_v18, %v1130_v17 }
  0xa8   : > { %v1133_v32 = vsel %vm594_vm0, %v1079_v49, %v1132_v61 }
  0xa9   : > { %1135 = vst.msk [vmem:[%s467_s10] sm:$0x3] %vm1134_vm5, %v1133_v32 }
  0xaa PF: > { %s18_s28 = sadd.s32 1, %s1453_s28   ;;  %s2119_s24 = smov %s1445_s26 }
  0xab   : > { %p15_p13 = scmp.ge.s32.totalorder %s18_s28, 6   ;;  %s2120_s25 = smov %s1449_s27 }
  0xac   : > { %s2121_s26 = smov %s2124_s29  ;;  %s2122_s27 = smov %s2128_s30 }
  0xad   :  { %17 = sbr.rel (!%p15_p13) target bundleno = 3 (0x3), region = 92 }

// kernel: up_dsc_forward.5
= control target key start
LH: loop header
LB: loop body
LE: loop exit
PB: predicated region body
PF: predicated region fallthrough
CT: control target
= control target key end

     0   :  { %s1431_s24 = smov 0   ;;  %s1433_s25 = smov 0   ;;  %s2018_s0 = inlined_call_operand.vmem [shape: f32[2,16,16,4], index: 0, kind: input, shape index: {}, may-alias: {0,1,2}]   ;;  %s2019_s1 = inlined_call_operand.vmem [shape: f32[2,16,16,4], index: 1, kind: input, shape index: {}, may-alias: {0,1,2}]   ;;  %s2020_s2 = inlined_call_operand.vmem [shape: f32[2,16,16,4], index: 2, kind: input, shape index: {}, may-alias: {0,1,2}]   ;;  %s2021_s3 = inlined_call_operand.vmem [shape: f32[9,4], index: 3, kind: input, shape index: {}]   ;;  %s2022_s4 = inlined_call_operand.vmem [shape: f32[1,4], index: 4, kind: input, shape index: {}]   ;;  %s2023_s5 = inlined_call_operand.vmem [shape: f32[1,4], index: 5, kind: input, shape index: {}]   ;;  %s2024_s6 = inlined_call_operand.vmem [shape: f32[2,16,16,4], index: 6, kind: output, shape index: {0}]   ;;  %s2025_s7 = inlined_call_operand.vmem [shape: f32[2,2,2,4], index: 7, kind: output, shape index: {1}]  }
   0x1   :  { %s1435_s26 = smov 0   ;;  %s1437_s27 = smov 0  }
   0x2   :  { %s1439_s28 = smov 0  }
   0x3 LB: > { %s27_s4 = sadd.s32 1, %s1381_s26  ;;  %s30_s5 = sadd.s32 1, %s1385_s27  ;;  %s1389_s28 = sphi %s1439_s28, %s18_s28   ;;  %s1385_s27 = sphi %s1437_s27, %s2030_s27   ;;  %s1381_s26 = sphi %s1435_s26, %s2029_s26   ;;  %s1377_s25 = sphi %s1433_s25, %s2028_s25   ;;  %s1373_s24 = sphi %s1431_s24, %s2027_s24  }
   0x4   : > { %p28_p0 = scmp.ge.s32.totalorder %s27_s4, 2  ;;  %p1260_p1 = scmp.ge.s32.totalorder %s1389_s28, 1 }
   0x5   : > { %p328_p2 = scmp.lt.s32.totalorder %s1389_s28, 5 }
   0x6   : > { %s2032_s4 = smov (%p28_p0, %s27_s4), 0  ;;  %s2034_s5 = smov (!%p28_p0, %s30_s5), %s1385_s27 }
   0x7   : > { %p329_p3 = pnand %p1260_p1, %p328_p2  ;;  %p32_p4 = scmp.ge.s32.totalorder %s2034_s5, 2 }
   0x8   : > { %s1464_s29 = sshll.u32 (!%p329_p3), %s1373_s24, 3  ;;  %p405_p5 = scmp.lt.s32.totalorder (!%p329_p3), %s1377_s25, 1 }
   0x9   : > { %s2036_s5 = smov (%p32_p4, %s2034_s5), 0  ;;  %332 = sbr.rel (%p329_p3) target bundleno = 152 (0x98), region = 44 }
   0xa   : > { %p407_p6 = scmp.lt.s32.totalorder (!%p329_p3), %s1464_s29, 15  ;;  %s1468_s30 = sadd.s32 (!%p329_p3), 4294967295, %s1464_s29 }
   0xb   : > { %p417_p7 = scmp.gt.s32.totalorder (!%p329_p3), %s1468_s30, 0  ;;  %p488_p8 = scmp.eq.s32.totalorder (!%p329_p3), %s1373_s24, 0 }
   0xc   : > { %p1267_p9 = scmp.lt.s32.totalorder (!%p329_p3), %s1468_s30, 15  ;;  %s1298_s19 = sadd.s32 (!%p329_p3), 8, %s1464_s29 }
   0xd   : > { %p1562_p10 = scmp.lt.s32.totalorder (!%p329_p3), %s1298_s19, 15  ;;  %p494_p11 = scmp.eq.s32.totalorder (!%p329_p3), %s1373_s24, 1 }
   0xe   : > { %v644_v0 = vlaneseq  ;;  %s2038_s25 = smov (!%p405_p5, %s1377_s25), 1  ;;  %v642_v6 = vld [vmem:[%s2021_s3] sm:$0xff]  ;;  %vm520_vm0 = vcmask 1040384   ;;  %vm581_vm1 = vcmask 1046528   ;;  %v1544_v35 = vld [vmem:[%s2021_s3 + $0x8] ss:$0 sm:$0xff] }
   0xf   : > { %s408_s8 = scalar_select %p407_p6, %s1464_s29, 15  ;;  %vm952_vm2 = vcmask 31744   ;;  %vm1060_vm3 = vcmask 25600  }
  0x10   : > { %v645_v1 = vshrl.u32 %v644_v0, 7  ;;  %s1474_s9 = sshll.u32 %s2038_s25, 5  ;;  %s2042_s19 = smov (!%p1562_p10, %s1298_s19), 15 }
  0x11   : > { %s1262_s10 = sshll.u32 %s408_s8, 1  ;;  %s2044_s19 = smov (!%p1562_p10, %s2042_s19), 15 }
  0x12   : > { %v646_v2 = vsub.s32 0, %v645_v1  ;;  %v666_v3 = vsub.s32 1, %v645_v1  ;;  %v702_v4 = vsub.s32 2, %v645_v1  ;;  %v738_v5 = vsub.s32 3, %v645_v1  ;;  %s1478_s11 = sadd.s32 %s1474_s9, %s1262_s10  ;;  %s1625_s29 = sshll.u32 %s2044_s19, 1 }
  0x13   : > { %v774_v7 = vsub.s32 4, %v645_v1  ;;  %s1264_s14 = sshll.u32 %s1478_s11, 3  ;;  %v882_v8 = vsub.s32 7, %v645_v1  ;;  %v810_v9 = vsub.s32 5, %v645_v1  ;;  %v846_v10 = vsub.s32 6, %v645_v1  ;;  %s442_s16 = sadd.s32 %s1625_s29, %s1474_s9 }
  0x14   : > { %s1491_s17 = scalar_lea.vmem %s2018_s0, %s1264_s14  ;;  %v1505_v14 = vrot.slane %v642_v6, %v646_v2  ;;  %v1507_v15 = vrot.slane %v642_v6, %v666_v3  ;;  %v1509_v16 = vrot.slane %v642_v6, %v702_v4  ;;  %v1511_v17 = vrot.slane %v642_v6, %v738_v5  ;;  %s1281_s11 = sshll.u32 %s442_s16, 3 }
  0x15   : > { %s418_s18 = scalar_select %p417_p7, %s1468_s30, 0  ;;  %v1497_v11 = vld [vmem:[%s1491_s17] sm:$0xff]  ;;  %v1500_v12 = vld [vmem:[%s1491_s17 + $0x8] sm:$0xff]  ;;  %v1503_v13 = vld [vmem:[%s1491_s17 + $0x10] sm:$0xff]  ;;  %v1519_v22 = vrot.slane %v642_v6, %v774_v7  ;;  %v1526_v26 = vrot.slane %v642_v6, %v882_v8  ;;  %v1535_v32 = vrot.slane %v642_v6, %v810_v9  ;;  %v1539_v34 = vrot.slane %v642_v6, %v846_v10 }
  0x16   : > { %v1514_v18 = vld [vmem:[%s1491_s17 + $0x18] sm:$0xff]  ;;  %v524_v19 = vrot.slane %v1497_v11, 7  ;;  %v527_v20 = vrot.slane %v1503_v13, 7  ;;  %v585_v21 = vrot.slane %v1497_v11, 1  ;;  %v586_v23 = vrot.slane %v1500_v12, 1  ;;  %v1616_v6 = vld [vmem:[%s1491_s17 + $0x20] sm:$0xff] }
  0x17   : > { %s2040_s18 = smov (!%p1267_p9, %s418_s18), 15  ;;  %v588_v24 = vrot.slane %v1503_v13, 1  ;;  %v589_v25 = vrot.slane %v1514_v18, 1  ;;  %v672_v29 = vmul.f32 %v1507_v15, %v1503_v13  ;;  %v1554_v38 = vmul.f32 %v1519_v22, %v1497_v11  ;;  %p462_p12 = scmp.lt.s32.totalorder %s1373_s24, 1 }
  0x18   : > { %v572_v27 = vsel %vm520_vm0, 0.0, %v524_v19  ;;  %v573_v28 = vsel %vm520_vm0, 0.0, %v527_v20  ;;  %s1272_s20 = sshll.u32 %s2040_s18, 1  ;;  %v587_v30 = vsel %vm581_vm1, %v585_v21, %v586_v23  ;;  %v1558_v39 = vmul.f32 %v1526_v26, %v1503_v13 }
  0x19   : > { %v590_v31 = vsel %vm581_vm1, %v588_v24, %v589_v25  ;;  %s425_s21 = sadd.s32 %s1272_s20, %s1474_s9  ;;  %v652_v33 = vmul.f32 %v1505_v14, %v573_v28  ;;  %v1547_v36 = vmul.f32 %v1505_v14, %v572_v27  ;;  %v1550_v37 = vmul.f32 %v1509_v16, %v587_v30  ;;  %s1695_s20 = scalar_lea.vmem %s2024_s6, %s1264_s14 }
  0x1a   : > { %s1274_s22 = sshll.u32 %s425_s21, 3  ;;  %v708_v41 = vmul.f32 %v1509_v16, %v590_v31  ;;  %v525_v42 = vrot.slane %v1500_v12, 7  ;;  %v528_v43 = vrot.slane %v1514_v18, 7  ;;  %v740_v44 = vmul.f32 %v1511_v17, %v572_v27  ;;  %s2046_s24 = smov (!%p462_p12, %s1373_s24), 1 }
  0x1b   : > { %s427_s13 = scalar_lea.vmem %s2019_s1, %s1274_s22  ;;  %v688_v40 = vadd.f32 %v672_v29, %v652_v33  ;;  %v1576_v45 = vmul.f32 %v1511_v17, %v573_v28  ;;  %v1579_v46 = vmul.f32 %v1535_v32, %v587_v30  ;;  %v633_v47 = vsel %vm581_vm1, %v586_v23, 0.0  ;;  %s1286_s22 = sshll.u32 %s2038_s25, 1 }
  0x1c   : > { %s1340_s15 = scalar_select %p488_p8, 0, 255  ;;  %v1583_v48 = vmul.f32 %v1535_v32, %v590_v31  ;;  %v1586_v49 = vmul.f32 %v1539_v34, %v573_v28  ;;  %v1589_v50 = vmul.f32 %v1544_v35, %v590_v31  ;;  %v529_v51 = vsel %vm520_vm0, %v527_v20, %v528_v43 }
  0x1d   : > { %v526_v53 = vsel %vm520_vm0, %v524_v19, %v525_v42  ;;  %v634_v54 = vsel %vm581_vm1, %v589_v25, 0.0  ;;  %v673_v55 = vmul.f32 %v1507_v15, %v1514_v18  ;;  %v777_v56 = vmul.f32 %v1519_v22, %v1500_v12  ;;  %v1623_v19 = vld [vmem:[%s1491_s17 + $0x28] sm:$0xff]  ;;  %s1346_s21 = scalar_select %p494_p11, 0, 255 }
  0x1e   : > { %v1341_v52 = vld [vmem:[%s427_s13] sm:%s1340_s15]  ;;  %v1344_v57 = vld [vmem:[%s427_s13 + $0x8] sm:%s1340_s15]  ;;  %v1602_v60 = vadd.f32 %v708_v41, %v688_v40  ;;  %v1605_v61 = vmul.f32 %v1509_v16, %v633_v47  ;;  %v653_v1 = vmul.f32 %v1505_v14, %v529_v51  ;;  %v651_v3 = vmul.f32 %v1505_v14, %v526_v53  ;;  %s465_s23 = sadd.s32 %s1286_s22, %s2046_s24 }
  0x1f   : > { %v521_v58 = vrot.slane %v1341_v52, 7  ;;  %v582_v59 = vrot.slane %v1341_v52, 1  ;;  %v583_v62 = vrot.slane %v1344_v57, 1  ;;  %v668_v63 = vmul.f32 %v1341_v52, %v1507_v15  ;;  %s1287_s30 = sshll.u32 %s465_s23, 1 }
  0x20   : > { %v522_v0 = vrot.slane %v1344_v57, 7  ;;  %v669_v4 = vmul.f32 %v1344_v57, %v1507_v15  ;;  %v709_v5 = vmul.f32 %v1509_v16, %v634_v54  ;;  %v741_v24 = vmul.f32 %v1511_v17, %v526_v53  ;;  %s467_s12 = scalar_lea.vmem %s2025_s7, %s1287_s30 }
  0x21   : > { %v571_v2 = vsel %vm520_vm0, 0.0, %v521_v58  ;;  %v584_v7 = vsel %vm581_vm1, %v582_v59, %v583_v62  ;;  %v632_v10 = vsel %vm581_vm1, %v583_v62, 0.0  ;;  %v689_v27 = vadd.f32 %v673_v55, %v653_v1 }
  0x22   : > { %v648_v8 = vmul.f32 %v1505_v14, %v571_v2  ;;  %v523_v9 = vsel %vm520_vm0, %v521_v58, %v522_v0  ;;  %v704_v20 = vmul.f32 %v1509_v16, %v584_v7  ;;  %v705_v23 = vmul.f32 %v1509_v16, %v632_v10 }
  0x23   : > { %v649_v21 = vmul.f32 %v1505_v14, %v523_v9  ;;  %v743_v28 = vmul.f32 %v1511_v17, %v529_v51  ;;  %v530_v29 = vrot.slane %v1616_v6, 7  ;;  %v591_v31 = vrot.slane %v1616_v6, 1 }
  0x24   : > { %v684_v25 = vadd.f32 %v668_v63, %v648_v8  ;;  %v592_v33 = vrot.slane %v1623_v19, 1  ;;  %v670_v40 = vmul.f32 %v1507_v15, %v1497_v11  ;;  %v813_v42 = vmul.f32 %v1535_v32, %v633_v47 }
  0x25   : > { %v685_v30 = vadd.f32 %v669_v4, %v649_v21  ;;  %v574_v43 = vsel %vm520_vm0, 0.0, %v530_v29  ;;  %v674_v52 = vmul.f32 %v1507_v15, %v1616_v6  ;;  %v1646_v62 = vadd.f32 %v709_v5, %v689_v27 }
  0x26   : > { %v720_v41 = vadd.f32 %v704_v20, %v684_v25  ;;  %v593_v55 = vsel %vm581_vm1, %v591_v31, %v592_v33  ;;  %v654_v57 = vmul.f32 %v1505_v14, %v574_v43  ;;  %v686_v58 = vadd.f32 %v670_v40, %v1547_v36 }
  0x27   : > { %v721_v53 = vadd.f32 %v705_v23, %v685_v30  ;;  %v815_v11 = vmul.f32 %v1535_v32, %v634_v54  ;;  %v849_v63 = vmul.f32 %v1539_v34, %v529_v51  ;;  %v885_v0 = vmul.f32 %v1526_v26, %v1514_v18  ;;  %v1679_v30 = vld [vmem:[%s1491_s17 + $0x30] sm:$0xff] }
  0x28   : > { %v756_v59 = vadd.f32 %v740_v44, %v720_v41  ;;  %v722_v1 = vadd.f32 %v1550_v37, %v686_v58  ;;  %v778_v2 = vmul.f32 %v1519_v22, %v1503_v13  ;;  %v921_v36 = vmul.f32 %v1544_v35, %v634_v54 }
  0x29   : > { %v757_v47 = vadd.f32 %v741_v24, %v721_v53  ;;  %v710_v44 = vmul.f32 %v1509_v16, %v593_v55  ;;  %v531_v5 = vrot.slane %v1623_v19, 7  ;;  %v690_v51 = vadd.f32 %v674_v52, %v654_v57 }
  0x2a   : > { %v792_v4 = vadd.f32 %v1554_v38, %v756_v59  ;;  %v744_v8 = vmul.f32 %v1511_v17, %v574_v43  ;;  %v758_v9 = vadd.f32 %v1576_v45, %v722_v1  ;;  %v850_v37 = vmul.f32 %v1539_v34, %v574_v43 }
  0x2b   : > { %v793_v7 = vadd.f32 %v777_v56, %v757_v47  ;;  %v532_v13 = vsel %vm520_vm0, %v530_v29, %v531_v5  ;;  %v671_v38 = vmul.f32 %v1507_v15, %v1500_v12  ;;  %v675_v21 = vmul.f32 %v1507_v15, %v1623_v19 }
  0x2c   : > { %v828_v10 = vadd.f32 %v1579_v46, %v792_v4  ;;  %v794_v20 = vadd.f32 %v778_v2, %v758_v9  ;;  %v655_v56 = vmul.f32 %v1505_v14, %v532_v13  ;;  %v1671_v46 = vmul.f32 %v1535_v32, %v593_v55 }
  0x2d   : > { %v829_v54 = vadd.f32 %v813_v42, %v793_v7  ;;  %v635_v23 = vsel %vm581_vm1, %v592_v33, 0.0  ;;  %v687_v24 = vadd.f32 %v671_v38, %v651_v3  ;;  %v886_v27 = vmul.f32 %v1526_v26, %v1616_v6  ;;  %v1688_v3 = vld [vmem:[%s1491_s17 + $0x38] sm:$0xff] }
  0x2e   : > { %v864_v45 = vadd.f32 %v1586_v49, %v828_v10  ;;  %v830_v12 = vadd.f32 %v1583_v48, %v794_v20  ;;  %v922_v29 = vmul.f32 %v1544_v35, %v593_v55  ;;  %v1682_v40 = vadd.f32 %v710_v44, %v690_v51 }
  0x2f   : > { %v865_v25 = vadd.f32 %v849_v63, %v829_v54  ;;  %v723_v49 = vadd.f32 %v1605_v61, %v687_v24  ;;  %v779_v33 = vmul.f32 %v1519_v22, %v1514_v18  ;;  %v711_v42 = vmul.f32 %v1509_v16, %v635_v23 }
  0x30   : > { %v900_v31 = vadd.f32 %v1558_v39, %v864_v45  ;;  %v866_v41 = vadd.f32 %v850_v37, %v830_v12  ;;  %v691_v39 = vadd.f32 %v675_v21, %v655_v56  ;;  %v533_v18 = vrot.slane %v1679_v30, 7 }
  0x31   : > { %v901_v48 = vadd.f32 %v885_v0, %v865_v25  ;;  %v759_v43 = vadd.f32 %v743_v28, %v723_v49  ;;  %v594_v52 = vrot.slane %v1679_v30, 1  ;;  %v851_v57 = vmul.f32 %v1539_v34, %v532_v13 }
  0x32   : > { %v936_v61 = vadd.f32 %v1589_v50, %v900_v31  ;;  %v902_v55 = vadd.f32 %v886_v27, %v866_v41  ;;  %v595_v58 = vrot.slane %v1688_v3, 1  ;;  %v575_v50 = vsel %vm520_vm0, 0.0, %v533_v18 }
  0x33   : > { %v937_v53 = vadd.f32 %v921_v36, %v901_v48  ;;  %v795_v47 = vadd.f32 %v779_v33, %v759_v43  ;;  %v887_v2 = vmul.f32 %v1526_v26, %v1623_v19  ;;  %v676_v5 = vmul.f32 %v1507_v15, %v1679_v30 }
  0x34   : > { %953 = vst.msk [vmem:[%s1695_s20] sm:$0xff] %vm952_vm2, %v936_v61  ;;  %v969_v59 = vsel %vm952_vm2, %v936_v61, 0.0  ;;  %v1006_v63 = vmul.f32 %v936_v61, %v936_v61  ;;  %v938_v1 = vadd.f32 %v922_v29, %v902_v55  ;;  %v596_v44 = vsel %vm581_vm1, %v594_v52, %v595_v58 }
  0x35   : > { %954 = vst.msk [vmem:[%s1695_s20 + $0x8] sm:$0xff] %vm952_vm2, %v937_v53  ;;  %v970_v28 = vsel %vm952_vm2, %v937_v53, 0.0  ;;  %v1007_v0 = vmul.f32 %v937_v53, %v937_v53  ;;  %v831_v36 = vadd.f32 %v815_v11, %v795_v47  ;;  %v656_v10 = vmul.f32 %v1505_v14, %v575_v50 }
  0x36   : > { %v1022_v4 = vsel %vm952_vm2, %v1006_v63, 0.0  ;;  %v971_v7 = vadd.f32 %v970_v28, %v969_v59  ;;  %955 = vst.msk [vmem:[%s1695_s20 + $0x10] sm:$0xff] %vm952_vm2, %v938_v1  ;;  %v1008_v9 = vmul.f32 %v938_v1, %v938_v1  ;;  %v972_v38 = vsel %vm952_vm2, %v938_v1, 0.0 }
  0x37   : > { %v1023_v51 = vsel %vm952_vm2, %v1007_v0, 0.0  ;;  %v867_v54 = vadd.f32 %v851_v57, %v831_v36  ;;  %v923_v20 = vmul.f32 %v1544_v35, %v635_v23  ;;  %v745_v56 = vmul.f32 %v1511_v17, %v532_v13  ;;  %v1750_v57 = vld [vmem:[%s1491_s17 + $0x40] sm:$0xff] }
  0x38   : > { %v1024_v37 = vadd.f32 %v1023_v51, %v1022_v4  ;;  %v1025_v11 = vsel %vm952_vm2, %v1008_v9, 0.0  ;;  %v760_v21 = vadd.f32 %v744_v8, %v1602_v60  ;;  %v780_v45 = vmul.f32 %v1519_v22, %v1616_v6 }
  0x39   : > { %v1727_v24 = vadd.f32 %v711_v42, %v691_v39  ;;  %v817_v25 = vmul.f32 %v1535_v32, %v635_v23  ;;  %v903_v12 = vadd.f32 %v887_v2, %v867_v54  ;;  %v712_v27 = vmul.f32 %v1509_v16, %v596_v44 }
  0x3a   : > { %v973_v29 = vadd.f32 %v972_v38, %v971_v7  ;;  %v692_v31 = vadd.f32 %v676_v5, %v656_v10  ;;  %v796_v49 = vadd.f32 %v780_v45, %v760_v21  ;;  %v852_v33 = vmul.f32 %v1539_v34, %v575_v50 }
  0x3b   : > { %v1026_v48 = vadd.f32 %v1025_v11, %v1024_v37  ;;  %v939_v13 = vadd.f32 %v923_v20, %v903_v12  ;;  %v746_v60 = vmul.f32 %v1511_v17, %v575_v50  ;;  %v534_v6 = vrot.slane %v1688_v3, 7 }
  0x3c   : > { %v832_v8 = vadd.f32 %v1671_v46, %v796_v49  ;;  %v888_v23 = vmul.f32 %v1526_v26, %v1679_v30  ;;  %v761_v41 = vadd.f32 %v745_v56, %v1646_v62  ;;  %v781_v39 = vmul.f32 %v1519_v22, %v1623_v19  ;;  %v1753_v19 = vld [vmem:[%s1491_s17 + $0x48] sm:$0xff] }
  0x3d   : > { %956 = vst.msk [vmem:[%s1695_s20 + $0x18] sm:$0xff] %vm952_vm2, %v939_v13  ;;  %v974_v42 = vsel %vm952_vm2, %v939_v13, 0.0  ;;  %v924_v61 = vmul.f32 %v1544_v35, %v596_v44  ;;  %v535_v43 = vsel %vm520_vm0, %v533_v18, %v534_v6  ;;  %v636_v52 = vsel %vm581_vm1, %v595_v58, 0.0 }
  0x3e   : > { %v1009_v53 = vmul.f32 %v939_v13, %v939_v13  ;;  %v868_v46 = vadd.f32 %v852_v33, %v832_v8  ;;  %v657_v55 = vmul.f32 %v1505_v14, %v535_v43  ;;  %v677_v62 = vmul.f32 %v1507_v15, %v1688_v3 }
  0x3f   : > { %v1755_v59 = vadd.f32 %v712_v27, %v692_v31  ;;  %v818_v63 = vmul.f32 %v1535_v32, %v596_v44  ;;  %v797_v47 = vadd.f32 %v781_v39, %v761_v41  ;;  %v853_v18 = vmul.f32 %v1539_v34, %v535_v43 }
  0x40   : > { %v975_v50 = vadd.f32 %v974_v42, %v973_v29  ;;  %v904_v58 = vadd.f32 %v888_v23, %v868_v46  ;;  %v713_v28 = vmul.f32 %v1509_v16, %v636_v52  ;;  %v889_v0 = vmul.f32 %v1526_v26, %v1688_v3 }
  0x41   : > { %v833_v1 = vadd.f32 %v817_v25, %v797_v47  ;;  %v536_v2 = vrot.slane %v1750_v57, 7  ;;  %v597_v4 = vrot.slane %v1750_v57, 1  ;;  %v598_v36 = vrot.slane %v1753_v19, 1  ;;  %v1801_v47 = vld [vmem:[%s1491_s17 + $0x50] sm:$0xff] }
  0x42   : > { %v1027_v44 = vsel %vm952_vm2, %v1009_v53, 0.0  ;;  %v940_v5 = vadd.f32 %v924_v61, %v904_v58  ;;  %v693_v7 = vadd.f32 %v677_v62, %v657_v55  ;;  %v762_v51 = vadd.f32 %v746_v60, %v1682_v40 }
  0x43   : > { %v869_v9 = vadd.f32 %v853_v18, %v833_v1  ;;  %v925_v10 = vmul.f32 %v1544_v35, %v636_v52  ;;  %v576_v37 = vsel %vm520_vm0, 0.0, %v536_v2  ;;  %v782_v38 = vmul.f32 %v1519_v22, %v1679_v30  ;;  %v1804_v18 = vld [vmem:[%s1491_s17 + $0x58] sm:$0xff] }
  0x44   : > { %957 = vst.msk [vmem:[%s1695_s20 + $0x20] sm:$0xff] %vm952_vm2, %v940_v5  ;;  %v1010_v54 = vmul.f32 %v940_v5, %v940_v5  ;;  %v599_v20 = vsel %vm581_vm1, %v597_v4, %v598_v36  ;;  %v658_v11 = vmul.f32 %v1505_v14, %v576_v37  ;;  %v678_v56 = vmul.f32 %v1507_v15, %v1750_v57 }
  0x45   : > { %v976_v40 = vsel %vm952_vm2, %v940_v5, 0.0  ;;  %v819_v21 = vmul.f32 %v1535_v32, %v636_v52  ;;  %v905_v45 = vadd.f32 %v889_v0, %v869_v9  ;;  %v798_v25 = vadd.f32 %v782_v38, %v762_v51 }
  0x46   : > { %v1028_v12 = vadd.f32 %v1027_v44, %v1026_v48  ;;  %v1779_v27 = vadd.f32 %v713_v28, %v693_v7  ;;  %v747_v30 = vmul.f32 %v1511_v17, %v535_v43  ;;  %v854_v29 = vmul.f32 %v1539_v34, %v576_v37 }
  0x47   : > { %v941_v31 = vadd.f32 %v925_v10, %v905_v45  ;;  %v714_v49 = vmul.f32 %v1509_v16, %v599_v20  ;;  %v834_v33 = vadd.f32 %v818_v63, %v798_v25  ;;  %v890_v13 = vmul.f32 %v1526_v26, %v1750_v57 }
  0x48   : > { %v977_v60 = vadd.f32 %v976_v40, %v975_v50  ;;  %v1029_v6 = vsel %vm952_vm2, %v1010_v54, 0.0  ;;  %v694_v8 = vadd.f32 %v678_v56, %v658_v11  ;;  %v537_v48 = vrot.slane %v1753_v19, 7 }
  0x49   : > { %958 = vst.msk [vmem:[%s1695_s20 + $0x28] sm:$0xff] %vm952_vm2, %v941_v31  ;;  %v978_v23 = vsel %vm952_vm2, %v941_v31, 0.0  ;;  %v1011_v41 = vmul.f32 %v941_v31, %v941_v31  ;;  %v870_v39 = vadd.f32 %v854_v29, %v834_v33  ;;  %v926_v42 = vmul.f32 %v1544_v35, %v599_v20 }
  0x4a   : > { %v748_v61 = vmul.f32 %v1511_v17, %v576_v37  ;;  %v538_v43 = vsel %vm520_vm0, %v536_v2, %v537_v48  ;;  %v637_v52 = vsel %vm581_vm1, %v598_v36, 0.0  ;;  %v763_v53 = vadd.f32 %v747_v30, %v1727_v24 }
  0x4b   : > { %v820_v46 = vmul.f32 %v1535_v32, %v599_v20  ;;  %v906_v55 = vadd.f32 %v890_v13, %v870_v39  ;;  %v659_v62 = vmul.f32 %v1505_v14, %v538_v43  ;;  %v679_v63 = vmul.f32 %v1507_v15, %v1753_v19 }
  0x4c   : > { %v1030_v50 = vadd.f32 %v1029_v6, %v1028_v12  ;;  %v979_v58 = vadd.f32 %v978_v23, %v977_v60  ;;  %v1806_v28 = vadd.f32 %v714_v49, %v694_v8  ;;  %v783_v24 = vmul.f32 %v1519_v22, %v1688_v3 }
  0x4d   : > { %v1031_v0 = vsel %vm952_vm2, %v1011_v41, 0.0  ;;  %v942_v1 = vadd.f32 %v926_v42, %v906_v55  ;;  %v715_v2 = vmul.f32 %v1509_v16, %v637_v52  ;;  %v855_v4 = vmul.f32 %v1539_v34, %v538_v43 }
  0x4e   : > { %v799_v36 = vadd.f32 %v783_v24, %v763_v53  ;;  %v539_v44 = vrot.slane %v1801_v47, 7  ;;  %v600_v5 = vrot.slane %v1801_v47, 1  ;;  %v601_v7 = vrot.slane %v1804_v18, 1 }
  0x4f   : > { %959 = vst.msk [vmem:[%s1695_s20 + $0x30] sm:$0xff] %vm952_vm2, %v942_v1  ;;  %v1012_v51 = vmul.f32 %v942_v1, %v942_v1  ;;  %v695_v9 = vadd.f32 %v679_v63, %v659_v62  ;;  %v749_v3 = vmul.f32 %v1511_v17, %v538_v43  ;;  %v891_v10 = vmul.f32 %v1526_v26, %v1753_v19  ;;  %v1850_v62 = vld [vmem:[%s1491_s17 + $0x60] sm:$0xff] }
  0x50   : > { %v980_v37 = vsel %vm952_vm2, %v942_v1, 0.0  ;;  %v835_v38 = vadd.f32 %v819_v21, %v799_v36  ;;  %v577_v54 = vsel %vm520_vm0, 0.0, %v539_v44  ;;  %v602_v20 = vsel %vm581_vm1, %v600_v5, %v601_v7 }
  0x51   : > { %v1032_v11 = vadd.f32 %v1031_v0, %v1030_v50  ;;  %v821_v56 = vmul.f32 %v1535_v32, %v637_v52  ;;  %v660_v40 = vmul.f32 %v1505_v14, %v577_v54  ;;  %v680_v45 = vmul.f32 %v1507_v15, %v1801_v47 }
  0x52   : > { %v871_v25 = vadd.f32 %v855_v4, %v835_v38  ;;  %v927_v12 = vmul.f32 %v1544_v35, %v637_v52  ;;  %v764_v30 = vadd.f32 %v748_v61, %v1755_v59  ;;  %v784_v21 = vmul.f32 %v1519_v22, %v1750_v57 }
  0x53   : > { %v981_v29 = vadd.f32 %v980_v37, %v979_v58  ;;  %v1033_v31 = vsel %vm952_vm2, %v1012_v51, 0.0  ;;  %v1833_v49 = vadd.f32 %v715_v2, %v695_v9  ;;  %v716_v33 = vmul.f32 %v1509_v16, %v602_v20  ;;  %v1861_v2 = vld [vmem:[%s1491_s17 + $0x68] sm:$0xff] }
  0x54   : > { %v907_v13 = vadd.f32 %v891_v10, %v871_v25  ;;  %v800_v60 = vadd.f32 %v784_v21, %v764_v30  ;;  %v856_v6 = vmul.f32 %v1539_v34, %v577_v54  ;;  %v540_v8 = vrot.slane %v1804_v18, 7 }
  0x55   : > { %v696_v48 = vadd.f32 %v680_v45, %v660_v40  ;;  %v892_v59 = vmul.f32 %v1526_v26, %v1801_v47  ;;  %v638_v57 = vsel %vm581_vm1, %v601_v7, 0.0  ;;  %v765_v23 = vadd.f32 %v749_v3, %v1779_v27 }
  0x56   : > { %v943_v41 = vadd.f32 %v927_v12, %v907_v13  ;;  %v836_v39 = vadd.f32 %v820_v46, %v800_v60  ;;  %v541_v42 = vsel %vm520_vm0, %v539_v44, %v540_v8  ;;  %v681_v61 = vmul.f32 %v1507_v15, %v1804_v18 }
  0x57   : > { %v1034_v43 = vadd.f32 %v1033_v31, %v1032_v11  ;;  %v750_v52 = vmul.f32 %v1511_v17, %v577_v54  ;;  %v661_v53 = vmul.f32 %v1505_v14, %v541_v42  ;;  %v785_v55 = vmul.f32 %v1519_v22, %v1753_v19 }
  0x58   : > { %960 = vst.msk [vmem:[%s1695_s20 + $0x38] sm:$0xff] %vm952_vm2, %v943_v41  ;;  %v1013_v27 = vmul.f32 %v943_v41, %v943_v41  ;;  %v822_v46 = vmul.f32 %v1535_v32, %v602_v20  ;;  %v872_v63 = vadd.f32 %v856_v6, %v836_v39  ;;  %v928_v50 = vmul.f32 %v1544_v35, %v602_v20 }
  0x59   : > { %v1856_v58 = vadd.f32 %v716_v33, %v696_v48  ;;  %v717_v24 = vmul.f32 %v1509_v16, %v638_v57  ;;  %v801_v0 = vadd.f32 %v785_v55, %v765_v23  ;;  %v857_v1 = vmul.f32 %v1539_v34, %v541_v42 }
  0x5a   : > { %v982_v19 = vsel %vm952_vm2, %v943_v41, 0.0  ;;  %v908_v4 = vadd.f32 %v892_v59, %v872_v63  ;;  %v697_v36 = vadd.f32 %v681_v61, %v661_v53  ;;  %v542_v44 = vrot.slane %v1850_v62, 7 }
  0x5b   : > { %v1035_v5 = vsel %vm952_vm2, %v1013_v27, 0.0  ;;  %v837_v7 = vadd.f32 %v821_v56, %v801_v0  ;;  %v893_v51 = vmul.f32 %v1526_v26, %v1804_v18  ;;  %v603_v9 = vrot.slane %v1850_v62, 1  ;;  %v1907_v0 = vld [vmem:[%s1491_s17 + $0x70] sm:$0xff] }
  0x5c   : > { %v944_v3 = vadd.f32 %v928_v50, %v908_v4  ;;  %v929_v10 = vmul.f32 %v1544_v35, %v638_v57  ;;  %v578_v37 = vsel %vm520_vm0, 0.0, %v542_v44  ;;  %v604_v38 = vrot.slane %v1861_v2, 1 }
  0x5d   : > { %v873_v54 = vadd.f32 %v857_v1, %v837_v7  ;;  %v662_v20 = vmul.f32 %v1505_v14, %v578_v37  ;;  %v682_v11 = vmul.f32 %v1507_v15, %v1850_v62  ;;  %v766_v56 = vadd.f32 %v750_v52, %v1806_v28  ;;  %v1918_v7 = vld [vmem:[%s1491_s17 + $0x78] sm:$0xff]  ;;  %s444_s17 = scalar_lea.vmem %s2020_s2, %s1281_s11 }
  0x5e   : > { %961 = vst.msk [vmem:[%s1695_s20 + $0x40] sm:$0xff] %vm952_vm2, %v944_v3  ;;  %v1014_v40 = vmul.f32 %v944_v3, %v944_v3  ;;  %v751_v45 = vmul.f32 %v1511_v17, %v541_v42  ;;  %v605_v25 = vsel %vm581_vm1, %v603_v9, %v604_v38  ;;  %v786_v12 = vmul.f32 %v1519_v22, %v1801_v47 }
  0x5f   : > { %v983_v30 = vadd.f32 %v982_v19, %v981_v29  ;;  %v1036_v21 = vadd.f32 %v1035_v5, %v1034_v43  ;;  %v823_v31 = vmul.f32 %v1535_v32, %v638_v57  ;;  %v909_v33 = vadd.f32 %v893_v51, %v873_v54 }
  0x60   : > { %v984_v13 = vsel %vm952_vm2, %v944_v3, 0.0  ;;  %v1884_v60 = vadd.f32 %v717_v24, %v697_v36  ;;  %v802_v28 = vadd.f32 %v786_v12, %v766_v56  ;;  %v858_v6 = vmul.f32 %v1539_v34, %v578_v37 }
  0x61   : > { %v945_v8 = vadd.f32 %v929_v10, %v909_v33  ;;  %v698_v48 = vadd.f32 %v682_v11, %v662_v20  ;;  %v718_v59 = vmul.f32 %v1509_v16, %v605_v25  ;;  %v752_v47 = vmul.f32 %v1511_v17, %v578_v37 }
  0x62   : > { %v1037_v29 = vsel %vm952_vm2, %v1014_v40, 0.0  ;;  %v838_v23 = vadd.f32 %v822_v46, %v802_v28  ;;  %v894_v57 = vmul.f32 %v1526_v26, %v1850_v62  ;;  %v543_v41 = vrot.slane %v1861_v2, 7 }
  0x63   : > { %v985_v39 = vadd.f32 %v984_v13, %v983_v30  ;;  %962 = vst.msk [vmem:[%s1695_s20 + $0x48] sm:$0xff] %vm952_vm2, %v945_v8  ;;  %v1015_v42 = vmul.f32 %v945_v8, %v945_v8  ;;  %v639_v61 = vsel %vm581_vm1, %v604_v38, 0.0  ;;  %v683_v43 = vmul.f32 %v1507_v15, %v1861_v2 }
  0x64   : > { %v874_v52 = vadd.f32 %v858_v6, %v838_v23  ;;  %v930_v53 = vmul.f32 %v1544_v35, %v605_v25  ;;  %v544_v55 = vsel %vm520_vm0, %v542_v44, %v543_v41  ;;  %v767_v27 = vadd.f32 %v751_v45, %v1833_v49 }
  0x65   : > { %v1038_v46 = vadd.f32 %v1037_v29, %v1036_v21  ;;  %v824_v63 = vmul.f32 %v1535_v32, %v605_v25  ;;  %v663_v50 = vmul.f32 %v1505_v14, %v544_v55  ;;  %v787_v24 = vmul.f32 %v1519_v22, %v1804_v18 }
  0x66   : > { %v986_v15 = vsel %vm952_vm2, %v945_v8, 0.0  ;;  %v1910_v1 = vadd.f32 %v718_v59, %v698_v48  ;;  %v910_v19 = vadd.f32 %v894_v57, %v874_v52  ;;  %v719_v49 = vmul.f32 %v1509_v16, %v639_v61  ;;  %v1350_v52 = vld [vmem:[%s444_s17 + $0x8] sm:%s1346_s21] }
  0x67   : > { %v1039_v4 = vsel %vm952_vm2, %v1015_v42, 0.0  ;;  %v699_v36 = vadd.f32 %v683_v43, %v663_v50  ;;  %v803_v44 = vadd.f32 %v787_v24, %v767_v27  ;;  %v859_v14 = vmul.f32 %v1539_v34, %v544_v55  ;;  %v1347_v42 = vld [vmem:[%s444_s17] sm:%s1346_s21] }
  0x68   : > { %v946_v5 = vadd.f32 %v930_v53, %v910_v19  ;;  %v895_v18 = vmul.f32 %v1526_v26, %v1861_v2  ;;  %v545_v51 = vrot.slane %v1907_v0, 7  ;;  %v606_v9 = vrot.slane %v1907_v0, 1 }
  0x69   : > { %v839_v16 = vadd.f32 %v823_v31, %v803_v44  ;;  %v607_v3 = vrot.slane %v1918_v7, 1  ;;  %v768_v10 = vadd.f32 %v752_v47, %v1856_v58  ;;  %v788_v37 = vmul.f32 %v1519_v22, %v1850_v62 }
  0x6a   : > { %v987_v38 = vadd.f32 %v986_v15, %v985_v39  ;;  %v1040_v54 = vadd.f32 %v1039_v4, %v1038_v46  ;;  %963 = vst.msk [vmem:[%s1695_s20 + $0x50] sm:$0xff] %vm952_vm2, %v946_v5  ;;  %v753_v20 = vmul.f32 %v1511_v17, %v544_v55  ;;  %v931_v11 = vmul.f32 %v1544_v35, %v639_v61 }
  0x6b   : > { %v988_v56 = vsel %vm952_vm2, %v946_v5, 0.0  ;;  %v875_v40 = vadd.f32 %v859_v14, %v839_v16  ;;  %v579_v45 = vsel %vm520_vm0, 0.0, %v545_v51  ;;  %v804_v25 = vadd.f32 %v788_v37, %v768_v10 }
  0x6c   : > { %v1016_v58 = vmul.f32 %v946_v5, %v946_v5  ;;  %v735_v62 = vadd.f32 %v719_v49, %v699_v36  ;;  %v825_v12 = vmul.f32 %v1535_v32, %v639_v61  ;;  %v860_v30 = vmul.f32 %v1539_v34, %v579_v45 }
  0x6d   : > { %v911_v21 = vadd.f32 %v895_v18, %v875_v40  ;;  %v608_v31 = vsel %vm581_vm1, %v606_v9, %v607_v3  ;;  %v840_v33 = vadd.f32 %v824_v63, %v804_v25  ;;  %v896_v13 = vmul.f32 %v1526_v26, %v1907_v0 }
  0x6e   : > { %v989_v28 = vadd.f32 %v988_v56, %v987_v38  ;;  %v546_v6 = vrot.slane %v1918_v7, 7  ;;  %v769_v8 = vadd.f32 %v753_v20, %v1884_v60  ;;  %v789_v48 = vmul.f32 %v1519_v22, %v1861_v2 }
  0x6f   : > { %v947_v59 = vadd.f32 %v931_v11, %v911_v21  ;;  %v754_v47 = vmul.f32 %v1511_v17, %v579_v45  ;;  %v876_v29 = vadd.f32 %v860_v30, %v840_v33  ;;  %v932_v23 = vmul.f32 %v1544_v35, %v608_v31 }
  0x70   : > { %v1041_v57 = vsel %vm952_vm2, %v1016_v58, 0.0  ;;  %v826_v41 = vmul.f32 %v1535_v32, %v608_v31  ;;  %v805_v39 = vadd.f32 %v789_v48, %v769_v8  ;;  %v547_v60 = vsel %vm520_vm0, %v545_v51, %v546_v6 }
  0x71   : > { %964 = vst.msk [vmem:[%s1695_s20 + $0x58] sm:$0xff] %vm952_vm2, %v947_v59  ;;  %v912_v61 = vadd.f32 %v896_v13, %v876_v29  ;;  %v640_v2 = vsel %vm581_vm1, %v607_v3, 0.0  ;;  %v897_v43 = vmul.f32 %v1526_v26, %v1918_v7  ;;  %v1017_v53 = vmul.f32 %v947_v59, %v947_v59 }
  0x72   : > { %v841_v55 = vadd.f32 %v825_v12, %v805_v39  ;;  %v861_v27 = vmul.f32 %v1539_v34, %v547_v60  ;;  %v1042_v46 = vadd.f32 %v1041_v57, %v1040_v54  ;;  %v933_v50 = vmul.f32 %v1544_v35, %v640_v2 }
  0x73   : > { %v948_v63 = vadd.f32 %v932_v23, %v912_v61  ;;  %v548_v24 = vrot.slane %v1347_v42, 7  ;;  %v990_v15 = vsel %vm952_vm2, %v947_v59, 0.0  ;;  %v755_v19 = vmul.f32 %v1511_v17, %v547_v60 }
  0x74   : > { %v877_v49 = vadd.f32 %v861_v27, %v841_v55  ;;  %v549_v4 = vrot.slane %v1350_v52, 7  ;;  %v609_v44 = vrot.slane %v1347_v42, 1  ;;  %v610_v14 = vrot.slane %v1350_v52, 1 }
  0x75   : > { %965 = vst.msk [vmem:[%s1695_s20 + $0x60] sm:$0xff] %vm952_vm2, %v948_v63  ;;  %v580_v36 = vsel %vm520_vm0, 0.0, %v548_v24  ;;  %v770_v5 = vadd.f32 %v754_v47, %v1910_v1  ;;  %v1043_v18 = vsel %vm952_vm2, %v1017_v53, 0.0  ;;  %v1018_v51 = vmul.f32 %v948_v63, %v948_v63 }
  0x76   : > { %v913_v9 = vadd.f32 %v897_v43, %v877_v49  ;;  %v790_v16 = vmul.f32 %v1519_v22, %v1907_v0  ;;  %v991_v3 = vadd.f32 %v990_v15, %v989_v28  ;;  %v992_v17 = vsel %vm952_vm2, %v948_v63, 0.0 }
  0x77   : > { %v827_v10 = vmul.f32 %v1535_v32, %v640_v2  ;;  %v862_v54 = vmul.f32 %v1539_v34, %v580_v36  ;;  %v550_v20 = vsel %vm520_vm0, %v548_v24, %v549_v4  ;;  %v1044_v1 = vadd.f32 %v1043_v18, %v1042_v46 }
  0x78   : > { %v949_v37 = vadd.f32 %v933_v50, %v913_v9  ;;  %v806_v38 = vadd.f32 %v790_v16, %v770_v5  ;;  %v611_v11 = vsel %vm581_vm1, %v609_v44, %v610_v14  ;;  %v771_v56 = vadd.f32 %v755_v19, %v735_v62 }
  0x79   : > { %v791_v40 = vmul.f32 %v1519_v22, %v1918_v7  ;;  %v1045_v0 = vsel %vm952_vm2, %v1018_v51, 0.0  ;;  %v898_v32 = vmul.f32 %v1347_v42, %v1526_v26  ;;  %v993_v58 = vadd.f32 %v992_v17, %v991_v3 }
  0x7a   : > { %966 = vst.msk [vmem:[%s1695_s20 + $0x68] sm:$0xff] %vm952_vm2, %v949_v37  ;;  %v1019_v45 = vmul.f32 %v949_v37, %v949_v37  ;;  %v842_v25 = vadd.f32 %v826_v41, %v806_v38  ;;  %v863_v30 = vmul.f32 %v1539_v34, %v550_v20  ;;  %v994_v21 = vsel %vm952_vm2, %v949_v37, 0.0 }
  0x7b   : > { %v807_v12 = vadd.f32 %v791_v40, %v771_v56  ;;  %v934_v62 = vmul.f32 %v1544_v35, %v611_v11  ;;  %v641_v22 = vsel %vm581_vm1, %v610_v14, 0.0  ;;  %v1046_v7 = vadd.f32 %v1045_v0, %v1044_v1 }
  0x7c   : > { %v878_v31 = vadd.f32 %v862_v54, %v842_v25  ;;  %v899_v13 = vmul.f32 %v1350_v52, %v1526_v26  ;;  %v1047_v28 = vsel %vm952_vm2, %v1019_v45, 0.0  ;;  %v995_v8 = vadd.f32 %v994_v21, %v993_v58 }
  0x7d   : > { %v843_v33 = vadd.f32 %v827_v10, %v807_v12  ;;  %v935_v34 = vmul.f32 %v1544_v35, %v641_v22  ;;  %v1048_v47 = vadd.f32 %v1047_v28, %v1046_v7 }
  0x7e   : > { %v914_v6 = vadd.f32 %v898_v32, %v878_v31 }
  0x7f   : > { %v879_v48 = vadd.f32 %v863_v30, %v843_v33 }
  0x80   : > { %v950_v59 = vadd.f32 %v934_v62, %v914_v6 }
  0x81   : > { %v915_v29 = vadd.f32 %v899_v13, %v879_v48 }
  0x82   : > { %967 = vst.msk [vmem:[%s1695_s20 + $0x70] sm:$0xff] %vm952_vm2, %v950_v59  ;;  %v996_v23 = vsel %vm952_vm2, %v950_v59, 0.0  ;;  %v1020_v57 = vmul.f32 %v950_v59, %v950_v59 }
  0x83   : > { %v997_v26 = vadd.f32 %v996_v23, %v995_v8  ;;  %v951_v41 = vadd.f32 %v935_v34, %v915_v29 }
  0x84   : > { %v1049_v39 = vsel %vm952_vm2, %v1020_v57, 0.0 }
  0x85   : > { %v1050_v42 = vadd.f32 %v1049_v39, %v1048_v47  ;;  %968 = vst.msk [vmem:[%s1695_s20 + $0x78] sm:$0xff] %vm952_vm2, %v951_v41  ;;  %v998_v61 = vsel %vm952_vm2, %v951_v41, 0.0  ;;  %v1021_v35 = vmul.f32 %v951_v41, %v951_v41 }
  0x86   : > { %v999_v60 = vadd.f32 %v998_v61, %v997_v26 }
  0x87   : > { %v1051_v2 = vsel %vm952_vm2, %v1021_v35, 0.0 }
  0x88   : > { %v1000_v43 = vrot.slane %v999_v60, 4  ;;  %v1052_v52 = vadd.f32 %v1051_v2, %v1050_v42 }
  0x8a   : > { %v1001_v53 = vadd.f32 %v1000_v43, %v999_v60  ;;  %v1053_v55 = vrot.slane %v1052_v52, 4 }
  0x8c   : > { %v1002_v27 = vrot.slane %v1001_v53, 2  ;;  %v1054_v46 = vadd.f32 %v1053_v55, %v1052_v52 }
  0x8e   : > { %v1003_v63 = vadd.f32 %v1002_v27, %v1001_v53  ;;  %v1055_v50 = vrot.slane %v1054_v46, 2 }
  0x90   : > { %v1004_v24 = vrot.slane %v1003_v63, 1  ;;  %v1056_v15 = vadd.f32 %v1055_v50, %v1054_v46 }
  0x92   : > { %v1005_v19 = vadd.f32 %v1004_v24, %v1003_v63  ;;  %v1057_v49 = vrot.slane %v1056_v15, 1 }
  0x94   : > { %v1058_v4 = vadd.f32 %v1057_v49, %v1056_v15 }
  0x96   : > { %v1059_v36 = vsel %vm520_vm0, %v1005_v19, %v1058_v4 }
  0x97   : > { %1061 = vst.msk [vmem:[%s467_s12] sm:$0x3] %vm1060_vm3, %v1059_v36 }
  0x98 PF: > { %s18_s28 = sadd.s32 1, %s1389_s28   ;;  %s2027_s24 = smov %s1381_s26 }
  0x99   : > { %p15_p13 = scmp.ge.s32.totalorder %s18_s28, 6   ;;  %s2028_s25 = smov %s1385_s27 }
  0x9a   : > { %s2029_s26 = smov %s2032_s4  ;;  %s2030_s27 = smov %s2036_s5 }
  0x9b   :  { %17 = sbr.rel (!%p15_p13) target bundleno = 3 (0x3), region = 92 }

// kernel: up_dsc_forward.9
= control target key start
LH: loop header
LB: loop body
LE: loop exit
PB: predicated region body
PF: predicated region fallthrough
CT: control target
= control target key end

     0   :  { %vm284_vm0 = vcmask 31744   ;;  %s961_s0 = inlined_call_operand.vmem [shape: f32[512,4], index: 0, kind: input, shape index: {}]   ;;  %s962_s1 = inlined_call_operand.vmem [shape: f32[1,4], index: 1, kind: input, shape index: {}]   ;;  %s963_s2 = inlined_call_operand.vmem [shape: f32[1,4], index: 2, kind: input, shape index: {}]   ;;  %s964_s3 = inlined_call_operand.vmem [shape: f32[512,4], index: 3, kind: output, shape index: {}]  }
   0x1   :  { %v14_v0 = vld [vmem:[%s961_s0] sm:$0xff]  ;;  %v15_v4 = vld [vmem:[%s961_s0 + $0x8] sm:$0xff]  ;;  %v16_v5 = vld [vmem:[%s961_s0 + $0x10] sm:$0xff] }
   0x2   :  { %v381_v1 = vld [vmem:[%s962_s1] ss:$0 sm:$0xff]  ;;  %v17_v6 = vld [vmem:[%s961_s0 + $0x18] sm:$0xff]  ;;  %v19_v11 = vld [vmem:[%s961_s0 + $0x28] sm:$0xff] }
   0x3   :  { %v386_v2 = vld [vmem:[%s963_s2] ss:$0 sm:$0xff]  ;;  %v85_v3 = vmul.f32 %v381_v1, %v14_v0  ;;  %v86_v7 = vmul.f32 %v381_v1, %v15_v4  ;;  %v87_v8 = vmul.f32 %v381_v1, %v16_v5  ;;  %v88_v9 = vmul.f32 %v381_v1, %v17_v6  ;;  %v20_v12 = vld [vmem:[%s961_s0 + $0x30] sm:$0xff]  ;;  %v21_v17 = vld [vmem:[%s961_s0 + $0x38] sm:$0xff] }
   0x4   :  { %v18_v10 = vld [vmem:[%s961_s0 + $0x20] sm:$0xff]  ;;  %v90_v15 = vmul.f32 %v381_v1, %v19_v11  ;;  %v91_v16 = vmul.f32 %v381_v1, %v20_v12  ;;  %v92_v21 = vmul.f32 %v381_v1, %v21_v17  ;;  %v23_v27 = vld [vmem:[%s961_s0 + $0x48] sm:$0xff]  ;;  %v24_v28 = vld [vmem:[%s961_s0 + $0x50] sm:$0xff] }
   0x5   :  { %v156_v13 = vadd.f32 %v386_v2, %v85_v3  ;;  %v89_v14 = vmul.f32 %v381_v1, %v18_v10  ;;  %v157_v18 = vadd.f32 %v386_v2, %v86_v7  ;;  %v158_v19 = vadd.f32 %v386_v2, %v87_v8  ;;  %v22_v22 = vld [vmem:[%s961_s0 + $0x40] sm:$0xff]  ;;  %v25_v29 = vld [vmem:[%s961_s0 + $0x58] sm:$0xff]  ;;  %v27_v35 = vld [vmem:[%s961_s0 + $0x68] sm:$0xff] }
   0x6   :  { %v159_v20 = vadd.f32 %v386_v2, %v88_v9  ;;  %v161_v25 = vadd.f32 %v386_v2, %v90_v15  ;;  %v162_v26 = vadd.f32 %v386_v2, %v91_v16  ;;  %v163_v33 = vadd.f32 %v386_v2, %v92_v21  ;;  %v26_v34 = vld [vmem:[%s961_s0 + $0x60] sm:$0xff]  ;;  %v28_v36 = vld [vmem:[%s961_s0 + $0x70] sm:$0xff]  ;;  %v29_v41 = vld [vmem:[%s961_s0 + $0x78] sm:$0xff] }
   0x7   :  { %v220_v23 = vmax.f32 %v156_v13, 0.0  ;;  %v160_v24 = vadd.f32 %v386_v2, %v89_v14  ;;  %v221_v30 = vmax.f32 %v157_v18, 0.0  ;;  %v222_v31 = vmax.f32 %v158_v19, 0.0  ;;  %v30_v54 = vld [vmem:[%s961_s0 + $0x80] sm:$0xff]  ;;  %v31_v59 = vld [vmem:[%s961_s0 + $0x88] sm:$0xff]  ;;  %v32_v60 = vld [vmem:[%s961_s0 + $0x90] sm:$0xff] }
   0x8   :  { %v223_v32 = vmax.f32 %v159_v20, 0.0  ;;  %v225_v38 = vmax.f32 %v161_v25, 0.0  ;;  %v226_v39 = vmax.f32 %v162_v26, 0.0  ;;  %v93_v40 = vmul.f32 %v381_v1, %v22_v22  ;;  %v33_v61 = vld [vmem:[%s961_s0 + $0x98] sm:$0xff]  ;;  %v34_v4 = vld [vmem:[%s961_s0 + $0xa0] sm:$0xff]  ;;  %v35_v5 = vld [vmem:[%s961_s0 + $0xa8] sm:$0xff] }
   0x9   :  { %285 = vst.msk [vmem:[%s964_s3] sm:$0xff] %vm284_vm0, %v220_v23  ;;  %v224_v37 = vmax.f32 %v160_v24, 0.0  ;;  %286 = vst.msk [vmem:[%s964_s3 + $0x8] sm:$0xff] %vm284_vm0, %v221_v30  ;;  %v227_v42 = vmax.f32 %v163_v33, 0.0  ;;  %v94_v43 = vmul.f32 %v381_v1, %v23_v27  ;;  %v95_v44 = vmul.f32 %v381_v1, %v24_v28  ;;  %v36_v6 = vld [vmem:[%s961_s0 + $0xb0] sm:$0xff]  ;;  %v37_v11 = vld [vmem:[%s961_s0 + $0xb8] sm:$0xff] }
   0xa   :  { %287 = vst.msk [vmem:[%s964_s3 + $0x10] sm:$0xff] %vm284_vm0, %v222_v31  ;;  %288 = vst.msk [vmem:[%s964_s3 + $0x18] sm:$0xff] %vm284_vm0, %v223_v32  ;;  %v96_v45 = vmul.f32 %v381_v1, %v25_v29  ;;  %v164_v46 = vadd.f32 %v386_v2, %v93_v40  ;;  %v97_v47 = vmul.f32 %v381_v1, %v26_v34  ;;  %v38_v24 = vld [vmem:[%s961_s0 + $0xc0] sm:$0xff]  ;;  %v39_v29 = vld [vmem:[%s961_s0 + $0xc8] sm:$0xff] }
   0xb   :  { %289 = vst.msk [vmem:[%s964_s3 + $0x20] sm:$0xff] %vm284_vm0, %v224_v37  ;;  %290 = vst.msk [vmem:[%s964_s3 + $0x28] sm:$0xff] %vm284_vm0, %v225_v38  ;;  %v98_v48 = vmul.f32 %v381_v1, %v27_v35  ;;  %v99_v49 = vmul.f32 %v381_v1, %v28_v36  ;;  %v165_v50 = vadd.f32 %v386_v2, %v94_v43  ;;  %v40_v30 = vld [vmem:[%s961_s0 + $0xd0] sm:$0xff]  ;;  %v41_v31 = vld [vmem:[%s961_s0 + $0xd8] sm:$0xff] }
   0xc   :  { %291 = vst.msk [vmem:[%s964_s3 + $0x30] sm:$0xff] %vm284_vm0, %v226_v39  ;;  %292 = vst.msk [vmem:[%s964_s3 + $0x38] sm:$0xff] %vm284_vm0, %v227_v42  ;;  %v166_v51 = vadd.f32 %v386_v2, %v95_v44  ;;  %v167_v52 = vadd.f32 %v386_v2, %v96_v45  ;;  %v100_v53 = vmul.f32 %v381_v1, %v29_v41  ;;  %v228_v55 = vmax.f32 %v164_v46, 0.0  ;;  %v42_v36 = vld [vmem:[%s961_s0 + $0xe0] sm:$0xff]  ;;  %v43_v37 = vld [vmem:[%s961_s0 + $0xe8] sm:$0xff] }
   0xd   :  { %v168_v56 = vadd.f32 %v386_v2, %v97_v47  ;;  %v169_v57 = vadd.f32 %v386_v2, %v98_v48  ;;  %v170_v58 = vadd.f32 %v386_v2, %v99_v49  ;;  %v229_v62 = vmax.f32 %v165_v50, 0.0  ;;  %v44_v38 = vld [vmem:[%s961_s0 + $0xf0] sm:$0xff]  ;;  %v45_v43 = vld [vmem:[%s961_s0 + $0xf8] sm:$0xff] }
   0xe   :  { %v230_v63 = vmax.f32 %v166_v51, 0.0  ;;  %v231_v0 = vmax.f32 %v167_v52, 0.0  ;;  %v171_v3 = vadd.f32 %v386_v2, %v100_v53  ;;  %293 = vst.msk [vmem:[%s964_s3 + $0x40] sm:$0xff] %vm284_vm0, %v228_v55  ;;  %v101_v10 = vmul.f32 %v381_v1, %v30_v54 }
   0xf   :  { %v232_v7 = vmax.f32 %v168_v56, 0.0  ;;  %v233_v8 = vmax.f32 %v169_v57, 0.0  ;;  %v234_v9 = vmax.f32 %v170_v58, 0.0  ;;  %294 = vst.msk [vmem:[%s964_s3 + $0x48] sm:$0xff] %vm284_vm0, %v229_v62  ;;  %v102_v13 = vmul.f32 %v381_v1, %v31_v59  ;;  %v46_v56 = vld [vmem:[%s961_s0 + $0x100] sm:$0xff]  ;;  %v48_v62 = vld [vmem:[%s961_s0 + $0x110] sm:$0xff] }
  0x10   :  { %295 = vst.msk [vmem:[%s964_s3 + $0x50] sm:$0xff] %vm284_vm0, %v230_v63  ;;  %296 = vst.msk [vmem:[%s964_s3 + $0x58] sm:$0xff] %vm284_vm0, %v231_v0  ;;  %v235_v12 = vmax.f32 %v171_v3, 0.0  ;;  %v103_v14 = vmul.f32 %v381_v1, %v32_v60  ;;  %v104_v15 = vmul.f32 %v381_v1, %v33_v61  ;;  %v172_v16 = vadd.f32 %v386_v2, %v101_v10  ;;  %v47_v61 = vld [vmem:[%s961_s0 + $0x108] sm:$0xff]  ;;  %v49_v63 = vld [vmem:[%s961_s0 + $0x118] sm:$0xff] }
  0x11   :  { %297 = vst.msk [vmem:[%s964_s3 + $0x60] sm:$0xff] %vm284_vm0, %v232_v7  ;;  %298 = vst.msk [vmem:[%s964_s3 + $0x68] sm:$0xff] %vm284_vm0, %v233_v8  ;;  %v105_v17 = vmul.f32 %v381_v1, %v34_v4  ;;  %v106_v18 = vmul.f32 %v381_v1, %v35_v5  ;;  %v107_v19 = vmul.f32 %v381_v1, %v36_v6  ;;  %v50_v6 = vld [vmem:[%s961_s0 + $0x120] sm:$0xff]  ;;  %v51_v7 = vld [vmem:[%s961_s0 + $0x128] sm:$0xff] }
  0x12   :  { %299 = vst.msk [vmem:[%s964_s3 + $0x70] sm:$0xff] %vm284_vm0, %v234_v9  ;;  %300 = vst.msk [vmem:[%s964_s3 + $0x78] sm:$0xff] %vm284_vm0, %v235_v12  ;;  %v173_v20 = vadd.f32 %v386_v2, %v102_v13  ;;  %v174_v21 = vadd.f32 %v386_v2, %v103_v14  ;;  %v175_v22 = vadd.f32 %v386_v2, %v104_v15  ;;  %v236_v25 = vmax.f32 %v172_v16, 0.0  ;;  %v52_v8 = vld [vmem:[%s961_s0 + $0x130] sm:$0xff]  ;;  %v53_v13 = vld [vmem:[%s961_s0 + $0x138] sm:$0xff] }
  0x13   :  { %v108_v23 = vmul.f32 %v381_v1, %v37_v11  ;;  %v176_v26 = vadd.f32 %v386_v2, %v105_v17  ;;  %v177_v27 = vadd.f32 %v386_v2, %v106_v18  ;;  %v178_v28 = vadd.f32 %v386_v2, %v107_v19 }
  0x14   :  { %v237_v32 = vmax.f32 %v173_v20, 0.0  ;;  %v238_v33 = vmax.f32 %v174_v21, 0.0  ;;  %v239_v34 = vmax.f32 %v175_v22, 0.0  ;;  %301 = vst.msk [vmem:[%s964_s3 + $0x80] sm:$0xff] %vm284_vm0, %v236_v25  ;;  %v109_v42 = vmul.f32 %v381_v1, %v38_v24 }
  0x15   :  { %v179_v35 = vadd.f32 %v386_v2, %v108_v23  ;;  %v240_v39 = vmax.f32 %v176_v26, 0.0  ;;  %v241_v40 = vmax.f32 %v177_v27, 0.0  ;;  %v242_v41 = vmax.f32 %v178_v28, 0.0  ;;  %v54_v26 = vld [vmem:[%s961_s0 + $0x140] sm:$0xff] }
  0x16   :  { %302 = vst.msk [vmem:[%s964_s3 + $0x88] sm:$0xff] %vm284_vm0, %v237_v32  ;;  %303 = vst.msk [vmem:[%s964_s3 + $0x90] sm:$0xff] %vm284_vm0, %v238_v33  ;;  %v110_v45 = vmul.f32 %v381_v1, %v39_v29  ;;  %v111_v46 = vmul.f32 %v381_v1, %v40_v30  ;;  %v112_v47 = vmul.f32 %v381_v1, %v41_v31  ;;  %v55_v31 = vld [vmem:[%s961_s0 + $0x148] sm:$0xff]  ;;  %v56_v32 = vld [vmem:[%s961_s0 + $0x150] sm:$0xff] }
  0x17   :  { %304 = vst.msk [vmem:[%s964_s3 + $0x98] sm:$0xff] %vm284_vm0, %v239_v34  ;;  %v243_v44 = vmax.f32 %v179_v35, 0.0  ;;  %305 = vst.msk [vmem:[%s964_s3 + $0xa0] sm:$0xff] %vm284_vm0, %v240_v39  ;;  %v180_v48 = vadd.f32 %v386_v2, %v109_v42  ;;  %v113_v49 = vmul.f32 %v381_v1, %v42_v36  ;;  %v114_v50 = vmul.f32 %v381_v1, %v43_v37  ;;  %v57_v33 = vld [vmem:[%s961_s0 + $0x158] sm:$0xff]  ;;  %v59_v39 = vld [vmem:[%s961_s0 + $0x168] sm:$0xff] }
  0x18   :  { %306 = vst.msk [vmem:[%s964_s3 + $0xa8] sm:$0xff] %vm284_vm0, %v241_v40  ;;  %307 = vst.msk [vmem:[%s964_s3 + $0xb0] sm:$0xff] %vm284_vm0, %v242_v41  ;;  %v115_v51 = vmul.f32 %v381_v1, %v44_v38  ;;  %v181_v52 = vadd.f32 %v386_v2, %v110_v45  ;;  %v182_v53 = vadd.f32 %v386_v2, %v111_v46  ;;  %v58_v38 = vld [vmem:[%s961_s0 + $0x160] sm:$0xff]  ;;  %v60_v40 = vld [vmem:[%s961_s0 + $0x170] sm:$0xff] }
  0x19   :  { %308 = vst.msk [vmem:[%s964_s3 + $0xb8] sm:$0xff] %vm284_vm0, %v243_v44  ;;  %v183_v54 = vadd.f32 %v386_v2, %v112_v47  ;;  %v116_v55 = vmul.f32 %v381_v1, %v45_v43  ;;  %v244_v57 = vmax.f32 %v180_v48, 0.0  ;;  %v184_v58 = vadd.f32 %v386_v2, %v113_v49  ;;  %v61_v45 = vld [vmem:[%s961_s0 + $0x178] sm:$0xff] }
  0x1a   :  { %v185_v59 = vadd.f32 %v386_v2, %v114_v50  ;;  %v186_v60 = vadd.f32 %v386_v2, %v115_v51  ;;  %v245_v0 = vmax.f32 %v181_v52, 0.0  ;;  %v246_v3 = vmax.f32 %v182_v53, 0.0 }
  0x1b   :  { %v247_v4 = vmax.f32 %v183_v54, 0.0  ;;  %v187_v5 = vadd.f32 %v386_v2, %v116_v55  ;;  %309 = vst.msk [vmem:[%s964_s3 + $0xc0] sm:$0xff] %vm284_vm0, %v244_v57  ;;  %v248_v9 = vmax.f32 %v184_v58, 0.0  ;;  %v117_v12 = vmul.f32 %v381_v1, %v46_v56  ;;  %v62_v58 = vld [vmem:[%s961_s0 + $0x180] sm:$0xff] }
  0x1c   :  { %v249_v10 = vmax.f32 %v185_v59, 0.0  ;;  %v250_v11 = vmax.f32 %v186_v60, 0.0  ;;  %310 = vst.msk [vmem:[%s964_s3 + $0xc8] sm:$0xff] %vm284_vm0, %v245_v0  ;;  %311 = vst.msk [vmem:[%s964_s3 + $0xd0] sm:$0xff] %vm284_vm0, %v246_v3  ;;  %v118_v15 = vmul.f32 %v381_v1, %v47_v61  ;;  %v119_v16 = vmul.f32 %v381_v1, %v48_v62  ;;  %v64_v0 = vld [vmem:[%s961_s0 + $0x190] sm:$0xff]  ;;  %v65_v3 = vld [vmem:[%s961_s0 + $0x198] sm:$0xff] }
  0x1d   :  { %312 = vst.msk [vmem:[%s964_s3 + $0xd8] sm:$0xff] %vm284_vm0, %v247_v4  ;;  %v251_v14 = vmax.f32 %v187_v5, 0.0  ;;  %v120_v17 = vmul.f32 %v381_v1, %v49_v63  ;;  %313 = vst.msk [vmem:[%s964_s3 + $0xe0] sm:$0xff] %vm284_vm0, %v248_v9  ;;  %v188_v18 = vadd.f32 %v386_v2, %v117_v12  ;;  %v121_v19 = vmul.f32 %v381_v1, %v50_v6  ;;  %v63_v63 = vld [vmem:[%s961_s0 + $0x188] sm:$0xff] }
  0x1e   :  { %314 = vst.msk [vmem:[%s964_s3 + $0xe8] sm:$0xff] %vm284_vm0, %v249_v10  ;;  %315 = vst.msk [vmem:[%s964_s3 + $0xf0] sm:$0xff] %vm284_vm0, %v250_v11  ;;  %v122_v20 = vmul.f32 %v381_v1, %v51_v7  ;;  %v123_v21 = vmul.f32 %v381_v1, %v52_v8  ;;  %v189_v22 = vadd.f32 %v386_v2, %v118_v15  ;;  %v66_v8 = vld [vmem:[%s961_s0 + $0x1a0] sm:$0xff]  ;;  %v67_v9 = vld [vmem:[%s961_s0 + $0x1a8] sm:$0xff] }
  0x1f   :  { %316 = vst.msk [vmem:[%s964_s3 + $0xf8] sm:$0xff] %vm284_vm0, %v251_v14  ;;  %v190_v23 = vadd.f32 %v386_v2, %v119_v16  ;;  %v191_v24 = vadd.f32 %v386_v2, %v120_v17  ;;  %v124_v25 = vmul.f32 %v381_v1, %v53_v13  ;;  %v252_v27 = vmax.f32 %v188_v18, 0.0  ;;  %v68_v10 = vld [vmem:[%s961_s0 + $0x1b0] sm:$0xff]  ;;  %v69_v15 = vld [vmem:[%s961_s0 + $0x1b8] sm:$0xff] }
  0x20   :  { %v192_v28 = vadd.f32 %v386_v2, %v121_v19  ;;  %v193_v29 = vadd.f32 %v386_v2, %v122_v20  ;;  %v194_v30 = vadd.f32 %v386_v2, %v123_v21  ;;  %v253_v34 = vmax.f32 %v189_v22, 0.0 }
  0x21   :  { %v254_v35 = vmax.f32 %v190_v23, 0.0  ;;  %v255_v36 = vmax.f32 %v191_v24, 0.0  ;;  %v195_v37 = vadd.f32 %v386_v2, %v124_v25  ;;  %317 = vst.msk [vmem:[%s964_s3 + $0x100] sm:$0xff] %vm284_vm0, %v252_v27  ;;  %v125_v44 = vmul.f32 %v381_v1, %v54_v26 }
  0x22   :  { %v256_v41 = vmax.f32 %v192_v28, 0.0  ;;  %v257_v42 = vmax.f32 %v193_v29, 0.0  ;;  %v258_v43 = vmax.f32 %v194_v30, 0.0  ;;  %318 = vst.msk [vmem:[%s964_s3 + $0x108] sm:$0xff] %vm284_vm0, %v253_v34  ;;  %v126_v47 = vmul.f32 %v381_v1, %v55_v31  ;;  %v70_v28 = vld [vmem:[%s961_s0 + $0x1c0] sm:$0xff]  ;;  %v72_v34 = vld [vmem:[%s961_s0 + $0x1d0] sm:$0xff] }
  0x23   :  { %319 = vst.msk [vmem:[%s964_s3 + $0x110] sm:$0xff] %vm284_vm0, %v254_v35  ;;  %320 = vst.msk [vmem:[%s964_s3 + $0x118] sm:$0xff] %vm284_vm0, %v255_v36  ;;  %v259_v46 = vmax.f32 %v195_v37, 0.0  ;;  %v127_v48 = vmul.f32 %v381_v1, %v56_v32  ;;  %v128_v49 = vmul.f32 %v381_v1, %v57_v33  ;;  %v196_v50 = vadd.f32 %v386_v2, %v125_v44  ;;  %v71_v33 = vld [vmem:[%s961_s0 + $0x1c8] sm:$0xff]  ;;  %v73_v35 = vld [vmem:[%s961_s0 + $0x1d8] sm:$0xff] }
  0x24   :  { %321 = vst.msk [vmem:[%s964_s3 + $0x120] sm:$0xff] %vm284_vm0, %v256_v41  ;;  %322 = vst.msk [vmem:[%s964_s3 + $0x128] sm:$0xff] %vm284_vm0, %v257_v42  ;;  %v129_v51 = vmul.f32 %v381_v1, %v58_v38  ;;  %v130_v52 = vmul.f32 %v381_v1, %v59_v39  ;;  %v131_v53 = vmul.f32 %v381_v1, %v60_v40  ;;  %v74_v40 = vld [vmem:[%s961_s0 + $0x1e0] sm:$0xff]  ;;  %v75_v41 = vld [vmem:[%s961_s0 + $0x1e8] sm:$0xff] }
  0x25   :  { %323 = vst.msk [vmem:[%s964_s3 + $0x130] sm:$0xff] %vm284_vm0, %v258_v43  ;;  %324 = vst.msk [vmem:[%s964_s3 + $0x138] sm:$0xff] %vm284_vm0, %v259_v46  ;;  %v197_v54 = vadd.f32 %v386_v2, %v126_v47  ;;  %v198_v55 = vadd.f32 %v386_v2, %v127_v48  ;;  %v199_v56 = vadd.f32 %v386_v2, %v128_v49  ;;  %v260_v59 = vmax.f32 %v196_v50, 0.0  ;;  %v76_v42 = vld [vmem:[%s961_s0 + $0x1f0] sm:$0xff]  ;;  %v77_v47 = vld [vmem:[%s961_s0 + $0x1f8] sm:$0xff] }
  0x26   :  { %v132_v57 = vmul.f32 %v381_v1, %v61_v45  ;;  %v200_v60 = vadd.f32 %v386_v2, %v129_v51  ;;  %v201_v61 = vadd.f32 %v386_v2, %v130_v52  ;;  %v202_v62 = vadd.f32 %v386_v2, %v131_v53 }
  0x27   :  { %v261_v4 = vmax.f32 %v197_v54, 0.0  ;;  %v262_v5 = vmax.f32 %v198_v55, 0.0  ;;  %v263_v6 = vmax.f32 %v199_v56, 0.0  ;;  %325 = vst.msk [vmem:[%s964_s3 + $0x140] sm:$0xff] %vm284_vm0, %v260_v59  ;;  %v133_v14 = vmul.f32 %v381_v1, %v62_v58 }
  0x28   :  { %v203_v7 = vadd.f32 %v386_v2, %v132_v57  ;;  %v264_v11 = vmax.f32 %v200_v60, 0.0  ;;  %v265_v12 = vmax.f32 %v201_v61, 0.0  ;;  %v266_v13 = vmax.f32 %v202_v62, 0.0 }
  0x29   :  { %326 = vst.msk [vmem:[%s964_s3 + $0x148] sm:$0xff] %vm284_vm0, %v261_v4  ;;  %327 = vst.msk [vmem:[%s964_s3 + $0x150] sm:$0xff] %vm284_vm0, %v262_v5  ;;  %v134_v17 = vmul.f32 %v381_v1, %v63_v63  ;;  %v135_v18 = vmul.f32 %v381_v1, %v64_v0  ;;  %v136_v19 = vmul.f32 %v381_v1, %v65_v3 }
  0x2a   :  { %328 = vst.msk [vmem:[%s964_s3 + $0x158] sm:$0xff] %vm284_vm0, %v263_v6  ;;  %v267_v16 = vmax.f32 %v203_v7, 0.0  ;;  %329 = vst.msk [vmem:[%s964_s3 + $0x160] sm:$0xff] %vm284_vm0, %v264_v11  ;;  %v204_v20 = vadd.f32 %v386_v2, %v133_v14  ;;  %v137_v21 = vmul.f32 %v381_v1, %v66_v8  ;;  %v138_v22 = vmul.f32 %v381_v1, %v67_v9 }
  0x2b   :  { %330 = vst.msk [vmem:[%s964_s3 + $0x168] sm:$0xff] %vm284_vm0, %v265_v12  ;;  %331 = vst.msk [vmem:[%s964_s3 + $0x170] sm:$0xff] %vm284_vm0, %v266_v13  ;;  %v139_v23 = vmul.f32 %v381_v1, %v68_v10  ;;  %v205_v24 = vadd.f32 %v386_v2, %v134_v17  ;;  %v206_v25 = vadd.f32 %v386_v2, %v135_v18 }
  0x2c   :  { %332 = vst.msk [vmem:[%s964_s3 + $0x178] sm:$0xff] %vm284_vm0, %v267_v16  ;;  %v207_v26 = vadd.f32 %v386_v2, %v136_v19  ;;  %v140_v27 = vmul.f32 %v381_v1, %v69_v15  ;;  %v268_v29 = vmax.f32 %v204_v20, 0.0  ;;  %v208_v30 = vadd.f32 %v386_v2, %v137_v21 }
  0x2d   :  { %v209_v31 = vadd.f32 %v386_v2, %v138_v22  ;;  %v210_v32 = vadd.f32 %v386_v2, %v139_v23  ;;  %v269_v36 = vmax.f32 %v205_v24, 0.0  ;;  %v270_v37 = vmax.f32 %v206_v25, 0.0 }
  0x2e   :  { %v271_v38 = vmax.f32 %v207_v26, 0.0  ;;  %v211_v39 = vadd.f32 %v386_v2, %v140_v27  ;;  %333 = vst.msk [vmem:[%s964_s3 + $0x180] sm:$0xff] %vm284_vm0, %v268_v29  ;;  %v272_v43 = vmax.f32 %v208_v30, 0.0  ;;  %v141_v46 = vmul.f32 %v381_v1, %v70_v28 }
  0x2f   :  { %v273_v44 = vmax.f32 %v209_v31, 0.0  ;;  %v274_v45 = vmax.f32 %v210_v32, 0.0  ;;  %334 = vst.msk [vmem:[%s964_s3 + $0x188] sm:$0xff] %vm284_vm0, %v269_v36  ;;  %335 = vst.msk [vmem:[%s964_s3 + $0x190] sm:$0xff] %vm284_vm0, %v270_v37  ;;  %v142_v49 = vmul.f32 %v381_v1, %v71_v33  ;;  %v143_v50 = vmul.f32 %v381_v1, %v72_v34 }
  0x30   :  { %336 = vst.msk [vmem:[%s964_s3 + $0x198] sm:$0xff] %vm284_vm0, %v271_v38  ;;  %v275_v48 = vmax.f32 %v211_v39, 0.0  ;;  %v144_v51 = vmul.f32 %v381_v1, %v73_v35  ;;  %337 = vst.msk [vmem:[%s964_s3 + $0x1a0] sm:$0xff] %vm284_vm0, %v272_v43  ;;  %v212_v52 = vadd.f32 %v386_v2, %v141_v46  ;;  %v145_v53 = vmul.f32 %v381_v1, %v74_v40 }
  0x31   :  { %338 = vst.msk [vmem:[%s964_s3 + $0x1a8] sm:$0xff] %vm284_vm0, %v273_v44  ;;  %339 = vst.msk [vmem:[%s964_s3 + $0x1b0] sm:$0xff] %vm284_vm0, %v274_v45  ;;  %v146_v54 = vmul.f32 %v381_v1, %v75_v41  ;;  %v147_v55 = vmul.f32 %v381_v1, %v76_v42  ;;  %v213_v56 = vadd.f32 %v386_v2, %v142_v49 }
  0x32   :  { %340 = vst.msk [vmem:[%s964_s3 + $0x1b8] sm:$0xff] %vm284_vm0, %v275_v48  ;;  %v214_v57 = vadd.f32 %v386_v2, %v143_v50  ;;  %v215_v58 = vadd.f32 %v386_v2, %v144_v51  ;;  %v148_v59 = vmul.f32 %v381_v1, %v77_v47  ;;  %v276_v60 = vmax.f32 %v212_v52, 0.0 }
  0x33   :  { %v216_v61 = vadd.f32 %v386_v2, %v145_v53  ;;  %v217_v62 = vadd.f32 %v386_v2, %v146_v54  ;;  %v218_v63 = vadd.f32 %v386_v2, %v147_v55  ;;  %v277_v0 = vmax.f32 %v213_v56, 0.0 }
  0x34   :  { %v278_v3 = vmax.f32 %v214_v57, 0.0  ;;  %v279_v4 = vmax.f32 %v215_v58, 0.0  ;;  %v219_v5 = vadd.f32 %v386_v2, %v148_v59  ;;  %341 = vst.msk [vmem:[%s964_s3 + $0x1c0] sm:$0xff] %vm284_vm0, %v276_v60 }
  0x35   :  { %v280_v6 = vmax.f32 %v216_v61, 0.0  ;;  %v281_v7 = vmax.f32 %v217_v62, 0.0  ;;  %v282_v1 = vmax.f32 %v218_v63, 0.0  ;;  %342 = vst.msk [vmem:[%s964_s3 + $0x1c8] sm:$0xff] %vm284_vm0, %v277_v0 }
  0x36   :  { %343 = vst.msk [vmem:[%s964_s3 + $0x1d0] sm:$0xff] %vm284_vm0, %v278_v3  ;;  %344 = vst.msk [vmem:[%s964_s3 + $0x1d8] sm:$0xff] %vm284_vm0, %v279_v4  ;;  %v283_v2 = vmax.f32 %v219_v5, 0.0 }
  0x37   :  { %345 = vst.msk [vmem:[%s964_s3 + $0x1e0] sm:$0xff] %vm284_vm0, %v280_v6  ;;  %346 = vst.msk [vmem:[%s964_s3 + $0x1e8] sm:$0xff] %vm284_vm0, %v281_v7 }
  0x38   :  { %347 = vst.msk [vmem:[%s964_s3 + $0x1f0] sm:$0xff] %vm284_vm0, %v282_v1  ;;  %348 = vst.msk [vmem:[%s964_s3 + $0x1f8] sm:$0xff] %vm284_vm0, %v283_v2 }

</bundles_post_ra>
